<compile_context>
chip_gen: v6e
topology: v6e:2x2x1
jax: 0.10.0
libtpu: 0.0.40
codegen_flags: <defaults>
</compile_context>

<pallas_src>
import functools

import jax
import jax.numpy as jnp
from jax.experimental import pallas as pl
from jax.experimental.pallas import tpu as pltpu

LANE = 128


def _round_up(n, m):
    return ((n + m - 1) // m) * m


# ----------------------------------------------------------------------------
# Pallas kernel: full VAE forward (encoder -> fused mu|logvar -> reparam -> decoder)
# ----------------------------------------------------------------------------
def _vae_fwd_kernel(
    x_ref, eps_ref,
    w1_ref, w2_ref, wmulv_ref, wd1_ref, wd2_ref, wd3_ref,   # folded bf16 weights
    shifts_ref,                                             # packed f32 bias/shift rows
    dec_ref, mulv_ref,                                      # outputs
    *, offs, widths, latent_dim,
):
    f32 = jnp.float32
    bf16 = jnp.bfloat16

    def shift(i):
        o, n = offs[i], widths[i]
        return shifts_ref[:, o:o + n]          # (1, n) row, broadcasts over batch

    # In-kernel cast (VPU, effectively free) instead of a separate XLA cast pass.
    x = x_ref[...].astype(bf16)                # (TB, input_dim)

    # ---- encoder (Linear + folded BN + ReLU; Dropout = identity in eval) ----
    h = jnp.dot(x, w1_ref[...], preferred_element_type=f32)
    h = jnp.maximum(h + shift(0), 0.0)
    h = jnp.dot(h.astype(bf16), w2_ref[...], preferred_element_type=f32)
    h = jnp.maximum(h + shift(1), 0.0)

    # ---- fused mu|logvar head: one lane-dense (TB, 2*latent) tile ----
    mulv = jnp.dot(h.astype(bf16), wmulv_ref[...], preferred_element_type=f32)
    mulv = mulv + shift(2)
    mu = mulv[:, :latent_dim]
    lv = mulv[:, latent_dim:]

    # ---- reparameterization trick ----
    z = mu + eps_ref[...] * jnp.exp(0.5 * lv)

    # ---- decoder ----
    d = jnp.dot(z.astype(bf16), wd1_ref[...], preferred_element_type=f32)
    d = jnp.maximum(d + shift(3), 0.0)
    d = jnp.dot(d.astype(bf16), wd2_ref[...], preferred_element_type=f32)
    d = jnp.maximum(d + shift(4), 0.0)
    d = jnp.dot(d.astype(bf16), wd3_ref[...], preferred_element_type=f32)
    d = d + shift(5)

    # Sigmoid: exp on EUP, denominator reciprocal via EUP vrcp (approx).
    dec_ref[...] = pl.reciprocal(1.0 + jnp.exp(-d), approx=True).astype(dec_ref.dtype)
    mulv_ref[...] = mulv


# ----------------------------------------------------------------------------
# Wrapper: pallas_call; weights VMEM-resident; default = one grid step
# ----------------------------------------------------------------------------
@functools.partial(jax.jit, static_argnames=("block_b", "decoded_dtype"))
def microenvironment_vae_forward(x, eps, prep, *, block_b=None,
                                 decoded_dtype=jnp.bfloat16):
    """block_b=None -> whole batch in one grid step (best for v5e/v6e).
    On v7x, pass block_b=B//2 for exactly one tile per TensorCore."""
    w1, w2, wmulv = prep["w1"], prep["w2"], prep["wmulv"]
    wd1, wd2, wd3 = prep["wd1"], prep["wd2"], prep["wd3"]
    shifts = prep["shifts"]

    B, input_dim = x.shape
    latent_dim = eps.shape[1]
    dim_1 = w1.shape[1]
    dim_2 = w2.shape[1]

    # Static layout of the packed shift/bias vector (128-lane-aligned segments).
    widths = (dim_1, dim_2, 2 * latent_dim, dim_2, dim_1, input_dim)
    offs, o = [], 0
    for n in widths:
        offs.append(o)
        o += _round_up(n, LANE)
    offs = tuple(offs)

    tb = B if block_b is None else min(block_b, B)
    assert B % tb == 0, "batch must be divisible by the batch tile"
    grid = (B // tb,)

    def row_block(feat):                       # batch-sharded arrays
        return pl.BlockSpec((tb, feat), lambda i: (i, 0))

    def resident(arr):                         # weights: constant block index
        return pl.BlockSpec(arr.shape, lambda i: (0, 0))

    kernel = functools.partial(
        _vae_fwd_kernel, offs=offs, widths=widths, latent_dim=latent_dim)

    # Advisory cost hint for XLA scheduling around this (tiny) custom call.
    flops = 2 * B * (input_dim * dim_1 + dim_1 * dim_2 + dim_2 * 2 * latent_dim
                     + latent_dim * dim_2 + dim_2 * dim_1 + dim_1 * input_dim)
    weight_bytes = sum(int(a.size) * a.dtype.itemsize
                       for a in (w1, w2, wmulv, wd1, wd2, wd3, shifts))
    bytes_accessed = (int(x.size) * x.dtype.itemsize
                      + int(eps.size) * eps.dtype.itemsize
                      + weight_bytes
                      + B * input_dim * jnp.dtype(decoded_dtype).itemsize
                      + B * 2 * latent_dim * 4)
    cost = pl.CostEstimate(flops=flops,
                           transcendentals=B * (latent_dim + input_dim),
                           bytes_accessed=bytes_accessed)

    dec, mulv = pl.pallas_call(
        kernel,
        grid=grid,
        in_specs=[
            row_block(input_dim),              # x (any float dtype; cast in-kernel)
            row_block(latent_dim),             # eps
            resident(w1), resident(w2), resident(wmulv),
            resident(wd1), resident(wd2), resident(wd3),
            resident(shifts),
        ],
        out_specs=(row_block(input_dim), row_block(2 * latent_dim)),
        out_shape=(
            jax.ShapeDtypeStruct((B, input_dim), decoded_dtype),    # decoded
            jax.ShapeDtypeStruct((B, 2 * latent_dim), jnp.float32), # mu | logvar
        ),
        compiler_params=pltpu.CompilerParams(
            dimension_semantics=("parallel",),
            vmem_limit_bytes=32 << 20,
        ),
        cost_estimate=cost,
    )(x, eps, w1, w2, wmulv, wd1, wd2, wd3, shifts)

    mu = mulv[:, :latent_dim]
    logvar = mulv[:, latent_dim:]
    return dec, mu, logvar


# ----------------------------------------------------------------------------
# Parameter construction (PyTorch-equivalent) and wrapper-side folding/packing
# ----------------------------------------------------------------------------
def make_raw_params(key, input_dim, dim_1, dim_2, latent_dim):
    """nn.Linear-style init (weights already transposed to (in, out)) + fresh BN."""
    def linear(k, fi, fo):
        kw, kb = jax.random.split(k)
        bound = 1.0 / jnp.sqrt(jnp.float32(fi))
        w = jax.random.uniform(kw, (fi, fo), jnp.float32, -bound, bound)
        b = jax.random.uniform(kb, (fo,), jnp.float32, -bound, bound)
        return w, b

    def bn(dim):
        return dict(gamma=jnp.ones((dim,), jnp.float32),
                    beta=jnp.zeros((dim,), jnp.float32),
                    mean=jnp.zeros((dim,), jnp.float32),
                    var=jnp.ones((dim,), jnp.float32))

    ks = jax.random.split(key, 7)
    p = {}
    p["w1"], p["b1"] = linear(ks[0], input_dim, dim_1);   p["bn1"] = bn(dim_1)
    p["w2"], p["b2"] = linear(ks[1], dim_1, dim_2);       p["bn2"] = bn(dim_2)
    p["wmu"], p["bmu"] = linear(ks[2], dim_2, latent_dim)
    p["wlv"], p["blv"] = linear(ks[3], dim_2, latent_dim)
    p["wd1"], p["bd1"] = linear(ks[4], latent_dim, dim_2); p["bnd1"] = bn(dim_2)
    p["wd2"], p["bd2"] = linear(ks[5], dim_2, dim_1);      p["bnd2"] = bn(dim_1)
    p["wd3"], p["bd3"] = linear(ks[6], dim_1, input_dim)
    return p


def _bn_scale_shift(bn, eps=1e-5):
    s = bn["gamma"] / jnp.sqrt(bn["var"] + eps)
    t = bn["beta"] - bn["mean"] * s
    return s, t


def _pack_rows(rows):
    """Concatenate 1-D rows into a single (1, P) f32 vector, each segment padded
    to a multiple of 128 lanes so in-kernel slices are lane-aligned.
    NOTE: order must match the `widths` layout in the wrapper."""
    segs = []
    for r in rows:
        n = r.shape[-1]
        pad = _round_up(n, LANE) - n
        segs.append(jnp.pad(r.reshape(1, n).astype(jnp.float32), ((0, 0), (0, pad))))
    return jnp.concatenate(segs, axis=1)


def prepare_params(raw):
    """Fold bias + eval-mode BN into (W', t'), fuse mu|logvar heads, cast weights
    to bf16, and pack all shift/bias rows into one vector."""
    def fold(w, b, bn):
        s, t = _bn_scale_shift(bn)
        return w * s[None, :], b * s + t

    w1, t1 = fold(raw["w1"], raw["b1"], raw["bn1"])
    w2, t2 = fold(raw["w2"], raw["b2"], raw["bn2"])
    wmulv = jnp.concatenate([raw["wmu"], raw["wlv"]], axis=1)
    bmulv = jnp.concatenate([raw["bmu"], raw["blv"]], axis=0)
    wd1, td1 = fold(raw["wd1"], raw["bd1"], raw["bnd1"])
    wd2, td2 = fold(raw["wd2"], raw["bd2"], raw["bnd2"])
    wd3, bd3 = raw["wd3"], raw["bd3"]

    bf16 = jnp.bfloat16
    return dict(
        w1=w1.astype(bf16), w2=w2.astype(bf16), wmulv=wmulv.astype(bf16),
        wd1=wd1.astype(bf16), wd2=wd2.astype(bf16), wd3=wd3.astype(bf16),
        shifts=_pack_rows([t1, t2, bmulv, td1, td2, bd3]),
    )


# ----------------------------------------------------------------------------
# Pure-JAX reference (optionally mirroring the bf16 weight path)
# ----------------------------------------------------------------------------
def reference_forward(x, eps, raw, *, weights_dtype=jnp.float32):
    wd = weights_dtype
    f32 = jnp.float32

    def lin_bn_relu(h, w, b, bn):
        s, t = _bn_scale_shift(bn)
        y = jnp.dot(h.astype(wd), (w * s[None, :]).astype(wd),
                    preferred_element_type=f32) + (b * s + t)
        return jnp.maximum(y, 0.0)

    h = lin_bn_relu(x, raw["w1"], raw["b1"], raw["bn1"])
    h = lin_bn_relu(h, raw["w2"], raw["b2"], raw["bn2"])
    mu = jnp.dot(h.astype(wd), raw["wmu"].astype(wd), preferred_element_type=f32) + raw["bmu"]
    lv = jnp.dot(h.astype(wd), raw["wlv"].astype(wd), preferred_element_type=f32) + raw["blv"]
    z = mu + eps * jnp.exp(0.5 * lv)
    d = lin_bn_relu(z, raw["wd1"], raw["bd1"], raw["bnd1"])
    d = lin_bn_relu(d, raw["wd2"], raw["bd2"], raw["bnd2"])
    d = jnp.dot(d.astype(wd), raw["wd3"].astype(wd), preferred_element_type=f32) + raw["bd3"]
    return jax.nn.sigmoid(d), mu, lv


if __name__ == "__main__":
    # Scaled-down but structurally faithful shapes (input_dim > dim_1 > dim_2 > latent).
    B, INPUT_DIM, DIM_1, DIM_2, LATENT_DIM = 256, 512, 256, 128, 64

    key = jax.random.PRNGKey(0)
    k_x, k_eps, k_p = jax.random.split(key, 3)

    x = jax.random.uniform(k_x, (B, INPUT_DIM), jnp.float32)      # data in [0, 1)
    eps = jax.random.normal(k_eps, (B, LATENT_DIM), jnp.float32)  # reparam noise
    raw = make_raw_params(k_p, INPUT_DIM, DIM_1, DIM_2, LATENT_DIM)
    prep = prepare_params(raw)

    # Default: whole batch in one grid step (v5e/v6e best case; fine on v7x too).
    # On v7x one may pass block_b=B//2 for one tile per TensorCore.
    decoded, mu, logvar = microenvironment_vae_forward(x, eps, prep)
    jax.block_until_ready((decoded, mu, logvar))

    assert decoded.shape == (B, INPUT_DIM)
    assert mu.shape == (B, LATENT_DIM) and logvar.shape == (B, LATENT_DIM)

    decoded_f32 = decoded.astype(jnp.float32)

    # Tight check against a reference mirroring the bf16-weight / f32-accumulate path
    # (decoded tolerance absorbs bf16 output rounding + approx reciprocal).
    ref_dec_q, ref_mu_q, ref_lv_q = reference_forward(x, eps, raw, weights_dtype=jnp.bfloat16)
    assert jnp.allclose(mu, ref_mu_q, atol=1e-3, rtol=1e-3)
    assert jnp.allclose(logvar, ref_lv_q, atol=1e-3, rtol=1e-3)
    assert jnp.allclose(decoded_f32, ref_dec_q, atol=1e-2, rtol=0.0)

    # Looser check against the full-precision (PyTorch-semantics) reference —
    # slack absorbs bf16 weight/input/output quantization.
    ref_dec, ref_mu, ref_lv = reference_forward(x, eps, raw)
    assert jnp.allclose(mu, ref_mu, atol=3e-2, rtol=3e-2)
    assert jnp.allclose(logvar, ref_lv, atol=3e-2, rtol=3e-2)
    assert jnp.allclose(decoded_f32, ref_dec, atol=3e-2, rtol=0.0)

    # TODO(synk): optionally generate eps in-kernel (pltpu.prng_seed + stateful_normal)
    # to drop the eps input stream; kept external here for deterministic testing.

    print("KERNEL_OK")
</pallas_src>

<mosaic_0001>
module attributes {stable_mosaic.version = 11 : i64} {
  func.func @_vae_fwd_kernel(%arg0: i32, %arg1: memref<256x512xf32, #tpu.memory_space<vmem>>, %arg2: memref<256x64xf32, #tpu.memory_space<vmem>>, %arg3: memref<512x256xbf16, #tpu.memory_space<vmem>>, %arg4: memref<256x128xbf16, #tpu.memory_space<vmem>>, %arg5: memref<128x128xbf16, #tpu.memory_space<vmem>>, %arg6: memref<64x128xbf16, #tpu.memory_space<vmem>>, %arg7: memref<128x256xbf16, #tpu.memory_space<vmem>>, %arg8: memref<256x512xbf16, #tpu.memory_space<vmem>>, %arg9: memref<1x1408xf32, #tpu.memory_space<vmem>>, %arg10: memref<256x512xbf16, #tpu.memory_space<vmem>>, %arg11: memref<256x128xf32, #tpu.memory_space<vmem>>) attributes {dimension_semantics = [#tpu.dimension_semantics<parallel>], iteration_bounds = array<i64: 1>, scalar_prefetch = 0 : i64, scratch_operands = 0 : i64, tpu.core_type = #tpu.core_type<tc>, window_params = [{transform_indices = @transform_0, window_bounds = array<i64: 256, 512>}, {transform_indices = @transform_1, window_bounds = array<i64: 256, 64>}, {pipeline_mode = #tpu.pipeline_mode<synchronous>, transform_indices = @transform_2, window_bounds = array<i64: 512, 256>}, {pipeline_mode = #tpu.pipeline_mode<synchronous>, transform_indices = @transform_3, window_bounds = array<i64: 256, 128>}, {pipeline_mode = #tpu.pipeline_mode<synchronous>, transform_indices = @transform_4, window_bounds = array<i64: 128, 128>}, {pipeline_mode = #tpu.pipeline_mode<synchronous>, transform_indices = @transform_5, window_bounds = array<i64: 64, 128>}, {pipeline_mode = #tpu.pipeline_mode<synchronous>, transform_indices = @transform_6, window_bounds = array<i64: 128, 256>}, {pipeline_mode = #tpu.pipeline_mode<synchronous>, transform_indices = @transform_7, window_bounds = array<i64: 256, 512>}, {pipeline_mode = #tpu.pipeline_mode<synchronous>, transform_indices = @transform_8, window_bounds = array<i64: 1, 1408>}, {transform_indices = @transform_9, window_bounds = array<i64: 256, 512>}, {transform_indices = @transform_10, window_bounds = array<i64: 256, 128>}]} {
    %c0 = arith.constant 0 : index
    %c0_0 = arith.constant 0 : index
    %0 = vector.load %arg1[%c0, %c0_0] : memref<256x512xf32, #tpu.memory_space<vmem>>, vector<256x512xf32>
    %1 = arith.truncf %0 : vector<256x512xf32> to vector<256x512xbf16>
    %c0_1 = arith.constant 0 : index
    %c0_2 = arith.constant 0 : index
    %2 = vector.load %arg3[%c0_1, %c0_2] : memref<512x256xbf16, #tpu.memory_space<vmem>>, vector<512x256xbf16>
    %cst = arith.constant dense<0.000000e+00> : vector<256x256xf32>
    %3 = tpu.matmul %1, %2, %cst {dimension_numbers = #tpu.dot_dimension_numbers<[1], [0], [0], [1], [0, 0, 1, 1], [], []>} : vector<256x512xbf16>, vector<512x256xbf16>, vector<256x256xf32> -> vector<256x256xf32>
    %c0_3 = arith.constant 0 : index
    %c0_4 = arith.constant 0 : index
    %4 = vector.load %arg9[%c0_3, %c0_4] : memref<1x1408xf32, #tpu.memory_space<vmem>>, vector<1x256xf32>
    %5 = vector.broadcast %4 : vector<1x256xf32> to vector<256x256xf32>
    %6 = arith.addf %3, %5 : vector<256x256xf32>
    %cst_5 = arith.constant 0.000000e+00 : f32
    %7 = vector.broadcast %cst_5 : f32 to vector<256x256xf32>
    %8 = arith.maximumf %6, %7 : vector<256x256xf32>
    %9 = arith.truncf %8 : vector<256x256xf32> to vector<256x256xbf16>
    %c0_6 = arith.constant 0 : index
    %c0_7 = arith.constant 0 : index
    %10 = vector.load %arg4[%c0_6, %c0_7] : memref<256x128xbf16, #tpu.memory_space<vmem>>, vector<256x128xbf16>
    %cst_8 = arith.constant dense<0.000000e+00> : vector<256x128xf32>
    %11 = tpu.matmul %9, %10, %cst_8 {dimension_numbers = #tpu.dot_dimension_numbers<[1], [0], [0], [1], [0, 0, 1, 1], [], []>} : vector<256x256xbf16>, vector<256x128xbf16>, vector<256x128xf32> -> vector<256x128xf32>
    %c0_9 = arith.constant 0 : index
    %c256 = arith.constant 256 : index
    %12 = vector.load %arg9[%c0_9, %c256] : memref<1x1408xf32, #tpu.memory_space<vmem>>, vector<1x128xf32>
    %13 = vector.broadcast %12 : vector<1x128xf32> to vector<256x128xf32>
    %14 = arith.addf %11, %13 : vector<256x128xf32>
    %cst_10 = arith.constant 0.000000e+00 : f32
    %15 = vector.broadcast %cst_10 : f32 to vector<256x128xf32>
    %16 = arith.maximumf %14, %15 : vector<256x128xf32>
    %17 = arith.truncf %16 : vector<256x128xf32> to vector<256x128xbf16>
    %c0_11 = arith.constant 0 : index
    %c0_12 = arith.constant 0 : index
    %18 = vector.load %arg5[%c0_11, %c0_12] : memref<128x128xbf16, #tpu.memory_space<vmem>>, vector<128x128xbf16>
    %cst_13 = arith.constant dense<0.000000e+00> : vector<256x128xf32>
    %19 = tpu.matmul %17, %18, %cst_13 {dimension_numbers = #tpu.dot_dimension_numbers<[1], [0], [0], [1], [0, 0, 1, 1], [], []>} : vector<256x128xbf16>, vector<128x128xbf16>, vector<256x128xf32> -> vector<256x128xf32>
    %c0_14 = arith.constant 0 : index
    %c384 = arith.constant 384 : index
    %20 = vector.load %arg9[%c0_14, %c384] : memref<1x1408xf32, #tpu.memory_space<vmem>>, vector<1x128xf32>
    %21 = vector.broadcast %20 : vector<1x128xf32> to vector<256x128xf32>
    %22 = arith.addf %19, %21 : vector<256x128xf32>
    %23 = vector.extract_strided_slice %22 {offsets = [0, 0], sizes = [256, 64], strides = [1, 1]} : vector<256x128xf32> to vector<256x64xf32>
    %24 = vector.extract_strided_slice %22 {offsets = [0, 64], sizes = [256, 64], strides = [1, 1]} : vector<256x128xf32> to vector<256x64xf32>
    %c0_15 = arith.constant 0 : index
    %c0_16 = arith.constant 0 : index
    %25 = vector.load %arg2[%c0_15, %c0_16] : memref<256x64xf32, #tpu.memory_space<vmem>>, vector<256x64xf32>
    %cst_17 = arith.constant 5.000000e-01 : f32
    %26 = vector.broadcast %cst_17 : f32 to vector<256x64xf32>
    %27 = arith.mulf %26, %24 : vector<256x64xf32>
    %28 = math.exp %27 : vector<256x64xf32>
    %29 = arith.mulf %25, %28 : vector<256x64xf32>
    %30 = arith.addf %23, %29 : vector<256x64xf32>
    %31 = arith.truncf %30 : vector<256x64xf32> to vector<256x64xbf16>
    %c0_18 = arith.constant 0 : index
    %c0_19 = arith.constant 0 : index
    %32 = vector.load %arg6[%c0_18, %c0_19] : memref<64x128xbf16, #tpu.memory_space<vmem>>, vector<64x128xbf16>
    %cst_20 = arith.constant dense<0.000000e+00> : vector<256x128xf32>
    %33 = tpu.matmul %31, %32, %cst_20 {dimension_numbers = #tpu.dot_dimension_numbers<[1], [0], [0], [1], [0, 0, 1, 1], [], []>} : vector<256x64xbf16>, vector<64x128xbf16>, vector<256x128xf32> -> vector<256x128xf32>
    %c0_21 = arith.constant 0 : index
    %c512 = arith.constant 512 : index
    %34 = vector.load %arg9[%c0_21, %c512] : memref<1x1408xf32, #tpu.memory_space<vmem>>, vector<1x128xf32>
    %35 = vector.broadcast %34 : vector<1x128xf32> to vector<256x128xf32>
    %36 = arith.addf %33, %35 : vector<256x128xf32>
    %cst_22 = arith.constant 0.000000e+00 : f32
    %37 = vector.broadcast %cst_22 : f32 to vector<256x128xf32>
    %38 = arith.maximumf %36, %37 : vector<256x128xf32>
    %39 = arith.truncf %38 : vector<256x128xf32> to vector<256x128xbf16>
    %c0_23 = arith.constant 0 : index
    %c0_24 = arith.constant 0 : index
    %40 = vector.load %arg7[%c0_23, %c0_24] : memref<128x256xbf16, #tpu.memory_space<vmem>>, vector<128x256xbf16>
    %cst_25 = arith.constant dense<0.000000e+00> : vector<256x256xf32>
    %41 = tpu.matmul %39, %40, %cst_25 {dimension_numbers = #tpu.dot_dimension_numbers<[1], [0], [0], [1], [0, 0, 1, 1], [], []>} : vector<256x128xbf16>, vector<128x256xbf16>, vector<256x256xf32> -> vector<256x256xf32>
    %c0_26 = arith.constant 0 : index
    %c640 = arith.constant 640 : index
    %42 = vector.load %arg9[%c0_26, %c640] : memref<1x1408xf32, #tpu.memory_space<vmem>>, vector<1x256xf32>
    %43 = vector.broadcast %42 : vector<1x256xf32> to vector<256x256xf32>
    %44 = arith.addf %41, %43 : vector<256x256xf32>
    %cst_27 = arith.constant 0.000000e+00 : f32
    %45 = vector.broadcast %cst_27 : f32 to vector<256x256xf32>
    %46 = arith.maximumf %44, %45 : vector<256x256xf32>
    %47 = arith.truncf %46 : vector<256x256xf32> to vector<256x256xbf16>
    %c0_28 = arith.constant 0 : index
    %c0_29 = arith.constant 0 : index
    %48 = vector.load %arg8[%c0_28, %c0_29] : memref<256x512xbf16, #tpu.memory_space<vmem>>, vector<256x512xbf16>
    %cst_30 = arith.constant dense<0.000000e+00> : vector<256x512xf32>
    %49 = tpu.matmul %47, %48, %cst_30 {dimension_numbers = #tpu.dot_dimension_numbers<[1], [0], [0], [1], [0, 0, 1, 1], [], []>} : vector<256x256xbf16>, vector<256x512xbf16>, vector<256x512xf32> -> vector<256x512xf32>
    %c0_31 = arith.constant 0 : index
    %c896 = arith.constant 896 : index
    %50 = vector.load %arg9[%c0_31, %c896] : memref<1x1408xf32, #tpu.memory_space<vmem>>, vector<1x512xf32>
    %51 = vector.broadcast %50 : vector<1x512xf32> to vector<256x512xf32>
    %52 = arith.addf %49, %51 : vector<256x512xf32>
    %cst_32 = arith.constant 0.000000e+00 : f32
    %53 = vector.broadcast %cst_32 : f32 to vector<256x512xf32>
    %54 = arith.subf %53, %52 : vector<256x512xf32>
    %55 = math.exp %54 : vector<256x512xf32>
    %cst_33 = arith.constant 1.000000e+00 : f32
    %56 = vector.broadcast %cst_33 : f32 to vector<256x512xf32>
    %57 = arith.addf %56, %55 : vector<256x512xf32>
    %58 = tpu.reciprocal %57 {approx = true} : vector<256x512xf32> -> vector<256x512xf32>
    %59 = arith.truncf %58 : vector<256x512xf32> to vector<256x512xbf16>
    %c0_34 = arith.constant 0 : index
    %c0_35 = arith.constant 0 : index
    %60 = vector.load %arg10[%c0_34, %c0_35] : memref<256x512xbf16, #tpu.memory_space<vmem>>, vector<256x512xbf16>
    tpu.vector_store %arg10[%c0_34, %c0_35], %59 {strides = array<i32>} : memref<256x512xbf16, #tpu.memory_space<vmem>>, vector<256x512xbf16>,
    %c0_36 = arith.constant 0 : index
    %c0_37 = arith.constant 0 : index
    %61 = vector.load %arg11[%c0_36, %c0_37] : memref<256x128xf32, #tpu.memory_space<vmem>>, vector<256x128xf32>
    tpu.vector_store %arg11[%c0_36, %c0_37], %22 {strides = array<i32>} : memref<256x128xf32, #tpu.memory_space<vmem>>, vector<256x128xf32>,
    return
  }
  func.func @transform_0(%arg0: i32) -> (i32, i32) {
    %c0_i32 = arith.constant 0 : i32
    %c0_i32_0 = arith.constant 0 : i32
    return %arg0, %c0_i32 : i32, i32
  }
  func.func @transform_1(%arg0: i32) -> (i32, i32) {
    %c0_i32 = arith.constant 0 : i32
    %c0_i32_0 = arith.constant 0 : i32
    return %arg0, %c0_i32 : i32, i32
  }
  func.func @transform_2(%arg0: i32) -> (i32, i32) {
    %c0_i32 = arith.constant 0 : i32
    %c0_i32_0 = arith.constant 0 : i32
    %c0_i32_1 = arith.constant 0 : i32
    return %c0_i32, %c0_i32_0 : i32, i32
  }
  func.func @transform_3(%arg0: i32) -> (i32, i32) {
    %c0_i32 = arith.constant 0 : i32
    %c0_i32_0 = arith.constant 0 : i32
    %c0_i32_1 = arith.constant 0 : i32
    return %c0_i32, %c0_i32_0 : i32, i32
  }
  func.func @transform_4(%arg0: i32) -> (i32, i32) {
    %c0_i32 = arith.constant 0 : i32
    %c0_i32_0 = arith.constant 0 : i32
    %c0_i32_1 = arith.constant 0 : i32
    return %c0_i32, %c0_i32_0 : i32, i32
  }
  func.func @transform_5(%arg0: i32) -> (i32, i32) {
    %c0_i32 = arith.constant 0 : i32
    %c0_i32_0 = arith.constant 0 : i32
    %c0_i32_1 = arith.constant 0 : i32
    return %c0_i32, %c0_i32_0 : i32, i32
  }
  func.func @transform_6(%arg0: i32) -> (i32, i32) {
    %c0_i32 = arith.constant 0 : i32
    %c0_i32_0 = arith.constant 0 : i32
    %c0_i32_1 = arith.constant 0 : i32
    return %c0_i32, %c0_i32_0 : i32, i32
  }
  func.func @transform_7(%arg0: i32) -> (i32, i32) {
    %c0_i32 = arith.constant 0 : i32
    %c0_i32_0 = arith.constant 0 : i32
    %c0_i32_1 = arith.constant 0 : i32
    return %c0_i32, %c0_i32_0 : i32, i32
  }
  func.func @transform_8(%arg0: i32) -> (i32, i32) {
    %c0_i32 = arith.constant 0 : i32
    %c0_i32_0 = arith.constant 0 : i32
    %c0_i32_1 = arith.constant 0 : i32
    return %c0_i32, %c0_i32_0 : i32, i32
  }
  func.func @transform_9(%arg0: i32) -> (i32, i32) {
    %c0_i32 = arith.constant 0 : i32
    %c0_i32_0 = arith.constant 0 : i32
    return %arg0, %c0_i32 : i32, i32
  }
  func.func @transform_10(%arg0: i32) -> (i32, i32) {
    %c0_i32 = arith.constant 0 : i32
    %c0_i32_0 = arith.constant 0 : i32
    return %arg0, %c0_i32 : i32, i32
  }
}

</mosaic_0001>

<bundles_post_ra>
// kernel: microenvironment_vae_forward.1
= control target key start
LH: loop header
LB: loop body
LE: loop exit
PB: predicated region body
PF: predicated region fallthrough
CT: control target
= control target key end

     0   :  { %16 = vsyncpa [#allocation3], 0  ;;  %s7403_s0 = inlined_call_operand.hbm [shape: f32[256,512], index: 0, kind: input, shape index: {}]   ;;  %s7404_s1 = inlined_call_operand.vmem [shape: f32[256,64], index: 1, kind: input, shape index: {}]   ;;  %s7405_s2 = inlined_call_operand.hbm [shape: bf16[512,256], index: 2, kind: input, shape index: {}]   ;;  %s7406_s3 = inlined_call_operand.vmem [shape: bf16[256,128], index: 3, kind: input, shape index: {}]   ;;  %s7407_s4 = inlined_call_operand.vmem [shape: bf16[128,128], index: 4, kind: input, shape index: {}]   ;;  %s7408_s5 = inlined_call_operand.vmem [shape: bf16[64,128], index: 5, kind: input, shape index: {}]   ;;  %s7409_s6 = inlined_call_operand.vmem [shape: bf16[128,256], index: 6, kind: input, shape index: {}]   ;;  %s7410_s7 = inlined_call_operand.hbm [shape: bf16[256,512], index: 7, kind: input, shape index: {}]   ;;  %s7411_s8 = inlined_call_operand.vmem [shape: f32[1,1408], index: 8, kind: input, shape index: {}]   ;;  %s7412_s9 = inlined_call_operand.hbm [shape: bf16[256,512], index: 9, kind: output, shape index: {0}]   ;;  %s7413_s10 = inlined_call_operand.vmem [shape: f32[256,128], index: 10, kind: output, shape index: {1}]  }
   0x1   :  { %17 = vsyncpa [#allocation6], 0 }
   0x2   :  { %18 = vsyncpa [#allocation4], 0  ;;  %s6200_s13 = smov [#allocation5]  }
   0x3   :  { %s38_s14 = sshll.u32 %s6200_s13, 4  ;;  %s39_s14 = int_to_ptr.vmem [resolvable:$true] %s38_s14 }
   0x4   :  { %s6122_s15 = scalar_lea.vmem %s39_s14, 8192  ;;  %p6127_p1 = scmp.lt.s32.totalorder %s39_s14, %s39_s14 }
   0x5   :  { %p6123_p0 = scmp.ne.s32.totalorder %s39_s14, %s6122_s15  ;;  %p6128_p2 = scmp.lt.s32.totalorder %s6122_s15, %s6122_s15 }
   0x7   :  { %p6129_p3 = por %p6128_p2, %p6127_p1 }
   0x9   :  { %p6130_p4 = pnand %p6129_p3, %p6123_p0 }
   0xb   :  { %6133 = shalt.err (!%p6130_p4)
}
   0xc   :  { %s6201_s16 = smov 128   ;;  %s6202_s17 = smov 8  }
   0xd   :  { %44 = dma.hbm_to_vmem [thread:$0]  %s7405_s2, 8192, %s39_s14, [#allocation6], %s6201_s16, %s6201_s16, %s6202_s17  }
   0xe   :  { %s6203_s20 = smov [#allocation2]  }
   0xf   :  { %s24_s21 = sshll.u32 %s6203_s20, 4  ;;  %s25_s21 = int_to_ptr.vmem [resolvable:$true] %s24_s21 }
  0x10   :  { %s6142_s22 = scalar_lea.vmem %s25_s21, 16384  ;;  %p6147_p6 = scmp.lt.s32.totalorder %s25_s21, %s25_s21 }
  0x11   :  { %p6143_p5 = scmp.ne.s32.totalorder %s25_s21, %s6142_s22  ;;  %p6148_p7 = scmp.lt.s32.totalorder %s6142_s22, %s6142_s22 }
  0x13   :  { %p6149_p8 = por %p6148_p7, %p6147_p6 }
  0x15   :  { %p6150_p9 = pnand %p6149_p8, %p6143_p5 }
  0x17   :  { %6153 = shalt.err (!%p6150_p9)
}
  0x18   :  { %s6204_s23 = smov 512   ;;  %s6205_s24 = smov 32  }
  0x19   :  { %30 = dma.hbm_to_vmem [thread:$0]  %s7403_s0, 16384, %s25_s21, [#allocation3], %s6204_s23, %s6204_s23, %s6205_s24  }
  0x1a   :  { %s6206_s27 = smov [#allocation7]  }
  0x1b   :  { %s58_s28 = sshll.u32 %s6206_s27, 4  ;;  %s59_s28 = int_to_ptr.vmem [resolvable:$true] %s58_s28 }
  0x1c   :  { %s6162_s2 = scalar_lea.vmem %s59_s28, 8192  ;;  %p6167_p11 = scmp.lt.s32.totalorder %s59_s28, %s59_s28 }
  0x1d   :  { %p6163_p10 = scmp.ne.s32.totalorder %s59_s28, %s6162_s2  ;;  %p6168_p12 = scmp.lt.s32.totalorder %s6162_s2, %s6162_s2 }
  0x1f   :  { %p6169_p13 = por %p6168_p12, %p6167_p11 }
  0x21   :  { %p6170_p0 = pnand %p6169_p13, %p6163_p10 }
  0x23   :  { %6173 = shalt.err (!%p6170_p0)
}
  0x24   :  { %s6207_s29 = smov 256   ;;  %s6208_s30 = smov 16  }
  0x25   :  { %64 = dma.hbm_to_vmem [thread:$0]  %s7410_s7, 8192, %s59_s28, [#allocation6], %s6207_s29, %s6207_s29, %s6208_s30  }
  0x26   :  { %6194 = dma.done.wait [#allocation3], 16384  }
  0x27   :  { %6195 = vsyncadd [#allocation3], 4294950912 }
  0x28   :  { %6196 = dma.done.wait [#allocation6], 16384  }
  0x29   :  { %6197 = vsyncadd [#allocation6], 4294950912  ;;  %v5294_v0 = vld [vmem:[#allocation5 + $0x74] ss:$8 sps:$4 sm:$0xff]   ;;  %v5296_v1 = vld [vmem:[#allocation5 + $0x70] ss:$8 sps:$4 sm:$0xff]  }
  0x2a   :  { %5250 = vmatprep.subr.bf16.mxu1 %v5294_v0  ;;  %v5297_v2 = vld [vmem:[#allocation5 + $0x64] ss:$8 sps:$4 sm:$0xff]   ;;  %665 = vmatprep.subr.bf16.mxu0 %v5294_v0  ;;  %v5299_v3 = vld [vmem:[#allocation5 + $0x60] ss:$8 sps:$4 sm:$0xff]   ;;  %v5300_v4 = vld [vmem:[#allocation5 + $0x54] ss:$8 sps:$4 sm:$0xff]  }
  0x2b   :  { %5266 = vmatpush1.bf16.msra.mxu1 %v5296_v1  ;;  %666 = vmatpush1.bf16.msra.mxu0 %v5296_v1  ;;  %v5302_v5 = vld [vmem:[#allocation5 + $0x50] ss:$8 sps:$4 sm:$0xff]   ;;  %v5303_v6 = vld [vmem:[#allocation5 + $0x44] ss:$8 sps:$4 sm:$0xff]   ;;  %v5305_v7 = vld [vmem:[#allocation5 + $0x40] ss:$8 sps:$4 sm:$0xff]  }
  0x2c   :  { %5251 = vmatprep.subr.bf16.mxu1 %v5297_v2  ;;  %667 = vmatprep.subr.bf16.mxu0 %v5297_v2  ;;  %v5306_v8 = vld [vmem:[#allocation5 + $0x34] ss:$8 sps:$4 sm:$0xff]   ;;  %v5308_v9 = vld [vmem:[#allocation5 + $0x30] ss:$8 sps:$4 sm:$0xff]   ;;  %v5309_v10 = vld [vmem:[#allocation5 + $0x24] ss:$8 sps:$4 sm:$0xff]  }
  0x2d   :  { %v5311_v11 = vld [vmem:[#allocation5 + $0x20] ss:$8 sps:$4 sm:$0xff]   ;;  %v5312_v12 = vld [vmem:[#allocation5 + $0x14] ss:$8 sps:$4 sm:$0xff]   ;;  %v5314_v16 = vld [vmem:[#allocation5 + $0x10] ss:$8 sps:$4 sm:$0xff]  }
  0x2e   :  { %v142_v13 = vld [vmem:[#allocation2 + $0x208] sm:$0xff]  ;;  %v5318_v19 = vld [vmem:[#allocation5 + $0xf4] ss:$8 sps:$4 sm:$0xff]   ;;  %v5320_v20 = vld [vmem:[#allocation5 + $0xf0] ss:$8 sps:$4 sm:$0xff]   ;;  %vm2098_vm0 = vcmask 523264  }
  0x2f   :  { %5267 = vmatpush1.bf16.msra.mxu1 %v5299_v3  ;;  %668 = vmatpush1.bf16.msra.mxu0 %v5299_v3  ;;  %v146_v14 = vld [vmem:[#allocation2 + $0x228] sm:$0xff]  ;;  %v5324_v23 = vld [vmem:[#allocation5 + $0xd4] ss:$8 sps:$4 sm:$0xff]   ;;  %v5326_v24 = vld [vmem:[#allocation5 + $0xd0] ss:$8 sps:$4 sm:$0xff]  }
  0x30   :  { %5252 = vmatprep.subr.bf16.mxu1 %v5300_v4  ;;  %669 = vmatprep.subr.bf16.mxu0 %v5300_v4  ;;  %v238_v15 = vpack.c.bf16 %v146_v14, %v142_v13  ;;  %v5315_v17 = vld [vmem:[#allocation5 + $0x4] ss:$8 sps:$4 sm:$0xff]   ;;  %v5317_v18 = vld [vmem:[#allocation5] ss:$8 sps:$4 sm:$0xff]   ;;  %v5330_v27 = vld [vmem:[#allocation5 + $0xb4] ss:$8 sps:$4 sm:$0xff]  }
  0x31   :  { %v5321_v21 = vld [vmem:[#allocation5 + $0xe4] ss:$8 sps:$4 sm:$0xff]   ;;  %v5323_v22 = vld [vmem:[#allocation5 + $0xe0] ss:$8 sps:$4 sm:$0xff]   ;;  %v5332_v28 = vld [vmem:[#allocation5 + $0xb0] ss:$8 sps:$4 sm:$0xff]  }
  0x32   :  { %777 = vmatprep.mubr.bf16.mxu1 %v238_v15  ;;  %v5327_v25 = vld [vmem:[#allocation5 + $0xc4] ss:$8 sps:$4 sm:$0xff]   ;;  %v5329_v26 = vld [vmem:[#allocation5 + $0xc0] ss:$8 sps:$4 sm:$0xff]   ;;  %v5336_v34 = vld [vmem:[#allocation5 + $0x94] ss:$8 sps:$4 sm:$0xff]  }
  0x33   :  { %5268 = vmatpush1.bf16.msra.mxu1 %v5302_v5  ;;  %670 = vmatpush1.bf16.msra.mxu0 %v5302_v5  ;;  %v5333_v29 = vld [vmem:[#allocation5 + $0xa4] ss:$8 sps:$4 sm:$0xff]   ;;  %v5335_v32 = vld [vmem:[#allocation5 + $0xa0] ss:$8 sps:$4 sm:$0xff]   ;;  %v5338_v35 = vld [vmem:[#allocation5 + $0x90] ss:$8 sps:$4 sm:$0xff]  }
  0x34   :  { %5253 = vmatprep.subr.bf16.mxu1 %v5303_v6  ;;  %671 = vmatprep.subr.bf16.mxu0 %v5303_v6  ;;  %v78_v30 = vld [vmem:[#allocation2 + $0x8] sm:$0xff]  ;;  %v141_v38 = vld [vmem:[#allocation2 + $0x200] sm:$0xff]  ;;  %v5344_v42 = vld [vmem:[#allocation5 + $0x174] ss:$8 sps:$4 sm:$0xff]  }
  0x35   :  { %v82_v31 = vld [vmem:[#allocation2 + $0x28] sm:$0xff]  ;;  %v145_v39 = vld [vmem:[#allocation2 + $0x220] sm:$0xff]  ;;  %v5342_v49 = vld [vmem:[#allocation5 + $0x170] ss:$8 sps:$4 sm:$0xff]  }
  0x36   :  { %v206_v33 = vpack.c.bf16 %v82_v31, %v78_v30  ;;  %v5339_v36 = vld [vmem:[#allocation5 + $0x84] ss:$8 sps:$4 sm:$0xff]   ;;  %v5341_v37 = vld [vmem:[#allocation5 + $0x80] ss:$8 sps:$4 sm:$0xff]   ;;  %v237_v47 = vpack.c.bf16 %v145_v39, %v141_v38  ;;  %v5350_v58 = vld [vmem:[#allocation5 + $0x154] ss:$8 sps:$4 sm:$0xff]  }
  0x37   :  { %5269 = vmatpush1.bf16.msra.mxu1 %v5305_v7  ;;  %672 = vmatpush1.bf16.msra.mxu0 %v5305_v7  ;;  %v77_v40 = vld [vmem:[#allocation2] sm:$0xff]  ;;  %v150_v43 = vld [vmem:[#allocation2 + $0x248] sm:$0xff]  ;;  %v5348_v1 = vld [vmem:[#allocation5 + $0x150] ss:$8 sps:$4 sm:$0xff]  }
  0x38   :  { %5254 = vmatprep.subr.bf16.mxu1 %v5306_v8  ;;  %673 = vmatprep.subr.bf16.mxu0 %v5306_v8  ;;  %v81_v41 = vld [vmem:[#allocation2 + $0x20] sm:$0xff]  ;;  %v154_v44 = vld [vmem:[#allocation2 + $0x268] sm:$0xff]  ;;  %v5360_v31 = vld [vmem:[#allocation5 + $0x110] ss:$8 sps:$4 sm:$0xff]  }
  0x39   :  { %697 = vmatprep.mubr.bf16.mxu0 %v206_v33  ;;  %v86_v45 = vld [vmem:[#allocation2 + $0x48] sm:$0xff]  ;;  %v205_v48 = vpack.c.bf16 %v81_v41, %v77_v40  ;;  %v242_v50 = vpack.c.bf16 %v154_v44, %v150_v43  ;;  %v149_v54 = vld [vmem:[#allocation2 + $0x240] sm:$0xff]  ;;  %v5368_v40 = vld [vmem:[#allocation5 + $0x1f4] ss:$8 sps:$4 sm:$0xff]  }
  0x3a   :  { %v90_v46 = vld [vmem:[#allocation2 + $0x68] sm:$0xff]  ;;  %v153_v55 = vld [vmem:[#allocation2 + $0x260] sm:$0xff] }
  0x3b   :  { %5270 = vmatpush1.bf16.msra.mxu1 %v5308_v9  ;;  %674 = vmatpush1.bf16.msra.mxu0 %v5308_v9  ;;  %v5347_v51 = vld [vmem:[#allocation5 + $0x164] ss:$8 sps:$4 sm:$0xff]   ;;  %v210_v52 = vpack.c.bf16 %v90_v46, %v86_v45  ;;  %v5345_v53 = vld [vmem:[#allocation5 + $0x160] ss:$8 sps:$4 sm:$0xff]   ;;  %v241_v63 = vpack.c.bf16 %v153_v55, %v149_v54 }
  0x3c   :  { %5255 = vmatprep.subr.bf16.mxu1 %v5309_v10  ;;  %675 = vmatprep.subr.bf16.mxu0 %v5309_v10  ;;  %v85_v56 = vld [vmem:[#allocation2 + $0x40] sm:$0xff]  ;;  %v158_v59 = vld [vmem:[#allocation2 + $0x288] sm:$0xff]  ;;  %v5356_v10 = vld [vmem:[#allocation5 + $0x134] ss:$8 sps:$4 sm:$0xff]  }
  0x3d   :  { %v89_v57 = vld [vmem:[#allocation2 + $0x60] sm:$0xff]  ;;  %v162_v60 = vld [vmem:[#allocation2 + $0x2a8] sm:$0xff] }
  0x3e   :  { %v94_v61 = vld [vmem:[#allocation2 + $0x88] sm:$0xff]  ;;  %v209_v0 = vpack.c.bf16 %v89_v57, %v85_v56  ;;  %v246_v2 = vpack.c.bf16 %v162_v60, %v158_v59  ;;  %v157_v6 = vld [vmem:[#allocation2 + $0x280] sm:$0xff]  ;;  %v5374_v56 = vld [vmem:[#allocation5 + $0x1d4] ss:$8 sps:$4 sm:$0xff]  }
  0x3f   :  { %5271 = vmatpush1.bf16.msra.mxu1 %v5311_v11  ;;  %676 = vmatpush1.bf16.msra.mxu0 %v5311_v11  ;;  %v98_v62 = vld [vmem:[#allocation2 + $0xa8] sm:$0xff]  ;;  %v161_v7 = vld [vmem:[#allocation2 + $0x2a0] sm:$0xff] }
  0x40   :  { %5256 = vmatprep.subr.bf16.mxu1 %v5312_v12  ;;  %677 = vmatprep.subr.bf16.mxu0 %v5312_v12  ;;  %v5353_v3 = vld [vmem:[#allocation5 + $0x144] ss:$8 sps:$4 sm:$0xff]   ;;  %v214_v4 = vpack.c.bf16 %v98_v62, %v94_v61  ;;  %v5351_v5 = vld [vmem:[#allocation5 + $0x140] ss:$8 sps:$4 sm:$0xff]   ;;  %v245_v15 = vpack.c.bf16 %v161_v7, %v157_v6 }
  0x41   :  { %v93_v8 = vld [vmem:[#allocation2 + $0x80] sm:$0xff]  ;;  %v166_v11 = vld [vmem:[#allocation2 + $0x2c8] sm:$0xff] }
  0x42   :  { %v97_v9 = vld [vmem:[#allocation2 + $0xa0] sm:$0xff]  ;;  %v170_v12 = vld [vmem:[#allocation2 + $0x2e8] sm:$0xff] }
  0x43   :  { %5272 = vmatpush1.bf16.msra.mxu1 %v5314_v16  ;;  %678 = vmatpush1.bf16.msra.mxu0 %v5314_v16  ;;  %v102_v13 = vld [vmem:[#allocation2 + $0xc8] sm:$0xff]  ;;  %v5354_v16 = vld [vmem:[#allocation5 + $0x130] ss:$8 sps:$4 sm:$0xff]   ;;  %v173_v38 = vld [vmem:[#allocation2 + $0x300] sm:$0xff] }
  0x44   :  { %5257 = vmatprep.subr.bf16.mxu1 %v5315_v17  ;;  %679 = vmatprep.subr.bf16.mxu0 %v5315_v17  ;;  %v106_v14 = vld [vmem:[#allocation2 + $0xe8] sm:$0xff]  ;;  %v177_v39 = vld [vmem:[#allocation2 + $0x320] sm:$0xff] }
  0x45   :  { %v5359_v17 = vld [vmem:[#allocation5 + $0x124] ss:$8 sps:$4 sm:$0xff]  }
  0x46   :  { %v114_v30 = vld [vmem:[#allocation2 + $0x128] sm:$0xff]  ;;  %v109_v43 = vld [vmem:[#allocation2 + $0x100] sm:$0xff] }
  0x47   :  { %5273 = vmatpush1.bf16.msra.mxu1 %v5317_v18  ;;  %680 = vmatpush1.bf16.msra.mxu0 %v5317_v18  ;;  %v213_v18 = vpack.c.bf16 %v97_v9, %v93_v8  ;;  %v5365_v33 = vld [vmem:[#allocation5 + $0x104] ss:$8 sps:$4 sm:$0xff]   ;;  %v5380_v8 = vld [vmem:[#allocation5 + $0x1b4] ss:$8 sps:$4 sm:$0xff]  }
  0x48   :  { %5258 = vmatprep.subr.bf16.mxu1 %v5318_v19  ;;  %681 = vmatprep.subr.bf16.mxu0 %v5318_v19  ;;  %v250_v19 = vpack.c.bf16 %v170_v12, %v166_v11  ;;  %v182_v41 = vld [vmem:[#allocation2 + $0x348] sm:$0xff]  ;;  %v113_v44 = vld [vmem:[#allocation2 + $0x120] sm:$0xff] }
  0x49   :  { %v118_v45 = vld [vmem:[#allocation2 + $0x148] sm:$0xff]  ;;  %v181_v54 = vld [vmem:[#allocation2 + $0x340] sm:$0xff] }
  0x4a   :  { %v122_v46 = vld [vmem:[#allocation2 + $0x168] sm:$0xff]  ;;  %v185_v55 = vld [vmem:[#allocation2 + $0x360] sm:$0xff] }
  0x4b   :  { %5274 = vmatpush2.bf16.msra.mxu1 %v5320_v20  ;;  %682 = vmatpush2.bf16.msra.mxu0 %v5320_v20  ;;  %v218_v20 = vpack.c.bf16 %v106_v14, %v102_v13  ;;  %v190_v57 = vld [vmem:[#allocation2 + $0x388] sm:$0xff]  ;;  %v117_v59 = vld [vmem:[#allocation2 + $0x140] sm:$0xff] }
  0x4c   :  { %5259 = vmatprep.subr.bf16.mxu1 %v5321_v21  ;;  %683 = vmatprep.subr.bf16.mxu0 %v5321_v21  ;;  %v5357_v21 = vld [vmem:[#allocation5 + $0x120] ss:$8 sps:$4 sm:$0xff]  }
  0x4d   :  { %v121_v60 = vld [vmem:[#allocation2 + $0x160] sm:$0xff]  ;;  %v126_v61 = vld [vmem:[#allocation2 + $0x188] sm:$0xff] }
  0x4e   :  { %v130_v62 = vld [vmem:[#allocation2 + $0x1a8] sm:$0xff]  ;;  %v189_v6 = vld [vmem:[#allocation2 + $0x380] sm:$0xff] }
  0x4f   :  { %5275 = vmatpush2.bf16.msra.mxu1 %v5323_v22  ;;  %684 = vmatpush2.bf16.msra.mxu0 %v5323_v22  ;;  %v165_v22 = vld [vmem:[#allocation2 + $0x2c0] sm:$0xff]  ;;  %v198_v9 = vld [vmem:[#allocation2 + $0x3c8] sm:$0xff] }
  0x50   :  { %5260 = vmatprep.subr.bf16.mxu1 %v5324_v23  ;;  %685 = vmatprep.subr.bf16.mxu0 %v5324_v23  ;;  %v169_v23 = vld [vmem:[#allocation2 + $0x2e0] sm:$0xff]  ;;  %v134_v13 = vld [vmem:[#allocation2 + $0x1c8] sm:$0xff] }
  0x51   :  { %v193_v7 = vld [vmem:[#allocation2 + $0x3a0] sm:$0xff]  ;;  %v138_v14 = vld [vmem:[#allocation2 + $0x1e8] sm:$0xff] }
  0x52   :  { %v125_v11 = vld [vmem:[#allocation2 + $0x180] sm:$0xff] }
  0x53   :  { %5276 = vmatpush2.bf16.msra.mxu1 %v5326_v24  ;;  %686 = vmatpush2.bf16.msra.mxu0 %v5326_v24  ;;  %v5362_v24 = vld [vmem:[#allocation5 + $0x114] ss:$8 sps:$4 sm:$0xff]   ;;  %v129_v12 = vld [vmem:[#allocation2 + $0x1a0] sm:$0xff] }
  0x54   :  { %5261 = vmatprep.subr.bf16.mxu1 %v5327_v25  ;;  %687 = vmatprep.subr.bf16.mxu0 %v5327_v25  ;;  %v174_v25 = vld [vmem:[#allocation2 + $0x308] sm:$0xff] }
  0x57   :  { %5277 = vmatpush2.bf16.msra.mxu1 %v5329_v26  ;;  %688 = vmatpush2.bf16.msra.mxu0 %v5329_v26  ;;  %v178_v26 = vld [vmem:[#allocation2 + $0x328] sm:$0xff] }
  0x58   :  { %5262 = vmatprep.subr.bf16.mxu1 %v5330_v27  ;;  %689 = vmatprep.subr.bf16.mxu0 %v5330_v27  ;;  %v101_v27 = vld [vmem:[#allocation2 + $0xc0] sm:$0xff] }
  0x5b   :  { %5278 = vmatpush2.bf16.msra.mxu1 %v5332_v28  ;;  %690 = vmatpush2.bf16.msra.mxu0 %v5332_v28  ;;  %v105_v28 = vld [vmem:[#allocation2 + $0xe0] sm:$0xff] }
  0x5c   :  { %5263 = vmatprep.subr.bf16.mxu1 %v5333_v29  ;;  %691 = vmatprep.subr.bf16.mxu0 %v5333_v29  ;;  %v110_v29 = vld [vmem:[#allocation2 + $0x108] sm:$0xff] }
  0x5f   :  { %5279 = vmatpush2.bf16.msra.mxu1 %v5335_v32  ;;  %692 = vmatpush2.bf16.msra.mxu0 %v5335_v32  ;;  %v249_v32 = vpack.c.bf16 %v169_v23, %v165_v22  ;;  %v197_v22 = vld [vmem:[#allocation2 + $0x3c0] sm:$0xff] }
  0x60   :  { %5264 = vmatprep.subr.bf16.mxu1 %v5336_v34  ;;  %693 = vmatprep.subr.bf16.mxu0 %v5336_v34  ;;  %v217_v34 = vpack.c.bf16 %v105_v28, %v101_v27  ;;  %v201_v23 = vld [vmem:[#allocation2 + $0x3e0] sm:$0xff] }
  0x61   :  { %v133_v27 = vld [vmem:[#allocation2 + $0x1c0] sm:$0xff] }
  0x62   :  { %v137_v28 = vld [vmem:[#allocation2 + $0x1e0] sm:$0xff] }
  0x63   :  { %5280 = vmatpush2.bf16.msra.mxu1 %v5338_v35  ;;  %694 = vmatpush2.bf16.msra.mxu0 %v5338_v35  ;;  %v254_v35 = vpack.c.bf16 %v178_v26, %v174_v25  ;;  %v80_v25 = vld [vmem:[#allocation2 + $0x18] sm:$0xff] }
  0x64   :  { %5265 = vmatprep.subr.bf16.mxu1 %v5339_v36  ;;  %695 = vmatprep.subr.bf16.mxu0 %v5339_v36  ;;  %v222_v36 = vpack.c.bf16 %v114_v30, %v110_v29  ;;  %v84_v26 = vld [vmem:[#allocation2 + $0x38] sm:$0xff]  ;;  %v265_v30 = vpack.c.bf16 %v201_v23, %v197_v22  ;;  %v135_v23 = vld [vmem:[#allocation2 + $0x1d0] sm:$0xff] }
  0x65   :  { %v5384_v29 = vld [vmem:[#allocation5 + $0x190] ss:$8 sps:$4 sm:$0xff]  }
  0x66   :  { %v5399_v22 = vld [vmem:[%s7406_s3 + $0x18] sm:$0xff]  }
  0x67   :  { %5281 = vmatpush2.bf16.msra.mxu1 %v5341_v37  ;;  %696 = vmatpush2.bf16.msra.mxu0 %v5341_v37  ;;  %v5363_v37 = vld [vmem:[#allocation5 + $0x100] ss:$8 sps:$4 sm:$0xff]  }
  0x68   :  { %858 = vmatprep.subr.bf16.mxu1 %v5344_v42  ;;  %v186_v42 = vld [vmem:[#allocation2 + $0x368] sm:$0xff] }
  0x6a   :  { %778 = vmatmul.mubr.bf16.vlgmr.msra.gmra.mxu1 %v237_v47  ;;  %698 = vmatmul.mubr.bf16.vlgmr.msra.gmra.mxu0 %v205_v48  ;;  %v5366_v47 = vld [vmem:[#allocation5 + $0x1f0] ss:$8 sps:$4 sm:$0xff]   ;;  %v253_v48 = vpack.c.bf16 %v177_v39, %v173_v38 }
  0x6b   :  { %859 = vmatpush1.bf16.msra.mxu1 %v5342_v49  ;;  %787 = vmatprep.mubr.bf16.mxu1 %v242_v50  ;;  %v5371_v49 = vld [vmem:[#allocation5 + $0x1e4] ss:$8 sps:$4 sm:$0xff]   ;;  %v221_v50 = vpack.c.bf16 %v113_v44, %v109_v43  ;;  %v92_v38 = vld [vmem:[#allocation2 + $0x78] sm:$0xff] }
  0x6c   :  { %860 = vmatprep.subr.bf16.mxu1 %v5347_v51  ;;  %707 = vmatprep.mubr.bf16.mxu0 %v210_v52  ;;  %v258_v51 = vpack.c.bf16 %v186_v42, %v182_v41  ;;  %v226_v52 = vpack.c.bf16 %v122_v46, %v118_v45  ;;  %v87_v41 = vld [vmem:[#allocation2 + $0x50] sm:$0xff]  ;;  %v96_v43 = vld [vmem:[#allocation2 + $0x98] sm:$0xff] }
  0x6d   :  { %v91_v42 = vld [vmem:[#allocation2 + $0x70] sm:$0xff]  ;;  %v100_v44 = vld [vmem:[#allocation2 + $0xb8] sm:$0xff] }
  0x6e   :  { %v211_v45 = vpack.c.bf16 %v91_v42, %v87_v41  ;;  %v216_v46 = vpack.c.bf16 %v100_v44, %v96_v43  ;;  %v160_v41 = vld [vmem:[#allocation2 + $0x298] sm:$0xff] }
  0x6f   :  { %861 = vmatpush1.bf16.msra.mxu1 %v5345_v53  ;;  %v5369_v53 = vld [vmem:[#allocation5 + $0x1e0] ss:$8 sps:$4 sm:$0xff]   ;;  %v164_v42 = vld [vmem:[#allocation2 + $0x2b8] sm:$0xff] }
  0x70   :  { %862 = vmatprep.subr.bf16.mxu1 %v5350_v58  ;;  %v194_v58 = vld [vmem:[#allocation2 + $0x3a8] sm:$0xff]  ;;  %v248_v44 = vpack.c.bf16 %v164_v42, %v160_v41 }
  0x72   :  { %788 = vmatmul.mubr.bf16.gmra.mxu1 %v241_v63  ;;  %708 = vmatmul.mubr.bf16.gmra.mxu0 %v209_v0  ;;  %v5372_v63 = vld [vmem:[#allocation5 + $0x1d0] ss:$8 sps:$4 sm:$0xff]   ;;  %v257_v0 = vpack.c.bf16 %v185_v55, %v181_v54 }
  0x73   :  { %863 = vmatpush1.bf16.msra.mxu1 %v5348_v1  ;;  %797 = vmatprep.mubr.bf16.mxu1 %v246_v2  ;;  %v5377_v1 = vld [vmem:[#allocation5 + $0x1c4] ss:$8 sps:$4 sm:$0xff]   ;;  %v225_v2 = vpack.c.bf16 %v121_v60, %v117_v59  ;;  %v5391_v54 = vld [vmem:[%s7406_s3 + $0x38] sm:$0xff]   ;;  %v103_v55 = vld [vmem:[#allocation2 + $0xd0] sm:$0xff] }
  0x74   :  { %864 = vmatprep.subr.bf16.mxu1 %v5353_v3  ;;  %717 = vmatprep.mubr.bf16.mxu0 %v214_v4  ;;  %v262_v3 = vpack.c.bf16 %v194_v58, %v190_v57  ;;  %v230_v4 = vpack.c.bf16 %v130_v62, %v126_v61  ;;  %v112_v57 = vld [vmem:[#allocation2 + $0x118] sm:$0xff]  ;;  %v5392_v61 = vld [vmem:[%s7406_s3 + $0x70] sm:$0xff]  }
  0x75   :  { %v116_v58 = vld [vmem:[#allocation2 + $0x138] sm:$0xff]  ;;  %v5393_v62 = vld [vmem:[%s7406_s3 + $0x30] sm:$0xff]  }
  0x76   :  { %v224_v60 = vpack.c.bf16 %v116_v58, %v112_v57 }
  0x77   :  { %865 = vmatpush1.bf16.msra.mxu1 %v5351_v5  ;;  %v5375_v5 = vld [vmem:[#allocation5 + $0x1c0] ss:$8 sps:$4 sm:$0xff]  }
  0x78   :  { %866 = vmatprep.subr.bf16.mxu1 %v5356_v10  ;;  %v202_v10 = vld [vmem:[#allocation2 + $0x3e8] sm:$0xff] }
  0x7a   :  { %798 = vmatmul.mubr.bf16.gmra.mxu1 %v245_v15  ;;  %718 = vmatmul.mubr.bf16.gmra.mxu0 %v213_v18  ;;  %v5378_v15 = vld [vmem:[#allocation5 + $0x1b0] ss:$8 sps:$4 sm:$0xff]   ;;  %v229_v18 = vpack.c.bf16 %v129_v12, %v125_v11 }
  0x7b   :  { %867 = vmatpush1.bf16.msra.mxu1 %v5354_v16  ;;  %807 = vmatprep.mubr.bf16.mxu1 %v250_v19  ;;  %v261_v16 = vpack.c.bf16 %v193_v7, %v189_v6  ;;  %v266_v19 = vpack.c.bf16 %v202_v10, %v198_v9  ;;  %v5395_v6 = vld [vmem:[%s7406_s3 + $0x28] sm:$0xff]   ;;  %v119_v7 = vld [vmem:[#allocation2 + $0x150] sm:$0xff]  ;;  %v128_v9 = vld [vmem:[#allocation2 + $0x198] sm:$0xff] }
  0x7c   :  { %868 = vmatprep.subr.bf16.mxu1 %v5359_v17  ;;  %727 = vmatprep.mubr.bf16.mxu0 %v218_v20  ;;  %v5383_v17 = vld [vmem:[#allocation5 + $0x1a4] ss:$8 sps:$4 sm:$0xff]   ;;  %v234_v20 = vpack.c.bf16 %v138_v14, %v134_v13  ;;  %v132_v10 = vld [vmem:[#allocation2 + $0x1b8] sm:$0xff] }
  0x7d   :  { %v232_v12 = vpack.c.bf16 %v132_v10, %v128_v9  ;;  %v5396_v13 = vld [vmem:[%s7406_s3 + $0x60] sm:$0xff]   ;;  %v200_v9 = vld [vmem:[#allocation2 + $0x3d8] sm:$0xff] }
  0x7e   :  { %v5397_v14 = vld [vmem:[%s7406_s3 + $0x20] sm:$0xff]   ;;  %v204_v10 = vld [vmem:[#allocation2 + $0x3f8] sm:$0xff] }
  0x7f   :  { %869 = vmatpush1.bf16.msra.mxu1 %v5357_v21  ;;  %v5381_v21 = vld [vmem:[#allocation5 + $0x1a0] ss:$8 sps:$4 sm:$0xff]  }
  0x80   :  { %870 = vmatprep.subr.bf16.mxu1 %v5362_v24  ;;  %v5386_v24 = vld [vmem:[#allocation5 + $0x194] ss:$8 sps:$4 sm:$0xff]  }
  0x82   :  { %808 = vmatmul.mubr.bf16.gmra.mxu1 %v249_v32  ;;  %728 = vmatmul.mubr.bf16.gmra.mxu0 %v217_v34  ;;  %v233_v32 = vpack.c.bf16 %v137_v28, %v133_v27  ;;  %v5387_v34 = vld [vmem:[#allocation5 + $0x180] ss:$8 sps:$4 sm:$0xff]  }
  0x83   :  { %871 = vmatpush1.bf16.msra.mxu1 %v5360_v31  ;;  %817 = vmatprep.mubr.bf16.mxu1 %v254_v35  ;;  %v5389_v31 = vld [vmem:[#allocation5 + $0x184] ss:$8 sps:$4 sm:$0xff]   ;;  %v79_v35 = vld [vmem:[#allocation2 + $0x10] sm:$0xff] }
  0x84   :  { %872 = vmatprep.subr.bf16.mxu1 %v5365_v33  ;;  %737 = vmatprep.mubr.bf16.mxu0 %v222_v36  ;;  %v208_v33 = vpack.c.bf16 %v84_v26, %v80_v25  ;;  %v83_v36 = vld [vmem:[#allocation2 + $0x30] sm:$0xff]  ;;  %v144_v25 = vld [vmem:[#allocation2 + $0x218] sm:$0xff] }
  0x85   :  { %v207_v39 = vpack.c.bf16 %v83_v36, %v79_v35  ;;  %v148_v26 = vld [vmem:[#allocation2 + $0x238] sm:$0xff] }
  0x86   :  { %v240_v28 = vpack.c.bf16 %v148_v26, %v144_v25 }
  0x87   :  { %873 = vmatpush1.bf16.msra.mxu1 %v5363_v37  ;;  %v88_v37 = vld [vmem:[#allocation2 + $0x58] sm:$0xff] }
  0x88   :  { %874 = vmatprep.subr.bf16.mxu1 %v5368_v40  ;;  %v212_v40 = vpack.c.bf16 %v92_v38, %v88_v37  ;;  %v5402_v37 = vld [vmem:[%s7406_s3 + $0x48] sm:$0xff]  }
  0x89   :  { %v5403_v38 = vld [vmem:[%s7406_s3 + $0x8] sm:$0xff]  }
  0x8a   :  { %818 = vmatmul.mubr.bf16.gmra.mxu1 %v253_v48  ;;  %738 = vmatmul.mubr.bf16.gmra.mxu0 %v221_v50  ;;  %v99_v48 = vld [vmem:[#allocation2 + $0xb0] sm:$0xff]  ;;  %v108_v50 = vld [vmem:[#allocation2 + $0xf8] sm:$0xff] }
  0x8b   :  { %875 = vmatpush2.bf16.msra.mxu1 %v5366_v47  ;;  %827 = vmatprep.mubr.bf16.mxu1 %v258_v51  ;;  %v95_v47 = vld [vmem:[#allocation2 + $0x90] sm:$0xff] }
  0x8c   :  { %876 = vmatprep.subr.bf16.mxu1 %v5371_v49  ;;  %747 = vmatprep.mubr.bf16.mxu0 %v226_v52  ;;  %v104_v49 = vld [vmem:[#allocation2 + $0xd8] sm:$0xff]  ;;  %v215_v51 = vpack.c.bf16 %v99_v48, %v95_v47  ;;  %v163_v47 = vld [vmem:[#allocation2 + $0x2b0] sm:$0xff]  ;;  %v5405_v48 = vld [vmem:[%s7406_s3] sm:$0xff]  }
  0x8d   :  { %v220_v52 = vpack.c.bf16 %v108_v50, %v104_v49  ;;  %v168_v49 = vld [vmem:[#allocation2 + $0x2d8] sm:$0xff] }
  0x8e   :  { %v172_v50 = vld [vmem:[#allocation2 + $0x2f8] sm:$0xff] }
  0x8f   :  { %877 = vmatpush2.bf16.msra.mxu1 %v5369_v53  ;;  %v5390_v53 = vld [vmem:[%s7406_s3 + $0x78] sm:$0xff]  }
  0x90   :  { %878 = vmatprep.subr.bf16.mxu1 %v5374_v56  ;;  %v107_v56 = vld [vmem:[#allocation2 + $0xf0] sm:$0xff]  ;;  %5006 = vmatprep.subr.bf16.mxu0 %v5390_v53 }
  0x91   :  { %5007 = vmatpush3.bf16.msra.mxu0 %v5391_v54  ;;  %v219_v59 = vpack.c.bf16 %v107_v56, %v103_v55  ;;  %v167_v53 = vld [vmem:[#allocation2 + $0x2d0] sm:$0xff]  ;;  %v176_v55 = vld [vmem:[#allocation2 + $0x318] sm:$0xff] }
  0x92   :  { %828 = vmatmul.mubr.bf16.gmra.mxu1 %v257_v0  ;;  %748 = vmatmul.mubr.bf16.gmra.mxu0 %v225_v2  ;;  %v115_v0 = vld [vmem:[#allocation2 + $0x130] sm:$0xff]  ;;  %v124_v2 = vld [vmem:[#allocation2 + $0x178] sm:$0xff] }
  0x93   :  { %879 = vmatpush2.bf16.msra.mxu1 %v5372_v63  ;;  %837 = vmatprep.mubr.bf16.mxu1 %v262_v3  ;;  %v111_v63 = vld [vmem:[#allocation2 + $0x110] sm:$0xff]  ;;  %v180_v56 = vld [vmem:[#allocation2 + $0x338] sm:$0xff] }
  0x94   :  { %880 = vmatprep.subr.bf16.mxu1 %v5377_v1  ;;  %757 = vmatprep.mubr.bf16.mxu0 %v230_v4  ;;  %v120_v1 = vld [vmem:[#allocation2 + $0x158] sm:$0xff]  ;;  %v223_v3 = vpack.c.bf16 %v115_v0, %v111_v63  ;;  %v171_v54 = vld [vmem:[#allocation2 + $0x2f0] sm:$0xff]  ;;  %v256_v58 = vpack.c.bf16 %v180_v56, %v176_v55 }
  0x95   :  { %5008 = vmatprep.subr.bf16.mxu0 %v5392_v61  ;;  %v228_v4 = vpack.c.bf16 %v124_v2, %v120_v1  ;;  %v251_v57 = vpack.c.bf16 %v171_v54, %v167_v53  ;;  %v184_v61 = vld [vmem:[#allocation2 + $0x358] sm:$0xff]  ;;  %v183_v1 = vld [vmem:[#allocation2 + $0x350] sm:$0xff] }
  0x96   :  { %5009 = vmatpush3.bf16.msra.mxu0 %v5393_v62  ;;  %v188_v62 = vld [vmem:[#allocation2 + $0x378] sm:$0xff]  ;;  %v187_v2 = vld [vmem:[#allocation2 + $0x370] sm:$0xff] }
  0x97   :  { %881 = vmatpush2.bf16.msra.mxu1 %v5375_v5  ;;  %v5394_v5 = vld [vmem:[%s7406_s3 + $0x68] sm:$0xff]   ;;  %v260_v0 = vpack.c.bf16 %v188_v62, %v184_v61 }
  0x98   :  { %882 = vmatprep.subr.bf16.mxu1 %v5380_v8  ;;  %v123_v8 = vld [vmem:[#allocation2 + $0x170] sm:$0xff]  ;;  %5010 = vmatprep.subr.bf16.mxu0 %v5394_v5  ;;  %v259_v5 = vpack.c.bf16 %v187_v2, %v183_v1 }
  0x99   :  { %v227_v11 = vpack.c.bf16 %v123_v8, %v119_v7  ;;  %v191_v7 = vld [vmem:[#allocation2 + $0x390] sm:$0xff] }
  0x9a   :  { %838 = vmatmul.mubr.bf16.gmra.mxu1 %v261_v16  ;;  %758 = vmatmul.mubr.bf16.gmra.mxu0 %v229_v18  ;;  %v131_v16 = vld [vmem:[#allocation2 + $0x1b0] sm:$0xff]  ;;  %v140_v18 = vld [vmem:[#allocation2 + $0x1f8] sm:$0xff] }
  0x9b   :  { %883 = vmatpush2.bf16.msra.mxu1 %v5378_v15  ;;  %847 = vmatprep.mubr.bf16.mxu1 %v266_v19  ;;  %v127_v15 = vld [vmem:[#allocation2 + $0x190] sm:$0xff] }
  0x9c   :  { %884 = vmatprep.subr.bf16.mxu1 %v5383_v17  ;;  %767 = vmatprep.mubr.bf16.mxu0 %v234_v20  ;;  %v136_v17 = vld [vmem:[#allocation2 + $0x1d8] sm:$0xff]  ;;  %v231_v19 = vpack.c.bf16 %v131_v16, %v127_v15  ;;  %v195_v8 = vld [vmem:[#allocation2 + $0x3b0] sm:$0xff]  ;;  %v335_v15 = vlaneseq }
  0x9d   :  { %5011 = vmatpush3.bf16.msra.mxu0 %v5395_v6  ;;  %v236_v20 = vpack.c.bf16 %v140_v18, %v136_v17 }
  0x9e   :  { %5012 = vmatprep.subr.bf16.mxu0 %v5396_v13  ;;  %v199_v13 = vld [vmem:[#allocation2 + $0x3d0] sm:$0xff]  ;;  %v6327_v17 = vshrl.u32 %v335_v15, 7 }
  0x9f   :  { %885 = vmatpush2.bf16.msra.mxu1 %v5381_v21  ;;  %v5398_v21 = vld [vmem:[%s7406_s3 + $0x58] sm:$0xff]  }
  0xa0   :  { %886 = vmatprep.subr.bf16.mxu1 %v5386_v24  ;;  %v139_v24 = vld [vmem:[#allocation2 + $0x1f0] sm:$0xff]  ;;  %7420 = vst [vmem:[#allocation12_spill] sm:$0xff] %v6327_v17  ;;  %v6330_v18 = vsub.s32 0, %v6327_v17 }
  0xa1   :  { %5013 = vmatpush3.bf16.msra.mxu0 %v5397_v14  ;;  %v235_v27 = vpack.c.bf16 %v139_v24, %v135_v23  ;;  %v203_v14 = vld [vmem:[#allocation2 + $0x3f0] sm:$0xff] }
  0xa2   :  { %848 = vmatmul.mubr.bf16.gmra.mxu1 %v265_v30  ;;  %768 = vmatmul.mubr.bf16.gmra.mxu0 %v233_v32  ;;  %v5401_v30 = vld [vmem:[%s7406_s3 + $0x10] sm:$0xff]   ;;  %v267_v16 = vpack.c.bf16 %v203_v14, %v199_v13  ;;  %7421 = vst [vmem:[#allocation13_spill] sm:$0xff] %v6330_v18 }
  0xa3   :  { %887 = vmatpush2.bf16.msra.mxu1 %v5384_v29  ;;  %890 = vmatprep.mubr.bf16.mxu1 %v208_v33  ;;  %v5400_v29 = vld [vmem:[%s7406_s3 + $0x50] sm:$0xff]   ;;  %v152_v33 = vld [vmem:[#allocation2 + $0x258] sm:$0xff] }
  0xa4   :  { %888 = vmatprep.subr.bf16.mxu1 %v5389_v31  ;;  %5014 = vmatprep.subr.bf16.mxu0 %v5398_v21  ;;  %v143_v31 = vld [vmem:[#allocation2 + $0x210] sm:$0xff] }
  0xa5   :  { %5015 = vmatpush3.bf16.msra.mxu0 %v5399_v22  ;;  %v147_v32 = vld [vmem:[#allocation2 + $0x230] sm:$0xff] }
  0xa6   :  { %5016 = vmatprep.subr.bf16.mxu0 %v5400_v29  ;;  %v239_v35 = vpack.c.bf16 %v147_v32, %v143_v31 }
  0xa7   :  { %889 = vmatpush2.bf16.msra.mxu1 %v5387_v34  ;;  %v156_v34 = vld [vmem:[#allocation2 + $0x278] sm:$0xff] }
  0xa8   :  { %v244_v36 = vpack.c.bf16 %v156_v34, %v152_v33 }
  0xa9   :  { %5017 = vmatpush3.bf16.msra.mxu0 %v5401_v30 }
  0xaa   :  { %891 = vmatmul.mubr.bf16.vlgmr.msra.gmra.mxu1 %v207_v39  ;;  %v151_v39 = vld [vmem:[#allocation2 + $0x250] sm:$0xff]  ;;  %5018 = vmatprep.subr.bf16.mxu0 %v5402_v37 }
  0xab   :  { %900 = vmatprep.mubr.bf16.mxu1 %v212_v40  ;;  %v155_v40 = vld [vmem:[#allocation2 + $0x270] sm:$0xff] }
  0xac   :  { %v243_v43 = vpack.c.bf16 %v155_v40, %v151_v39 }
  0xad   :  { %5019 = vmatpush3.bf16.msra.mxu0 %v5403_v38 }
  0xb2   :  { %901 = vmatmul.mubr.bf16.gmra.mxu1 %v211_v45  ;;  %v5404_v45 = vld [vmem:[%s7406_s3 + $0x40] sm:$0xff]  }
  0xb3   :  { %910 = vmatprep.mubr.bf16.mxu1 %v216_v46  ;;  %v159_v46 = vld [vmem:[#allocation2 + $0x290] sm:$0xff]  ;;  %5020 = vmatprep.subr.bf16.mxu0 %v5404_v45 }
  0xb4   :  { %5021 = vmatpush3.bf16.msra.mxu0 %v5405_v48 }
  0xba   :  { %911 = vmatmul.mubr.bf16.gmra.mxu1 %v215_v51  ;;  %v247_v51 = vpack.c.bf16 %v163_v47, %v159_v46 }
  0xbb   :  { %920 = vmatprep.mubr.bf16.mxu1 %v220_v52  ;;  %v252_v52 = vpack.c.bf16 %v172_v50, %v168_v49 }
  0xc2   :  { %921 = vmatmul.mubr.bf16.gmra.mxu1 %v219_v59  ;;  %v175_v59 = vld [vmem:[#allocation2 + $0x310] sm:$0xff] }
  0xc3   :  { %930 = vmatprep.mubr.bf16.mxu1 %v224_v60  ;;  %v179_v60 = vld [vmem:[#allocation2 + $0x330] sm:$0xff] }
  0xc4   :  { %v255_v63 = vpack.c.bf16 %v179_v60, %v175_v59 }
  0xca   :  { %931 = vmatmul.mubr.bf16.gmra.mxu1 %v223_v3  ;;  %v192_v3 = vld [vmem:[#allocation2 + $0x398] sm:$0xff] }
  0xcb   :  { %940 = vmatprep.mubr.bf16.mxu1 %v228_v4  ;;  %v196_v4 = vld [vmem:[#allocation2 + $0x3b8] sm:$0xff] }
  0xcc   :  { %v264_v6 = vpack.c.bf16 %v196_v4, %v192_v3 }
  0xd2   :  { %941 = vmatmul.mubr.bf16.gmra.mxu1 %v227_v11  ;;  %v263_v11 = vpack.c.bf16 %v195_v8, %v191_v7 }
  0xd3   :  { %950 = vmatprep.mubr.bf16.mxu1 %v232_v12  ;;  %v268_v12 = vpack.c.bf16 %v204_v10, %v200_v9  ;;  %v5406_v10 = vld [vmem:[%s7407_s4 + $0x38] sm:$0xff]  }
  0xd4   :  { %5162 = vmatprep.subr.bf16.mxu1 %v5406_v10 }
  0xd5   :  { %5163 = vmatpush3.bf16.msra.mxu1 %v5406_v10 }
  0xda   :  { %951 = vmatmul.mubr.bf16.gmra.mxu1 %v231_v19  ;;  %v333_v19 = vld [vmem:[%s7411_s8] sm:$0x3] }
  0xdb   :  { %960 = vmatprep.mubr.bf16.mxu1 %v236_v20  ;;  %v6336_v20 = vsub.s32 1, %v6327_v17  ;;  %v6339_v21 = vrot.slane %v333_v19, %v6330_v18 }
  0xdd   :  { %7422 = vst [vmem:[#allocation14_spill] sm:$0xff] %v6336_v20  ;;  %v6342_v22 = vrot.slane %v333_v19, %v6336_v20 }
  0xe2   :  { %961 = vmatmul.mubr.bf16.gmra.mxu1 %v235_v27 }
  0xe3   :  { %970 = vmatprep.mubr.bf16.mxu1 %v240_v28 }
  0xea   :  { %971 = vmatmul.mubr.bf16.gmra.mxu1 %v239_v35 }
  0xeb   :  { %980 = vmatprep.mubr.bf16.mxu1 %v244_v36 }
  0xf2   :  { %981 = vmatmul.mubr.bf16.gmra.mxu1 %v243_v43 }
  0xf3   :  { %990 = vmatprep.mubr.bf16.mxu1 %v248_v44 }
  0xfa   :  { %991 = vmatmul.mubr.bf16.gmra.mxu1 %v247_v51 }
  0xfb   :  { %1000 = vmatprep.mubr.bf16.mxu1 %v252_v52 }
 0x102   :  { %1001 = vmatmul.mubr.bf16.gmra.mxu1 %v251_v57 }
 0x103   :  { %1010 = vmatprep.mubr.bf16.mxu1 %v256_v58 }
 0x10a   :  { %1011 = vmatmul.mubr.bf16.gmra.mxu1 %v255_v63 }
 0x10b   :  { %1020 = vmatprep.mubr.bf16.mxu1 %v260_v0 }
 0x112   :  { %1021 = vmatmul.mubr.bf16.gmra.mxu1 %v259_v5 }
 0x113   :  { %1030 = vmatprep.mubr.bf16.mxu1 %v264_v6 }
 0x11a   :  { %1031 = vmatmul.mubr.bf16.gmra.mxu1 %v263_v11 }
 0x11b   :  { %1040 = vmatprep.mubr.bf16.mxu1 %v268_v12 }
 0x122   :  { %1041 = vmatmul.mubr.bf16.gmra.mxu1 %v267_v16 }
 0x12a   :  { %v779_v23 = vpop.f32.mrf.mxu1  ;;  %v6344_v24 = vpop.f32.mrf.mxu0 }
 0x12b   :  { %v6347_v25 = vadd.f32 %v779_v23, %v6339_v21  ;;  %v700_v10 = vadd.f32 %v6344_v24, %v6339_v21  ;;  %v5408_v24 = vld [vmem:[%s7407_s4 + $0x28] sm:$0xff]  }
 0x12c   :  { %v781_v26 = vpop.f32.mrf.mxu1  ;;  %v6349_v27 = vpop.f32.mrf.mxu0 }
 0x12d   :  { %v6352_v28 = vadd.f32 %v781_v26, %v6342_v22 }
 0x12e   :  { %v783_v29 = vpop.f32.mrf.mxu1  ;;  %v6359_v32 = vpop.f32.mrf.mxu0 }
 0x12f   :  { %v6355_v30 = vadd.f32 %v783_v29, %v6339_v21 }
 0x130   :  { %v6357_v31 = vpop.f32.mrf.mxu1  ;;  %v6364_v36 = vpop.f32.mrf.mxu0 }
 0x132   :  { %v789_v33 = vpop.f32.mrf.mxu1  ;;  %v6374_v41 = vpop.f32.mrf.mxu0 }
 0x133   :  { %v6362_v34 = vadd.f32 %v789_v33, %v6339_v21 }
 0x134   :  { %v791_v35 = vpop.f32.mrf.mxu1  ;;  %v6379_v45 = vpop.f32.mrf.mxu0 }
 0x135   :  { %v6367_v37 = vadd.f32 %v791_v35, %v6342_v22 }
 0x136   :  { %v793_v38 = vpop.f32.mrf.mxu1  ;;  %v6389_v50 = vpop.f32.mrf.mxu0 }
 0x137   :  { %v6370_v39 = vadd.f32 %v793_v38, %v6339_v21 }
 0x138   :  { %v6372_v40 = vpop.f32.mrf.mxu1  ;;  %v6394_v54 = vpop.f32.mrf.mxu0 }
 0x13a   :  { %v799_v42 = vpop.f32.mrf.mxu1  ;;  %v6404_v59 = vpop.f32.mrf.mxu0 }
 0x13b   :  { %v6377_v43 = vadd.f32 %v799_v42, %v6339_v21 }
 0x13c   :  { %v801_v44 = vpop.f32.mrf.mxu1  ;;  %v6409_v63 = vpop.f32.mrf.mxu0 }
 0x13d   :  { %v6382_v46 = vadd.f32 %v801_v44, %v6342_v22 }
 0x13e   :  { %v803_v47 = vpop.f32.mrf.mxu1  ;;  %v6419_v4 = vpop.f32.mrf.mxu0 }
 0x13f   :  { %v6385_v48 = vadd.f32 %v803_v47, %v6339_v21 }
 0x140   :  { %v6387_v49 = vpop.f32.mrf.mxu1  ;;  %v6424_v8 = vpop.f32.mrf.mxu0 }
 0x142   :  { %v809_v51 = vpop.f32.mrf.mxu1  ;;  %v6437_v14 = vpop.f32.mrf.mxu0 }
 0x143   :  { %v6392_v52 = vadd.f32 %v809_v51, %v6339_v21 }
 0x144   :  { %v811_v53 = vpop.f32.mrf.mxu1  ;;  %v6442_v23 = vpop.f32.mrf.mxu0 }
 0x145   :  { %v6397_v55 = vadd.f32 %v811_v53, %v6342_v22 }
 0x146   :  { %v813_v56 = vpop.f32.mrf.mxu1  ;;  %v6452_v38 = vpop.f32.mrf.mxu0 }
 0x147   :  { %v6400_v57 = vadd.f32 %v813_v56, %v6339_v21  ;;  %v5407_v56 = vld [vmem:[%s7407_s4 + $0x30] sm:$0xff]  }
 0x148   :  { %v6402_v58 = vpop.f32.mrf.mxu1  ;;  %v6457_v51 = vpop.f32.mrf.mxu0  ;;  %5164 = vmatprep.subr.bf16.mxu1 %v5407_v56 }
 0x149   :  { %5165 = vmatpush3.bf16.msra.mxu1 %v5407_v56 }
 0x14a   :  { %v819_v60 = vpop.f32.mrf.mxu1  ;;  %5166 = vmatprep.subr.bf16.mxu1 %v5408_v24 }
 0x14b   :  { %v6407_v61 = vadd.f32 %v819_v60, %v6339_v21 }
 0x14c   :  { %v821_v62 = vpop.f32.mrf.mxu1 }
 0x14d   :  { %v6412_v0 = vadd.f32 %v821_v62, %v6342_v22  ;;  %5167 = vmatpush3.bf16.msra.mxu1 %v5408_v24 }
 0x14e   :  { %v823_v1 = vpop.f32.mrf.mxu1 }
 0x14f   :  { %v6415_v2 = vadd.f32 %v823_v1, %v6339_v21 }
 0x150   :  { %v6417_v3 = vpop.f32.mrf.mxu1 }
 0x152   :  { %v829_v5 = vpop.f32.mrf.mxu1 }
 0x153   :  { %v6422_v6 = vadd.f32 %v829_v5, %v6339_v21  ;;  %v6470_v5 = vpop.f32.mrf.mxu0 }
 0x154   :  { %v831_v7 = vpop.f32.mrf.mxu1 }
 0x155   :  { %v6427_v9 = vadd.f32 %v831_v7, %v6342_v22 }
 0x156   :  { %v833_v11 = vpop.f32.mrf.mxu1 }
 0x157   :  { %v6433_v12 = vadd.f32 %v833_v11, %v6339_v21 }
 0x158   :  { %v6435_v13 = vpop.f32.mrf.mxu1 }
 0x15a   :  { %v839_v15 = vpop.f32.mrf.mxu1 }
 0x15b   :  { %v6440_v16 = vadd.f32 %v839_v15, %v6339_v21  ;;  %v6474_v15 = vpop.f32.mrf.mxu0 }
 0x15c   :  { %v841_v19 = vpop.f32.mrf.mxu1 }
 0x15d   :  { %v6445_v26 = vadd.f32 %v841_v19, %v6342_v22  ;;  %v702_v19 = vadd.f32 %v6349_v27, %v6342_v22  ;;  %v6482_v20 = vpop.f32.mrf.mxu0  ;;  %v5409_v27 = vld [vmem:[%s7407_s4 + $0x20] sm:$0xff]  }
 0x15e   :  { %v843_v29 = vpop.f32.mrf.mxu1  ;;  %5168 = vmatprep.subr.bf16.mxu1 %v5409_v27 }
 0x15f   :  { %7423 = vst [vmem:[#allocation15_spill] sm:$0xff] %v6445_v26  ;;  %v6448_v33 = vadd.f32 %v843_v29, %v6339_v21  ;;  %v704_v29 = vadd.f32 %v6359_v32, %v6339_v21  ;;  %5169 = vmatpush3.bf16.msra.mxu1 %v5409_v27  ;;  %v720_v27 = vadd.f32 %v6404_v59, %v6339_v21 }
 0x160   :  { %v6450_v35 = vpop.f32.mrf.mxu1  ;;  %v726_v59 = vadd.f32 %v6424_v8, %v6342_v22 }
 0x161   :  { %7424 = vst [vmem:[#allocation16_spill] sm:$0xff] %v6448_v33 }
 0x162   :  { %v849_v42 = vpop.f32.mrf.mxu1 }
 0x163   :  { %v6455_v44 = vadd.f32 %v849_v42, %v6339_v21 }
 0x164   :  { %v851_v47 = vpop.f32.mrf.mxu1 }
 0x165   :  { %7425 = vst [vmem:[#allocation17_spill] sm:$0xff] %v6455_v44  ;;  %v6460_v53 = vadd.f32 %v851_v47, %v6342_v22  ;;  %v706_v47 = vadd.f32 %v6364_v36, %v6342_v22 }
 0x166   :  { %v853_v60 = vpop.f32.mrf.mxu1 }
 0x167   :  { %7426 = vst [vmem:[#allocation18_spill] sm:$0xff] %v6460_v53  ;;  %v6466_v62 = vadd.f32 %v853_v60, %v6339_v21 }
 0x168   :  { %v6468_v1 = vpop.f32.mrf.mxu1 }
 0x169   :  { %7427 = vst [vmem:[#allocation19_spill] sm:$0xff] %v6466_v62  ;;  %7428 = vst [vmem:[#allocation20_spill] sm:$0xff] %v6468_v1 }
 0x16a   :  { %v892_v7 = vpop.f32.mrf.mxu1 }
 0x16b   :  { %v893_v56 = vadd.f32 %v892_v7, %v700_v10  ;;  %v710_v7 = vadd.f32 %v6374_v41, %v6339_v21  ;;  %v716_v41 = vadd.f32 %v6394_v54, %v6342_v22 }
 0x16c   :  { %v894_v11 = vpop.f32.mrf.mxu1 }
 0x16d   :  { %v895_v60 = vadd.f32 %v894_v11, %v702_v19  ;;  %v1051_v11 = vmax.f32 %v893_v56, 0.0  ;;  %v6492_v19 = vpop.f32.mrf.mxu0 }
 0x16e   :  { %v896_v42 = vpop.f32.mrf.mxu1 }
 0x16f   :  { %v897_v17 = vadd.f32 %v896_v42, %v704_v29  ;;  %v1052_v1 = vmax.f32 %v895_v60, 0.0  ;;  %v5410_v29 = vld [vmem:[%s7407_s4 + $0x18] sm:$0xff]   ;;  %v6503_v33 = vpop.f32.mrf.mxu0 }
 0x170   :  { %v898_v18 = vpop.f32.mrf.mxu1  ;;  %5170 = vmatprep.subr.bf16.mxu1 %v5410_v29 }
 0x171   :  { %v899_v62 = vadd.f32 %v898_v18, %v706_v47  ;;  %v1053_v32 = vmax.f32 %v897_v17, 0.0  ;;  %v712_v17 = vadd.f32 %v6379_v45, %v6342_v22  ;;  %v714_v18 = vadd.f32 %v6389_v50, %v6339_v21  ;;  %v5411_v45 = vld [vmem:[%s7407_s4 + $0x10] sm:$0xff]   ;;  %5171 = vmatpush3.bf16.msra.mxu1 %v5410_v29 }
 0x172   :  { %v902_v53 = vpop.f32.mrf.mxu1  ;;  %5172 = vmatprep.subr.bf16.mxu1 %v5411_v45 }
 0x173   :  { %v1054_v36 = vmax.f32 %v899_v62, 0.0  ;;  %v1115_v42 = vpack.c.bf16 %v1053_v32, %v1051_v11  ;;  %v903_v24 = vadd.f32 %v902_v53, %v710_v7  ;;  %v6510_v7 = vpop.f32.mrf.mxu0 }
 0x174   :  { %v904_v10 = vpop.f32.mrf.mxu1 }
 0x175   :  { %v1116_v62 = vpack.c.bf16 %v1054_v36, %v1052_v1  ;;  %v905_v60 = vadd.f32 %v904_v10, %v712_v17  ;;  %v1055_v54 = vmax.f32 %v903_v24, 0.0  ;;  %v5412_v10 = vld [vmem:[%s7407_s4 + $0x8] sm:$0xff]   ;;  %v724_v17 = vadd.f32 %v6419_v4, %v6339_v21  ;;  %5173 = vmatpush3.bf16.msra.mxu1 %v5411_v45 }
 0x176   :  { %v906_v47 = vpop.f32.mrf.mxu1  ;;  %5174 = vmatprep.subr.bf16.mxu1 %v5412_v10  ;;  %v732_v45 = vadd.f32 %v6442_v23, %v6342_v22 }
 0x177   :  { %v907_v56 = vadd.f32 %v906_v47, %v714_v18  ;;  %1314 = vmatprep.mubr.bf16.mxu0 %v1116_v62  ;;  %v1056_v36 = vmax.f32 %v905_v60, 0.0 }
 0x178   :  { %v908_v44 = vpop.f32.mrf.mxu1  ;;  %1315 = vmatmul.mubr.bf16.vlgmr.msra.gmra.mxu0 %v1115_v42 }
 0x179   :  { %v909_v50 = vadd.f32 %v908_v44, %v716_v41  ;;  %v1057_v1 = vmax.f32 %v907_v56, 0.0  ;;  %v722_v44 = vadd.f32 %v6409_v63, %v6342_v22  ;;  %v753_v56 = vpop.f32.mrf.mxu0  ;;  %5175 = vmatpush3.bf16.msra.mxu1 %v5412_v10 }
 0x17a   :  { %v912_v32 = vpop.f32.mrf.mxu1 }
 0x17b   :  { %v1058_v11 = vmax.f32 %v909_v50, 0.0  ;;  %v1117_v29 = vpack.c.bf16 %v1057_v1, %v1055_v54  ;;  %v913_v41 = vadd.f32 %v912_v32, %v720_v27  ;;  %v734_v32 = vadd.f32 %v6452_v38, %v6339_v21 }
 0x17c   :  { %v914_v53 = vpop.f32.mrf.mxu1 }
 0x17d   :  { %v1118_v18 = vpack.c.bf16 %v1058_v11, %v1056_v36  ;;  %v915_v42 = vadd.f32 %v914_v53, %v722_v44  ;;  %v1059_v1 = vmax.f32 %v913_v41, 0.0  ;;  %v730_v36 = vadd.f32 %v6437_v14, %v6339_v21  ;;  %v755_v11 = vpop.f32.mrf.mxu0 }
 0x17e   :  { %v916_v62 = vpop.f32.mrf.mxu1  ;;  %v736_v44 = vadd.f32 %v6457_v51, %v6342_v22  ;;  %v742_v51 = vadd.f32 %v6474_v15, %v6342_v22 }
 0x17f   :  { %v917_v47 = vadd.f32 %v916_v62, %v724_v17  ;;  %1322 = vmatprep.mubr.bf16.mxu0 %v1118_v18  ;;  %v1060_v26 = vmax.f32 %v915_v42, 0.0  ;;  %v759_v14 = vpop.f32.mrf.mxu0 }
 0x180   :  { %v918_v60 = vpop.f32.mrf.mxu1  ;;  %1323 = vmatmul.mubr.bf16.gmra.mxu0 %v1117_v29 }
 0x181   :  { %v919_v24 = vadd.f32 %v918_v60, %v726_v59  ;;  %v1061_v63 = vmax.f32 %v917_v47, 0.0  ;;  %v761_v60 = vpop.f32.mrf.mxu0 }
 0x182   :  { %v922_v50 = vpop.f32.mrf.mxu1 }
 0x183   :  { %v1062_v4 = vmax.f32 %v919_v24, 0.0  ;;  %v1119_v27 = vpack.c.bf16 %v1061_v63, %v1059_v1  ;;  %v923_v18 = vadd.f32 %v922_v50, %v730_v36  ;;  %v744_v24 = vadd.f32 %v6482_v20, %v6339_v21 }
 0x184   :  { %v924_v8 = vpop.f32.mrf.mxu1  ;;  %v746_v1 = vadd.f32 %v6492_v19, %v6342_v22  ;;  %v750_v20 = vadd.f32 %v6503_v33, %v6339_v21  ;;  %v752_v19 = vadd.f32 %v6510_v7, %v6342_v22 }
 0x185   :  { %v1120_v54 = vpack.c.bf16 %v1062_v4, %v1060_v26  ;;  %v925_v17 = vadd.f32 %v924_v8, %v732_v45  ;;  %v1063_v41 = vmax.f32 %v923_v18, 0.0  ;;  %v740_v26 = vadd.f32 %v6470_v5, %v6339_v21  ;;  %v763_v5 = vpop.f32.mrf.mxu0 }
 0x186   :  { %v926_v53 = vpop.f32.mrf.mxu1 }
 0x187   :  { %v927_v10 = vadd.f32 %v926_v53, %v734_v32  ;;  %1330 = vmatprep.mubr.bf16.mxu0 %v1120_v54  ;;  %v1064_v23 = vmax.f32 %v925_v17, 0.0  ;;  %v765_v18 = vpop.f32.mrf.mxu0 }
 0x188   :  { %v928_v29 = vpop.f32.mrf.mxu1  ;;  %1331 = vmatmul.mubr.bf16.gmra.mxu0 %v1119_v27 }
 0x189   :  { %v929_v62 = vadd.f32 %v928_v29, %v736_v44  ;;  %v1065_v59 = vmax.f32 %v927_v10, 0.0  ;;  %v754_v29 = vadd.f32 %v753_v56, %v6339_v21  ;;  %v760_v56 = vadd.f32 %v759_v14, %v6339_v21 }
 0x18a   :  { %v932_v42 = vpop.f32.mrf.mxu1 }
 0x18b   :  { %v1066_v47 = vmax.f32 %v929_v62, 0.0  ;;  %v1121_v50 = vpack.c.bf16 %v1065_v59, %v1063_v41  ;;  %v933_v45 = vadd.f32 %v932_v42, %v740_v26 }
 0x18c   :  { %v934_v38 = vpop.f32.mrf.mxu1 }
 0x18d   :  { %v1122_v63 = vpack.c.bf16 %v1066_v47, %v1064_v23  ;;  %v935_v36 = vadd.f32 %v934_v38, %v742_v51  ;;  %v1067_v17 = vmax.f32 %v933_v45, 0.0  ;;  %v756_v23 = vadd.f32 %v755_v11, %v6342_v22  ;;  %v769_v51 = vpop.f32.mrf.mxu0 }
 0x18e   :  { %v936_v4 = vpop.f32.mrf.mxu1  ;;  %v764_v11 = vadd.f32 %v763_v5, %v6339_v21  ;;  %v770_v5 = vadd.f32 %v769_v51, %v6339_v21 }
 0x18f   :  { %v937_v8 = vadd.f32 %v936_v4, %v744_v24  ;;  %1338 = vmatprep.mubr.bf16.mxu0 %v1122_v63  ;;  %v1068_v15 = vmax.f32 %v935_v36, 0.0  ;;  %v771_v36 = vpop.f32.mrf.mxu0 }
 0x190   :  { %v938_v32 = vpop.f32.mrf.mxu1  ;;  %1339 = vmatmul.mubr.bf16.gmra.mxu0 %v1121_v50 }
 0x191   :  { %v939_v54 = vadd.f32 %v938_v32, %v746_v1  ;;  %v1069_v27 = vmax.f32 %v937_v8, 0.0  ;;  %v762_v8 = vadd.f32 %v761_v60, %v6342_v22 }
 0x192   :  { %v942_v53 = vpop.f32.mrf.mxu1 }
 0x193   :  { %v1070_v44 = vmax.f32 %v939_v54, 0.0  ;;  %v1123_v59 = vpack.c.bf16 %v1069_v27, %v1067_v17  ;;  %v943_v26 = vadd.f32 %v942_v53, %v750_v20  ;;  %v766_v27 = vadd.f32 %v765_v18, %v6342_v22  ;;  %v773_v17 = vpop.f32.mrf.mxu0 }
 0x194   :  { %v944_v10 = vpop.f32.mrf.mxu1  ;;  %v774_v18 = vadd.f32 %v773_v17, %v6339_v21 }
 0x195   :  { %v1124_v62 = vpack.c.bf16 %v1070_v44, %v1068_v15  ;;  %v945_v47 = vadd.f32 %v944_v10, %v752_v19  ;;  %v1071_v7 = vmax.f32 %v943_v26, 0.0 }
 0x196   :  { %v946_v42 = vpop.f32.mrf.mxu1 }
 0x197   :  { %v947_v41 = vadd.f32 %v946_v42, %v754_v29  ;;  %1346 = vmatprep.mubr.bf16.mxu0 %v1124_v62  ;;  %v1072_v50 = vmax.f32 %v945_v47, 0.0 }
 0x198   :  { %v948_v38 = vpop.f32.mrf.mxu1  ;;  %1347 = vmatmul.mubr.bf16.gmra.mxu0 %v1123_v59  ;;  %v775_v59 = vpop.f32.mrf.mxu0 }
 0x199   :  { %v949_v33 = vadd.f32 %v948_v38, %v756_v23  ;;  %v1073_v24 = vmax.f32 %v947_v41, 0.0  ;;  %v772_v23 = vadd.f32 %v771_v36, %v6342_v22  ;;  %v776_v38 = vadd.f32 %v775_v59, %v6342_v22 }
 0x19a   :  { %v952_v63 = vpop.f32.mrf.mxu1 }
 0x19b   :  { %v1074_v4 = vmax.f32 %v949_v33, 0.0  ;;  %v1125_v32 = vpack.c.bf16 %v1073_v24, %v1071_v7  ;;  %v953_v44 = vadd.f32 %v952_v63, %v760_v56 }
 0x19c   :  { %v954_v1 = vpop.f32.mrf.mxu1 }
 0x19d   :  { %v1126_v45 = vpack.c.bf16 %v1074_v4, %v1072_v50  ;;  %v955_v53 = vadd.f32 %v954_v1, %v762_v8  ;;  %v1075_v60 = vmax.f32 %v953_v44, 0.0 }
 0x19e   :  { %v956_v54 = vpop.f32.mrf.mxu1 }
 0x19f   :  { %v957_v15 = vadd.f32 %v956_v54, %v764_v11  ;;  %1354 = vmatprep.mubr.bf16.mxu0 %v1126_v45  ;;  %v1076_v29 = vmax.f32 %v955_v53, 0.0  ;;  %v786_v54 = vadd.f32 %v6357_v31, %v6342_v22 }
 0x1a0   :  { %v958_v20 = vpop.f32.mrf.mxu1  ;;  %1355 = vmatmul.mubr.bf16.gmra.mxu0 %v1125_v32 }
 0x1a1   :  { %v959_v10 = vadd.f32 %v958_v20, %v766_v27  ;;  %v1077_v14 = vmax.f32 %v957_v15, 0.0 }
 0x1a2   :  { %v962_v19 = vpop.f32.mrf.mxu1 }
 0x1a3   :  { %v1078_v62 = vmax.f32 %v959_v10, 0.0  ;;  %v1127_v41 = vpack.c.bf16 %v1077_v14, %v1075_v60  ;;  %v963_v63 = vadd.f32 %v962_v19, %v770_v5 }
 0x1a4   :  { %v964_v42 = vpop.f32.mrf.mxu1 }
 0x1a5   :  { %v1128_v47 = vpack.c.bf16 %v1078_v62, %v1076_v29  ;;  %v965_v33 = vadd.f32 %v964_v42, %v772_v23  ;;  %v1079_v8 = vmax.f32 %v963_v63, 0.0 }
 0x1a6   :  { %v966_v26 = vpop.f32.mrf.mxu1 }
 0x1a7   :  { %v967_v24 = vadd.f32 %v966_v26, %v774_v18  ;;  %1362 = vmatprep.mubr.bf16.mxu0 %v1128_v47  ;;  %v1080_v56 = vmax.f32 %v965_v33, 0.0 }
 0x1a8   :  { %v968_v50 = vpop.f32.mrf.mxu1  ;;  %1363 = vmatmul.mubr.bf16.gmra.mxu0 %v1127_v41 }
 0x1a9   :  { %v969_v4 = vadd.f32 %v968_v50, %v776_v38  ;;  %v1081_v7 = vmax.f32 %v967_v24, 0.0 }
 0x1aa   :  { %v972_v51 = vpop.f32.mrf.mxu1 }
 0x1ab   :  { %v1082_v1 = vmax.f32 %v969_v4, 0.0  ;;  %v973_v21 = vadd.f32 %v972_v51, %v6347_v25  ;;  %v1129_v45 = vpack.c.bf16 %v1081_v7, %v1079_v8 }
 0x1ac   :  { %v974_v36 = vpop.f32.mrf.mxu1 }
 0x1ad   :  { %v1130_v11 = vpack.c.bf16 %v1082_v1, %v1080_v56  ;;  %v975_v27 = vadd.f32 %v974_v36, %v6352_v28  ;;  %v1083_v44 = vmax.f32 %v973_v21, 0.0  ;;  %v796_v28 = vadd.f32 %v6372_v40, %v6342_v22 }
 0x1ae   :  { %v976_v32 = vpop.f32.mrf.mxu1 }
 0x1af   :  { %v977_v53 = vadd.f32 %v976_v32, %v6355_v30  ;;  %1370 = vmatprep.mubr.bf16.mxu0 %v1130_v11  ;;  %v1084_v14 = vmax.f32 %v975_v27, 0.0  ;;  %v5413_v32 = vld [vmem:[%s7407_s4] sm:$0xff]   ;;  %s6209_s4 = smov 64  }
 0x1b0   :  { %v978_v15 = vpop.f32.mrf.mxu1  ;;  %1371 = vmatmul.mubr.bf16.gmra.mxu0 %v1129_v45  ;;  %5176 = vmatprep.subr.bf16.mxu1 %v5413_v32 }
 0x1b1   :  { %v1085_v17 = vmax.f32 %v977_v53, 0.0  ;;  %v979_v20 = vadd.f32 %v978_v15, %v786_v54  ;;  %5177 = vmatpush3.bf16.msra.mxu1 %v5413_v32  ;;  %v7433_v32 = vld [vmem:[#allocation18_spill] sm:$0xff] }
 0x1b2   :  { %v982_v10 = vpop.f32.mrf.mxu1 }
 0x1b3   :  { %v1131_v19 = vpack.c.bf16 %v1085_v17, %v1083_v44  ;;  %v1086_v25 = vmax.f32 %v979_v20, 0.0  ;;  %v983_v62 = vadd.f32 %v982_v10, %v6362_v34 }
 0x1b4   :  { %v984_v29 = vpop.f32.mrf.mxu1 }
 0x1b5   :  { %v1132_v60 = vpack.c.bf16 %v1086_v25, %v1084_v14  ;;  %v985_v30 = vadd.f32 %v984_v29, %v6367_v37  ;;  %v1087_v42 = vmax.f32 %v983_v62, 0.0  ;;  %v806_v37 = vadd.f32 %v6387_v49, %v6342_v22 }
 0x1b6   :  { %v986_v5 = vpop.f32.mrf.mxu1  ;;  %v826_v14 = vadd.f32 %v6417_v3, %v6342_v22 }
 0x1b7   :  { %v987_v31 = vadd.f32 %v986_v5, %v6370_v39  ;;  %1378 = vmatprep.mubr.bf16.mxu0 %v1132_v60  ;;  %v1088_v41 = vmax.f32 %v985_v30, 0.0 }
 0x1b8   :  { %v988_v59 = vpop.f32.mrf.mxu1  ;;  %1379 = vmatmul.mubr.bf16.gmra.mxu0 %v1131_v19 }
 0x1b9   :  { %v1089_v23 = vmax.f32 %v987_v31, 0.0  ;;  %v989_v18 = vadd.f32 %v988_v59, %v796_v28 }
 0x1ba   :  { %v992_v47 = vpop.f32.mrf.mxu1 }
 0x1bb   :  { %v1133_v26 = vpack.c.bf16 %v1089_v23, %v1087_v42  ;;  %v1090_v38 = vmax.f32 %v989_v18, 0.0  ;;  %v993_v33 = vadd.f32 %v992_v47, %v6377_v43 }
 0x1bc   :  { %v994_v34 = vpop.f32.mrf.mxu1 }
 0x1bd   :  { %v1134_v24 = vpack.c.bf16 %v1090_v38, %v1088_v41  ;;  %v995_v39 = vadd.f32 %v994_v34, %v6382_v46  ;;  %v1091_v4 = vmax.f32 %v993_v33, 0.0  ;;  %v816_v46 = vadd.f32 %v6402_v58, %v6342_v22 }
 0x1be   :  { %v996_v63 = vpop.f32.mrf.mxu1 }
 0x1bf   :  { %v997_v40 = vadd.f32 %v996_v63, %v6385_v48  ;;  %1386 = vmatprep.mubr.bf16.mxu0 %v1134_v24  ;;  %v1092_v1 = vmax.f32 %v995_v39, 0.0 }
 0x1c0   :  { %v998_v50 = vpop.f32.mrf.mxu1  ;;  %1387 = vmatmul.mubr.bf16.gmra.mxu0 %v1133_v26 }
 0x1c1   :  { %v1093_v7 = vmax.f32 %v997_v40, 0.0  ;;  %v999_v51 = vadd.f32 %v998_v50, %v806_v37  ;;  %v7430_v50 = vld [vmem:[#allocation16_spill] sm:$0xff] }
 0x1c2   :  { %v1002_v56 = vpop.f32.mrf.mxu1 }
 0x1c3   :  { %v1135_v8 = vpack.c.bf16 %v1093_v7, %v1091_v4  ;;  %v1094_v36 = vmax.f32 %v999_v51, 0.0  ;;  %v1003_v21 = vadd.f32 %v1002_v56, %v6392_v52 }
 0x1c4   :  { %v1004_v43 = vpop.f32.mrf.mxu1 }
 0x1c5   :  { %v1136_v11 = vpack.c.bf16 %v1094_v36, %v1092_v1  ;;  %v1005_v48 = vadd.f32 %v1004_v43, %v6397_v55  ;;  %v1095_v27 = vmax.f32 %v1003_v21, 0.0 }
 0x1c6   :  { %v1006_v45 = vpop.f32.mrf.mxu1 }
 0x1c7   :  { %v1007_v49 = vadd.f32 %v1006_v45, %v6400_v57  ;;  %1394 = vmatprep.mubr.bf16.mxu0 %v1136_v11  ;;  %v1096_v44 = vmax.f32 %v1005_v48, 0.0  ;;  %v7431_v11 = vld [vmem:[#allocation17_spill] sm:$0xff] }
 0x1c8   :  { %v1008_v54 = vpop.f32.mrf.mxu1  ;;  %1395 = vmatmul.mubr.bf16.gmra.mxu0 %v1135_v8 }
 0x1c9   :  { %v1097_v53 = vmax.f32 %v1007_v49, 0.0  ;;  %v1009_v15 = vadd.f32 %v1008_v54, %v816_v46 }
 0x1ca   :  { %v1012_v52 = vpop.f32.mrf.mxu1 }
 0x1cb   :  { %v1137_v17 = vpack.c.bf16 %v1097_v53, %v1095_v27  ;;  %v1098_v58 = vmax.f32 %v1009_v15, 0.0  ;;  %v1013_v55 = vadd.f32 %v1012_v52, %v6407_v61  ;;  %v7434_v27 = vld [vmem:[#allocation19_spill] sm:$0xff] }
 0x1cc   :  { %v1014_v20 = vpop.f32.mrf.mxu1 }
 0x1cd   :  { %v1138_v57 = vpack.c.bf16 %v1098_v58, %v1096_v44  ;;  %v1015_v19 = vadd.f32 %v1014_v20, %v6412_v0  ;;  %v1099_v62 = vmax.f32 %v1013_v55, 0.0  ;;  %v836_v0 = vadd.f32 %v6435_v13, %v6342_v22  ;;  %v7429_v13 = vld [vmem:[#allocation15_spill] sm:$0xff] }
 0x1ce   :  { %v1016_v10 = vpop.f32.mrf.mxu1 }
 0x1cf   :  { %v1017_v25 = vadd.f32 %v1016_v10, %v6415_v2  ;;  %1402 = vmatprep.mubr.bf16.mxu0 %v1138_v57  ;;  %v1100_v30 = vmax.f32 %v1015_v19, 0.0 }
 0x1d0   :  { %v1018_v29 = vpop.f32.mrf.mxu1  ;;  %1403 = vmatmul.mubr.bf16.gmra.mxu0 %v1137_v17 }
 0x1d1   :  { %v1101_v60 = vmax.f32 %v1017_v25, 0.0  ;;  %v1019_v5 = vadd.f32 %v1018_v29, %v826_v14 }
 0x1d2   :  { %v1022_v28 = vpop.f32.mrf.mxu1 }
 0x1d3   :  { %v1139_v31 = vpack.c.bf16 %v1101_v60, %v1099_v62  ;;  %v1102_v59 = vmax.f32 %v1019_v5, 0.0  ;;  %v1023_v42 = vadd.f32 %v1022_v28, %v6422_v6 }
 0x1d4   :  { %v1024_v61 = vpop.f32.mrf.mxu1 }
 0x1d5   :  { %v1140_v23 = vpack.c.bf16 %v1102_v59, %v1100_v30  ;;  %v1025_v2 = vadd.f32 %v1024_v61, %v6427_v9  ;;  %v1103_v41 = vmax.f32 %v1023_v42, 0.0  ;;  %v846_v9 = vadd.f32 %v6450_v35, %v6342_v22  ;;  %v7432_v35 = vld [vmem:[#allocation20_spill] sm:$0xff] }
 0x1d6   :  { %v1026_v18 = vpop.f32.mrf.mxu1  ;;  %v856_v49 = vadd.f32 %v7432_v35, %v6342_v22  ;;  %v6597_v22 = vld [vmem:[%s7411_s8 + $0x2] ss:$0 sm:$0xff] }
 0x1d7   :  { %v1027_v3 = vadd.f32 %v1026_v18, %v6433_v12  ;;  %1410 = vmatprep.mubr.bf16.mxu0 %v1140_v23  ;;  %v1104_v33 = vmax.f32 %v1025_v2, 0.0 }
 0x1d8   :  { %v1028_v47 = vpop.f32.mrf.mxu1  ;;  %1411 = vmatmul.mubr.bf16.gmra.mxu0 %v1139_v31 }
 0x1d9   :  { %v1105_v26 = vmax.f32 %v1027_v3, 0.0  ;;  %v1029_v38 = vadd.f32 %v1028_v47, %v836_v0 }
 0x1da   :  { %v1032_v34 = vpop.f32.mrf.mxu1 }
 0x1db   :  { %v1141_v24 = vpack.c.bf16 %v1105_v26, %v1103_v41  ;;  %v1106_v63 = vmax.f32 %v1029_v38, 0.0  ;;  %v1033_v37 = vadd.f32 %v1032_v34, %v6440_v16 }
 0x1dc   :  { %v1034_v6 = vpop.f32.mrf.mxu1 }
 0x1dd   :  { %v1142_v39 = vpack.c.bf16 %v1106_v63, %v1104_v33  ;;  %v1035_v12 = vadd.f32 %v1034_v6, %v7429_v13  ;;  %v1107_v51 = vmax.f32 %v1033_v37, 0.0 }
 0x1de   :  { %v1036_v40 = vpop.f32.mrf.mxu1 }
 0x1df   :  { %v1037_v4 = vadd.f32 %v1036_v40, %v7430_v50  ;;  %1418 = vmatprep.mubr.bf16.mxu0 %v1142_v39  ;;  %v1108_v36 = vmax.f32 %v1035_v12, 0.0 }
 0x1e0   :  { %v1038_v7 = vpop.f32.mrf.mxu1  ;;  %1419 = vmatmul.mubr.bf16.gmra.mxu0 %v1141_v24 }
 0x1e1   :  { %v1109_v56 = vmax.f32 %v1037_v4, 0.0  ;;  %v1039_v1 = vadd.f32 %v1038_v7, %v846_v9 }
 0x1e2   :  { %v1042_v8 = vpop.f32.mrf.mxu1 }
 0x1e3   :  { %v1143_v43 = vpack.c.bf16 %v1109_v56, %v1107_v51  ;;  %v1110_v21 = vmax.f32 %v1039_v1, 0.0  ;;  %v1043_v45 = vadd.f32 %v1042_v8, %v7431_v11 }
 0x1e4   :  { %v1044_v16 = vpop.f32.mrf.mxu1 }
 0x1e5   :  { %v1144_v46 = vpack.c.bf16 %v1110_v21, %v1108_v36  ;;  %v1045_v54 = vadd.f32 %v1044_v16, %v7433_v32  ;;  %v1111_v52 = vmax.f32 %v1043_v45, 0.0 }
 0x1e6   :  { %v1046_v48 = vpop.f32.mrf.mxu1 }
 0x1e7   :  { %v1047_v53 = vadd.f32 %v1046_v48, %v7434_v27  ;;  %1426 = vmatprep.mubr.bf16.mxu0 %v1144_v46  ;;  %v1112_v58 = vmax.f32 %v1045_v54, 0.0 }
 0x1e8   :  { %v1048_v15 = vpop.f32.mrf.mxu1  ;;  %1427 = vmatmul.mubr.bf16.gmra.mxu0 %v1143_v43 }
 0x1e9   :  { %v1113_v44 = vmax.f32 %v1047_v53, 0.0  ;;  %v1049_v17 = vadd.f32 %v1048_v15, %v856_v49 }
 0x1eb   :  { %v1145_v20 = vpack.c.bf16 %v1113_v44, %v1111_v52  ;;  %v1114_v55 = vmax.f32 %v1049_v17, 0.0 }
 0x1ed   :  { %v1146_v57 = vpack.c.bf16 %v1114_v55, %v1112_v58 }
 0x1ef   :  { %1434 = vmatprep.mubr.bf16.mxu0 %v1146_v57 }
 0x1f0   :  { %1435 = vmatmul.mubr.bf16.gmra.mxu0 %v1145_v20 }
 0x238   :  { %v5022_v10 = vpop.f32.mrf.mxu0 }
 0x23a   :  { %v5023_v14 = vpop.f32.mrf.mxu0 }
 0x23b   :  { %v5024_v19 = vadd.f32 %v5023_v14, %v5022_v10 }
 0x23c   :  { %v5025_v25 = vpop.f32.mrf.mxu0 }
 0x23d   :  { %v1317_v62 = vadd.f32 %v5024_v19, %v6597_v22 }
 0x23e   :  { %v5026_v29 = vpop.f32.mrf.mxu0 }
 0x23f   :  { %v5027_v60 = vadd.f32 %v5026_v29, %v5025_v25  ;;  %v1443_v31 = vmax.f32 %v1317_v62, 0.0 }
 0x240   :  { %v5028_v5 = vpop.f32.mrf.mxu0 }
 0x241   :  { %v1320_v28 = vadd.f32 %v5027_v60, %v6597_v22 }
 0x242   :  { %v5029_v30 = vpop.f32.mrf.mxu0 }
 0x243   :  { %v1444_v59 = vmax.f32 %v1320_v28, 0.0  ;;  %v5030_v61 = vadd.f32 %v5029_v30, %v5028_v5 }
 0x244   :  { %v5031_v42 = vpop.f32.mrf.mxu0 }
 0x245   :  { %v1475_v23 = vpack.c.bf16 %v1444_v59, %v1443_v31  ;;  %v1325_v0 = vadd.f32 %v5030_v61, %v6597_v22 }
 0x246   :  { %v5032_v18 = vpop.f32.mrf.mxu0 }
 0x247   :  { %v5033_v2 = vadd.f32 %v5032_v18, %v5031_v42  ;;  %5178 = vmatprep.mubr.bf16.mxu1 %v1475_v23  ;;  %v1445_v26 = vmax.f32 %v1325_v0, 0.0 }
 0x248   :  { %v5034_v3 = vpop.f32.mrf.mxu0 }
 0x249   :  { %v1328_v47 = vadd.f32 %v5033_v2, %v6597_v22 }
 0x24a   :  { %v5035_v41 = vpop.f32.mrf.mxu0 }
 0x24b   :  { %v1446_v38 = vmax.f32 %v1328_v47, 0.0  ;;  %v5036_v34 = vadd.f32 %v5035_v41, %v5034_v3 }
 0x24c   :  { %v5037_v33 = vpop.f32.mrf.mxu0 }
 0x24d   :  { %v1476_v24 = vpack.c.bf16 %v1446_v38, %v1445_v26  ;;  %v1333_v6 = vadd.f32 %v5036_v34, %v6597_v22 }
 0x24e   :  { %v5038_v63 = vpop.f32.mrf.mxu0 }
 0x24f   :  { %v5039_v37 = vadd.f32 %v5038_v63, %v5037_v33  ;;  %5179 = vmatmul.mubr.bf16.vlgmr.msra.gmra.mxu1 %v1476_v24  ;;  %v1447_v13 = vmax.f32 %v1333_v6, 0.0 }
 0x250   :  { %v5040_v39 = vpop.f32.mrf.mxu0 }
 0x251   :  { %v1336_v40 = vadd.f32 %v5039_v37, %v6597_v22 }
 0x252   :  { %v5041_v9 = vpop.f32.mrf.mxu0 }
 0x253   :  { %v1448_v12 = vmax.f32 %v1336_v40, 0.0  ;;  %v5042_v50 = vadd.f32 %v5041_v9, %v5040_v39 }
 0x254   :  { %v5043_v4 = vpop.f32.mrf.mxu0 }
 0x255   :  { %v1477_v7 = vpack.c.bf16 %v1448_v12, %v1447_v13  ;;  %v1341_v56 = vadd.f32 %v5042_v50, %v6597_v22 }
 0x256   :  { %v5044_v51 = vpop.f32.mrf.mxu0 }
 0x257   :  { %v5045_v1 = vadd.f32 %v5044_v51, %v5043_v4  ;;  %5182 = vmatprep.mubr.bf16.mxu1 %v1477_v7  ;;  %v1449_v21 = vmax.f32 %v1341_v56, 0.0 }
 0x258   :  { %v5046_v8 = vpop.f32.mrf.mxu0 }
 0x259   :  { %v1344_v36 = vadd.f32 %v5045_v1, %v6597_v22 }
 0x25a   :  { %v5047_v43 = vpop.f32.mrf.mxu0 }
 0x25b   :  { %v1450_v16 = vmax.f32 %v1344_v36, 0.0  ;;  %v5048_v11 = vadd.f32 %v5047_v43, %v5046_v8 }
 0x25c   :  { %v5049_v45 = vpop.f32.mrf.mxu0 }
 0x25d   :  { %v1478_v46 = vpack.c.bf16 %v1450_v16, %v1449_v21  ;;  %v1349_v35 = vadd.f32 %v5048_v11, %v6597_v22 }
 0x25e   :  { %v5050_v48 = vpop.f32.mrf.mxu0 }
 0x25f   :  { %v5051_v49 = vadd.f32 %v5050_v48, %v5049_v45  ;;  %5183 = vmatmul.mubr.bf16.gmra.mxu1 %v1478_v46  ;;  %v1451_v53 = vmax.f32 %v1349_v35, 0.0 }
 0x260   :  { %v5052_v32 = vpop.f32.mrf.mxu0 }
 0x261   :  { %v1352_v54 = vadd.f32 %v5051_v49, %v6597_v22 }
 0x262   :  { %v5053_v27 = vpop.f32.mrf.mxu0 }
 0x263   :  { %v1452_v15 = vmax.f32 %v1352_v54, 0.0  ;;  %v5054_v52 = vadd.f32 %v5053_v27, %v5052_v32 }
 0x264   :  { %v5055_v44 = vpop.f32.mrf.mxu0 }
 0x265   :  { %v1479_v17 = vpack.c.bf16 %v1452_v15, %v1451_v53  ;;  %v1357_v20 = vadd.f32 %v5054_v52, %v6597_v22 }
 0x266   :  { %v5056_v58 = vpop.f32.mrf.mxu0 }
 0x267   :  { %v5057_v55 = vadd.f32 %v5056_v58, %v5055_v44  ;;  %5186 = vmatprep.mubr.bf16.mxu1 %v1479_v17  ;;  %v1453_v19 = vmax.f32 %v1357_v20, 0.0 }
 0x268   :  { %v5058_v57 = vpop.f32.mrf.mxu0 }
 0x269   :  { %v1360_v10 = vadd.f32 %v5057_v55, %v6597_v22 }
 0x26a   :  { %v5059_v14 = vpop.f32.mrf.mxu0 }
 0x26b   :  { %v1454_v25 = vmax.f32 %v1360_v10, 0.0  ;;  %v5060_v29 = vadd.f32 %v5059_v14, %v5058_v57 }
 0x26c   :  { %v5061_v62 = vpop.f32.mrf.mxu0 }
 0x26d   :  { %v1480_v60 = vpack.c.bf16 %v1454_v25, %v1453_v19  ;;  %v1365_v28 = vadd.f32 %v5060_v29, %v6597_v22 }
 0x26e   :  { %v5062_v5 = vpop.f32.mrf.mxu0 }
 0x26f   :  { %v5063_v30 = vadd.f32 %v5062_v5, %v5061_v62  ;;  %5187 = vmatmul.mubr.bf16.gmra.mxu1 %v1480_v60  ;;  %v1455_v42 = vmax.f32 %v1365_v28, 0.0 }
 0x270   :  { %v5064_v31 = vpop.f32.mrf.mxu0 }
 0x271   :  { %v1368_v59 = vadd.f32 %v5063_v30, %v6597_v22 }
 0x272   :  { %v5065_v61 = vpop.f32.mrf.mxu0 }
 0x273   :  { %v1456_v23 = vmax.f32 %v1368_v59, 0.0  ;;  %v5066_v18 = vadd.f32 %v5065_v61, %v5064_v31 }
 0x274   :  { %v5067_v0 = vpop.f32.mrf.mxu0 }
 0x275   :  { %v1481_v2 = vpack.c.bf16 %v1456_v23, %v1455_v42  ;;  %v1373_v47 = vadd.f32 %v5066_v18, %v6597_v22 }
 0x276   :  { %v5068_v3 = vpop.f32.mrf.mxu0 }
 0x277   :  { %v5069_v41 = vadd.f32 %v5068_v3, %v5067_v0  ;;  %5190 = vmatprep.mubr.bf16.mxu1 %v1481_v2  ;;  %v1457_v33 = vmax.f32 %v1373_v47, 0.0 }
 0x278   :  { %v5070_v26 = vpop.f32.mrf.mxu0 }
 0x279   :  { %v1376_v38 = vadd.f32 %v5069_v41, %v6597_v22 }
 0x27a   :  { %v5071_v34 = vpop.f32.mrf.mxu0 }
 0x27b   :  { %v1458_v24 = vmax.f32 %v1376_v38, 0.0  ;;  %v5072_v63 = vadd.f32 %v5071_v34, %v5070_v26 }
 0x27c   :  { %v5073_v6 = vpop.f32.mrf.mxu0 }
 0x27d   :  { %v1482_v37 = vpack.c.bf16 %v1458_v24, %v1457_v33  ;;  %v1381_v40 = vadd.f32 %v5072_v63, %v6597_v22 }
 0x27e   :  { %v5074_v39 = vpop.f32.mrf.mxu0 }
 0x27f   :  { %v5075_v9 = vadd.f32 %v5074_v39, %v5073_v6  ;;  %5191 = vmatmul.mubr.bf16.gmra.mxu1 %v1482_v37  ;;  %v1459_v4 = vmax.f32 %v1381_v40, 0.0 }
 0x280   :  { %v5076_v13 = vpop.f32.mrf.mxu0 }
 0x281   :  { %v1384_v12 = vadd.f32 %v5075_v9, %v6597_v22 }
 0x282   :  { %v5077_v50 = vpop.f32.mrf.mxu0 }
 0x283   :  { %v1460_v7 = vmax.f32 %v1384_v12, 0.0  ;;  %v5078_v51 = vadd.f32 %v5077_v50, %v5076_v13 }
 0x284   :  { %v5079_v56 = vpop.f32.mrf.mxu0 }
 0x285   :  { %v1483_v1 = vpack.c.bf16 %v1460_v7, %v1459_v4  ;;  %v1389_v36 = vadd.f32 %v5078_v51, %v6597_v22 }
 0x286   :  { %v5080_v8 = vpop.f32.mrf.mxu0 }
 0x287   :  { %v5081_v43 = vadd.f32 %v5080_v8, %v5079_v56  ;;  %5194 = vmatprep.mubr.bf16.mxu1 %v1483_v1  ;;  %v1461_v45 = vmax.f32 %v1389_v36, 0.0 }
 0x288   :  { %v5082_v21 = vpop.f32.mrf.mxu0 }
 0x289   :  { %v1392_v16 = vadd.f32 %v5081_v43, %v6597_v22 }
 0x28a   :  { %v5083_v11 = vpop.f32.mrf.mxu0 }
 0x28b   :  { %v1462_v46 = vmax.f32 %v1392_v16, 0.0  ;;  %v5084_v48 = vadd.f32 %v5083_v11, %v5082_v21 }
 0x28c   :  { %v5085_v35 = vpop.f32.mrf.mxu0 }
 0x28d   :  { %v1484_v49 = vpack.c.bf16 %v1462_v46, %v1461_v45  ;;  %v1397_v54 = vadd.f32 %v5084_v48, %v6597_v22 }
 0x28e   :  { %v5086_v32 = vpop.f32.mrf.mxu0 }
 0x28f   :  { %v5087_v27 = vadd.f32 %v5086_v32, %v5085_v35  ;;  %5195 = vmatmul.mubr.bf16.gmra.mxu1 %v1484_v49  ;;  %v1463_v44 = vmax.f32 %v1397_v54, 0.0  ;;  %v5414_v49 = vld [vmem:[%s7408_s5 + $0x18] sm:$0xff]   ;;  %v5415_v32 = vld [vmem:[%s7408_s5 + $0x10] sm:$0xff]   ;;  %v6643_v54 = vld [vmem:[%s7411_s8 + $0x3] ss:$0 sm:$0xff] }
 0x290   :  { %v5088_v53 = vpop.f32.mrf.mxu0  ;;  %5210 = vmatprep.subr.bf16.mxu1 %v5414_v49 }
 0x291   :  { %v1400_v15 = vadd.f32 %v5087_v27, %v6597_v22  ;;  %5211 = vmatpush3.bf16.msra.mxu1 %v5414_v49 }
 0x292   :  { %v5089_v52 = vpop.f32.mrf.mxu0  ;;  %5212 = vmatprep.subr.bf16.mxu1 %v5415_v32 }
 0x293   :  { %v1464_v17 = vmax.f32 %v1400_v15, 0.0  ;;  %v5090_v58 = vadd.f32 %v5089_v52, %v5088_v53 }
 0x294   :  { %v5091_v20 = vpop.f32.mrf.mxu0 }
 0x295   :  { %v1485_v55 = vpack.c.bf16 %v1464_v17, %v1463_v44  ;;  %v1405_v10 = vadd.f32 %v5090_v58, %v6597_v22  ;;  %5213 = vmatpush3.bf16.msra.mxu1 %v5415_v32 }
 0x296   :  { %v5092_v57 = vpop.f32.mrf.mxu0 }
 0x297   :  { %v5093_v14 = vadd.f32 %v5092_v57, %v5091_v20  ;;  %5198 = vmatprep.mubr.bf16.mxu1 %v1485_v55  ;;  %v1465_v62 = vmax.f32 %v1405_v10, 0.0 }
 0x298   :  { %v5094_v19 = vpop.f32.mrf.mxu0 }
 0x299   :  { %v1408_v25 = vadd.f32 %v5093_v14, %v6597_v22 }
 0x29a   :  { %v5095_v29 = vpop.f32.mrf.mxu0 }
 0x29b   :  { %v1466_v60 = vmax.f32 %v1408_v25, 0.0  ;;  %v5096_v5 = vadd.f32 %v5095_v29, %v5094_v19 }
 0x29c   :  { %v5097_v28 = vpop.f32.mrf.mxu0 }
 0x29d   :  { %v1486_v30 = vpack.c.bf16 %v1466_v60, %v1465_v62  ;;  %v1413_v59 = vadd.f32 %v5096_v5, %v6597_v22  ;;  %v5417_v62 = vld [vmem:[%s7408_s5] sm:$0xff]  }
 0x29e   :  { %v5098_v31 = vpop.f32.mrf.mxu0 }
 0x29f   :  { %v5099_v61 = vadd.f32 %v5098_v31, %v5097_v28  ;;  %5199 = vmatmul.mubr.bf16.gmra.mxu1 %v1486_v30  ;;  %v1467_v0 = vmax.f32 %v1413_v59, 0.0 }
 0x2a0   :  { %v5100_v42 = vpop.f32.mrf.mxu0 }
 0x2a1   :  { %v1416_v23 = vadd.f32 %v5099_v61, %v6597_v22 }
 0x2a2   :  { %v5101_v18 = vpop.f32.mrf.mxu0 }
 0x2a3   :  { %v1468_v2 = vmax.f32 %v1416_v23, 0.0  ;;  %v5102_v3 = vadd.f32 %v5101_v18, %v5100_v42 }
 0x2a4   :  { %v5103_v47 = vpop.f32.mrf.mxu0 }
 0x2a5   :  { %v1487_v41 = vpack.c.bf16 %v1468_v2, %v1467_v0  ;;  %v1421_v38 = vadd.f32 %v5102_v3, %v6597_v22 }
 0x2a6   :  { %v5104_v26 = vpop.f32.mrf.mxu0 }
 0x2a7   :  { %v5105_v34 = vadd.f32 %v5104_v26, %v5103_v47  ;;  %5202 = vmatprep.mubr.bf16.mxu1 %v1487_v41  ;;  %v1469_v6 = vmax.f32 %v1421_v38, 0.0 }
 0x2a8   :  { %v5106_v33 = vpop.f32.mrf.mxu0 }
 0x2a9   :  { %v1424_v24 = vadd.f32 %v5105_v34, %v6597_v22 }
 0x2aa   :  { %v5107_v63 = vpop.f32.mrf.mxu0 }
 0x2ab   :  { %v1470_v37 = vmax.f32 %v1424_v24, 0.0  ;;  %v5108_v39 = vadd.f32 %v5107_v63, %v5106_v33 }
 0x2ac   :  { %v5109_v40 = vpop.f32.mrf.mxu0 }
 0x2ad   :  { %v1488_v9 = vpack.c.bf16 %v1470_v37, %v1469_v6  ;;  %v1429_v12 = vadd.f32 %v5108_v39, %v6597_v22 }
 0x2ae   :  { %v5110_v13 = vpop.f32.mrf.mxu0 }
 0x2af   :  { %v5111_v50 = vadd.f32 %v5110_v13, %v5109_v40  ;;  %5203 = vmatmul.mubr.bf16.gmra.mxu1 %v1488_v9  ;;  %v1471_v56 = vmax.f32 %v1429_v12, 0.0 }
 0x2b0   :  { %v5112_v4 = vpop.f32.mrf.mxu0 }
 0x2b1   :  { %v1432_v7 = vadd.f32 %v5111_v50, %v6597_v22 }
 0x2b2   :  { %v5113_v51 = vpop.f32.mrf.mxu0 }
 0x2b3   :  { %v1472_v1 = vmax.f32 %v1432_v7, 0.0  ;;  %v5114_v8 = vadd.f32 %v5113_v51, %v5112_v4 }
 0x2b4   :  { %v5115_v36 = vpop.f32.mrf.mxu0 }
 0x2b5   :  { %v1489_v43 = vpack.c.bf16 %v1472_v1, %v1471_v56  ;;  %v1437_v16 = vadd.f32 %v5114_v8, %v6597_v22 }
 0x2b6   :  { %v5116_v21 = vpop.f32.mrf.mxu0 }
 0x2b7   :  { %v5117_v11 = vadd.f32 %v5116_v21, %v5115_v36  ;;  %5206 = vmatprep.mubr.bf16.mxu1 %v1489_v43  ;;  %v1473_v46 = vmax.f32 %v1437_v16, 0.0 }
 0x2b9   :  { %v1440_v45 = vadd.f32 %v5117_v11, %v6597_v22  ;;  %v5416_v22 = vld [vmem:[%s7408_s5 + $0x8] sm:$0xff]  }
 0x2ba   :  { %5214 = vmatprep.subr.bf16.mxu1 %v5416_v22 }
 0x2bb   :  { %v1474_v48 = vmax.f32 %v1440_v45, 0.0  ;;  %5215 = vmatpush3.bf16.msra.mxu1 %v5416_v22 }
 0x2bc   :  { %5216 = vmatprep.subr.bf16.mxu1 %v5417_v62 }
 0x2bd   :  { %v1490_v35 = vpack.c.bf16 %v1474_v48, %v1473_v46 }
 0x2bf   :  { %5207 = vmatmul.mubr.bf16.gmra.mxu1 %v1490_v35 }
 0x2c0   :  { %5217 = vmatpush3.bf16.msra.mxu1 %v5417_v62 }
 0x30f   :  { %v5180_v27 = vpop.f32.mrf.mxu1 }
 0x310   :  { %v6646_v53 = vadd.f32 %v5180_v27, %v6643_v54 }
 0x311   :  { %v1596_v15 = vpop.f32.mrf.mxu1 }
 0x312   :  { %v1757_v52 = vmul.f32 0.5, %v6646_v53  ;;  %4635 = vst [vmem:[%s7413_s10 + $0x10] sm:$0xff] %v6646_v53  ;;  %v6654_v44 = vadd.f32 %v6643_v54, %v1596_v15 }
 0x313   :  { %v5181_v17 = vpop.f32.mrf.mxu1 }
 0x314   :  { %v1791_v58 = vmul.f32 1.442695, %v1757_v52  ;;  %v1755_v20 = vmul.f32 0.5, %v6654_v44  ;;  %4633 = vst [vmem:[%s7413_s10] sm:$0xff] %v6654_v44  ;;  %v6662_v55 = vadd.f32 %v5181_v17, %v6643_v54 }
 0x315   :  { %v1599_v57 = vpop.f32.mrf.mxu1 }
 0x316   :  { %5538 = vpow2.f32 %v1791_v58  ;;  %v1787_v10 = vmul.f32 1.442695, %v1755_v20  ;;  %v1758_v14 = vmul.f32 0.5, %v6662_v55  ;;  %4636 = vst [vmem:[%s7413_s10 + $0x18] sm:$0xff] %v6662_v55  ;;  %v6670_v19 = vadd.f32 %v6643_v54, %v1599_v57 }
 0x318   :  { %5540 = vpow2.f32 %v1787_v10  ;;  %v1793_v25 = vmul.f32 1.442695, %v1758_v14  ;;  %v1756_v29 = vmul.f32 0.5, %v6670_v19  ;;  %4634 = vst [vmem:[%s7413_s10 + $0x8] sm:$0xff] %v6670_v19 }
 0x31a   :  { %5542 = vpow2.f32 %v1793_v25  ;;  %v1789_v60 = vmul.f32 1.442695, %v1756_v29 }
 0x31c   :  { %5544 = vpow2.f32 %v1789_v60 }
 0x31f   :  { %v5184_v5 = vpop.f32.mrf.mxu1 }
 0x320   :  { %v6681_v28 = vadd.f32 %v5184_v5, %v6643_v54 }
 0x321   :  { %v1612_v30 = vpop.f32.mrf.mxu1 }
 0x322   :  { %4639 = vst [vmem:[%s7413_s10 + $0x30] sm:$0xff] %v6681_v28  ;;  %v6688_v31 = vadd.f32 %v6643_v54, %v1612_v30  ;;  %v1761_v61 = vmul.f32 0.5, %v6681_v28 }
 0x323   :  { %v5539_v59 = vpop.eup %5538  ;;  %v5185_v42 = vpop.f32.mrf.mxu1 }
 0x324   :  { %v1759_v23 = vmul.f32 0.5, %v6688_v31  ;;  %4637 = vst [vmem:[%s7413_s10 + $0x20] sm:$0xff] %v6688_v31  ;;  %v6697_v18 = vadd.f32 %v5185_v42, %v6643_v54  ;;  %1887 = vrot.lane.b32.xlu1 %v5539_v59, %s6209_s4  ;;  %v1799_v26 = vmul.f32 1.442695, %v1761_v61 }
 0x325   :  { %v5541_v0 = vpop.eup %5540  ;;  %v1615_v2 = vpop.f32.mrf.mxu1 }
 0x326   :  { %v1795_v3 = vmul.f32 1.442695, %v1759_v23  ;;  %4640 = vst [vmem:[%s7413_s10 + $0x38] sm:$0xff] %v6697_v18  ;;  %v6705_v47 = vadd.f32 %v6643_v54, %v1615_v2  ;;  %1883 = vrot.lane.b32.xlu0 %v5541_v0, %s6209_s4  ;;  %v1762_v38 = vmul.f32 0.5, %v6697_v18 }
 0x327   :  { %v5543_v41 = vpop.eup %5542 }
 0x328   :  { %5546 = vpow2.f32 %v1795_v3  ;;  %v1760_v34 = vmul.f32 0.5, %v6705_v47  ;;  %4638 = vst [vmem:[%s7413_s10 + $0x28] sm:$0xff] %v6705_v47  ;;  %1889 = vrot.lane.b32.xlu1 %v5543_v41, %s6209_s4  ;;  %v1801_v63 = vmul.f32 1.442695, %v1762_v38 }
 0x329   :  { %v5545_v33 = vpop.eup %5544  ;;  %5548 = vpow2.f32 %v1799_v26 }
 0x32a   :  { %v1797_v24 = vmul.f32 1.442695, %v1760_v34  ;;  %1885 = vrot.lane.b32.xlu0 %v5545_v33, %s6209_s4 }
 0x32c   :  { %5550 = vpow2.f32 %v1797_v24 }
 0x32d   :  { %5552 = vpow2.f32 %v1801_v63 }
 0x32f   :  { %v5188_v6 = vpop.f32.mrf.mxu1 }
 0x330   :  { %v6717_v37 = vadd.f32 %v5188_v6, %v6643_v54 }
 0x331   :  { %v1628_v39 = vpop.f32.mrf.mxu1 }
 0x332   :  { %4643 = vst [vmem:[%s7413_s10 + $0x50] sm:$0xff] %v6717_v37  ;;  %v6724_v40 = vadd.f32 %v6643_v54, %v1628_v39  ;;  %v1765_v9 = vmul.f32 0.5, %v6717_v37 }
 0x333   :  { %v5189_v13 = vpop.f32.mrf.mxu1 }
 0x334   :  { %v1763_v12 = vmul.f32 0.5, %v6724_v40  ;;  %4641 = vst [vmem:[%s7413_s10 + $0x40] sm:$0xff] %v6724_v40  ;;  %v6733_v50 = vadd.f32 %v5189_v13, %v6643_v54  ;;  %v1807_v1 = vmul.f32 1.442695, %v1765_v9 }
 0x335   :  { %v5547_v4 = vpop.eup %5546  ;;  %v1631_v7 = vpop.f32.mrf.mxu1 }
 0x336   :  { %v1803_v51 = vmul.f32 1.442695, %v1763_v12  ;;  %4644 = vst [vmem:[%s7413_s10 + $0x58] sm:$0xff] %v6733_v50  ;;  %v6740_v56 = vadd.f32 %v6643_v54, %v1631_v7  ;;  %1891 = vrot.lane.b32.xlu0 %v5547_v4, %s6209_s4  ;;  %v5549_v8 = vpop.eup %5548  ;;  %v1766_v36 = vmul.f32 0.5, %v6733_v50 }
 0x338   :  { %5554 = vpow2.f32 %v1803_v51  ;;  %v1764_v43 = vmul.f32 0.5, %v6740_v56  ;;  %4642 = vst [vmem:[%s7413_s10 + $0x48] sm:$0xff] %v6740_v56  ;;  %v1809_v11 = vmul.f32 1.442695, %v1766_v36 }
 0x339   :  { %v5551_v21 = vpop.eup %5550  ;;  %5556 = vpow2.f32 %v1807_v1 }
 0x33a   :  { %v1805_v16 = vmul.f32 1.442695, %v1764_v43  ;;  %1893 = vrot.lane.b32.xlu1 %v5551_v21, %s6209_s4  ;;  %1895 = vrot.lane.b32.xlu0 %v5549_v8, %s6209_s4  ;;  %v5553_v45 = vpop.eup %5552 }
 0x33c   :  { %5558 = vpow2.f32 %v1805_v16 }
 0x33d   :  { %5560 = vpow2.f32 %v1809_v11 }
 0x33e   :  { %1897 = vrot.lane.b32.xlu1 %v5553_v45, %s6209_s4 }
 0x33f   :  { %v5192_v46 = vpop.f32.mrf.mxu1 }
 0x340   :  { %v6753_v48 = vadd.f32 %v5192_v46, %v6643_v54 }
 0x341   :  { %v1644_v35 = vpop.f32.mrf.mxu1 }
 0x342   :  { %4647 = vst [vmem:[%s7413_s10 + $0x70] sm:$0xff] %v6753_v48  ;;  %v6760_v49 = vadd.f32 %v6643_v54, %v1644_v35  ;;  %v1769_v32 = vmul.f32 0.5, %v6753_v48 }
 0x343   :  { %v5193_v22 = vpop.f32.mrf.mxu1 }
 0x344   :  { %v1767_v27 = vmul.f32 0.5, %v6760_v49  ;;  %4645 = vst [vmem:[%s7413_s10 + $0x60] sm:$0xff] %v6760_v49  ;;  %v6769_v15 = vadd.f32 %v5193_v22, %v6643_v54  ;;  %v1815_v57 = vmul.f32 1.442695, %v1769_v32 }
 0x345   :  { %v5555_v52 = vpop.eup %5554  ;;  %v1647_v17 = vpop.f32.mrf.mxu1 }
 0x346   :  { %v1811_v58 = vmul.f32 1.442695, %v1767_v27  ;;  %4648 = vst [vmem:[%s7413_s10 + $0x78] sm:$0xff] %v6769_v15  ;;  %v6776_v20 = vadd.f32 %v6643_v54, %v1647_v17  ;;  %1899 = vrot.lane.b32.xlu0 %v5555_v52, %s6209_s4  ;;  %v5557_v10 = vpop.eup %5556  ;;  %v1770_v14 = vmul.f32 0.5, %v6769_v15 }
 0x348   :  { %5562 = vpow2.f32 %v1811_v58  ;;  %v1768_v25 = vmul.f32 0.5, %v6776_v20  ;;  %4646 = vst [vmem:[%s7413_s10 + $0x68] sm:$0xff] %v6776_v20  ;;  %v1817_v60 = vmul.f32 1.442695, %v1770_v14 }
 0x349   :  { %v5559_v29 = vpop.eup %5558  ;;  %5564 = vpow2.f32 %v1815_v57 }
 0x34a   :  { %v1813_v62 = vmul.f32 1.442695, %v1768_v25  ;;  %1901 = vrot.lane.b32.xlu1 %v5559_v29, %s6209_s4  ;;  %1903 = vrot.lane.b32.xlu0 %v5557_v10, %s6209_s4  ;;  %v5561_v5 = vpop.eup %5560 }
 0x34c   :  { %5566 = vpow2.f32 %v1813_v62 }
 0x34d   :  { %5568 = vpow2.f32 %v1817_v60 }
 0x34e   :  { %1905 = vrot.lane.b32.xlu1 %v5561_v5, %s6209_s4 }
 0x34f   :  { %v5196_v30 = vpop.f32.mrf.mxu1 }
 0x350   :  { %v6789_v59 = vadd.f32 %v5196_v30, %v6643_v54 }
 0x351   :  { %v1660_v61 = vpop.f32.mrf.mxu1 }
 0x352   :  { %4651 = vst [vmem:[%s7413_s10 + $0x90] sm:$0xff] %v6789_v59  ;;  %v6796_v42 = vadd.f32 %v6643_v54, %v1660_v61  ;;  %v1773_v23 = vmul.f32 0.5, %v6789_v59 }
 0x353   :  { %v5197_v0 = vpop.f32.mrf.mxu1 }
 0x354   :  { %v1771_v2 = vmul.f32 0.5, %v6796_v42  ;;  %4649 = vst [vmem:[%s7413_s10 + $0x80] sm:$0xff] %v6796_v42  ;;  %v6805_v3 = vadd.f32 %v5197_v0, %v6643_v54  ;;  %v1823_v33 = vmul.f32 1.442695, %v1773_v23  ;;  %v5418_v0 = vld [vmem:[%s7409_s6 + $0x70] ss:$8 sps:$4 sm:$0xff]  }
 0x355   :  { %v5563_v41 = vpop.eup %5562  ;;  %v1663_v26 = vpop.f32.mrf.mxu1 }
 0x356   :  { %v1819_v38 = vmul.f32 1.442695, %v1771_v2  ;;  %4652 = vst [vmem:[%s7413_s10 + $0x98] sm:$0xff] %v6805_v3  ;;  %v6812_v34 = vadd.f32 %v6643_v54, %v1663_v26  ;;  %1907 = vrot.lane.b32.xlu0 %v5563_v41, %s6209_s4  ;;  %v5565_v24 = vpop.eup %5564  ;;  %v1774_v63 = vmul.f32 0.5, %v6805_v3  ;;  %v5420_v2 = vld [vmem:[%s7409_s6 + $0x74] ss:$8 sps:$4 sm:$0xff]  }
 0x357   :  { %2464 = vmatprep.subr.bf16.mxu0 %v5420_v2  ;;  %v5429_v2 = vld [vmem:[%s7409_s6 + $0x44] ss:$8 sps:$4 sm:$0xff]  }
 0x358   :  { %5570 = vpow2.f32 %v1819_v38  ;;  %v1772_v6 = vmul.f32 0.5, %v6812_v34  ;;  %4650 = vst [vmem:[%s7413_s10 + $0x88] sm:$0xff] %v6812_v34  ;;  %v1825_v13 = vmul.f32 1.442695, %v1774_v63  ;;  %2465 = vmatpush1.bf16.msra.mxu0 %v5418_v0 }
 0x359   :  { %v5567_v39 = vpop.eup %5566  ;;  %5572 = vpow2.f32 %v1823_v33 }
 0x35a   :  { %v1821_v9 = vmul.f32 1.442695, %v1772_v6  ;;  %1909 = vrot.lane.b32.xlu1 %v5567_v39, %s6209_s4  ;;  %1911 = vrot.lane.b32.xlu0 %v5565_v24, %s6209_s4  ;;  %v5569_v12 = vpop.eup %5568 }
 0x35c   :  { %5574 = vpow2.f32 %v1821_v9 }
 0x35d   :  { %5576 = vpow2.f32 %v1825_v13 }
 0x35e   :  { %1913 = vrot.lane.b32.xlu1 %v5569_v12, %s6209_s4 }
 0x35f   :  { %v5200_v4 = vpop.f32.mrf.mxu1 }
 0x360   :  { %v6825_v7 = vadd.f32 %v5200_v4, %v6643_v54 }
 0x361   :  { %v1676_v51 = vpop.f32.mrf.mxu1 }
 0x362   :  { %4655 = vst [vmem:[%s7413_s10 + $0xb0] sm:$0xff] %v6825_v7  ;;  %v6832_v1 = vadd.f32 %v6643_v54, %v1676_v51  ;;  %v1777_v8 = vmul.f32 0.5, %v6825_v7 }
 0x363   :  { %v5201_v36 = vpop.f32.mrf.mxu1 }
 0x364   :  { %v1775_v43 = vmul.f32 0.5, %v6832_v1  ;;  %4653 = vst [vmem:[%s7413_s10 + $0xa0] sm:$0xff] %v6832_v1  ;;  %v6841_v21 = vadd.f32 %v5201_v36, %v6643_v54  ;;  %v1831_v35 = vmul.f32 1.442695, %v1777_v8 }
 0x365   :  { %v5571_v16 = vpop.eup %5570  ;;  %v1679_v11 = vpop.f32.mrf.mxu1 }
 0x366   :  { %v1827_v45 = vmul.f32 1.442695, %v1775_v43  ;;  %4656 = vst [vmem:[%s7413_s10 + $0xb8] sm:$0xff] %v6841_v21  ;;  %v6848_v46 = vadd.f32 %v6643_v54, %v1679_v11  ;;  %1915 = vrot.lane.b32.xlu0 %v5571_v16, %s6209_s4  ;;  %v5573_v32 = vpop.eup %5572  ;;  %v1778_v22 = vmul.f32 0.5, %v6841_v21 }
 0x368   :  { %5578 = vpow2.f32 %v1827_v45  ;;  %v1776_v27 = vmul.f32 0.5, %v6848_v46  ;;  %4654 = vst [vmem:[%s7413_s10 + $0xa8] sm:$0xff] %v6848_v46  ;;  %v1833_v58 = vmul.f32 1.442695, %v1778_v22  ;;  %v5423_v22 = vld [vmem:[%s7409_s6 + $0x64] ss:$8 sps:$4 sm:$0xff]  }
 0x369   :  { %v5575_v52 = vpop.eup %5574  ;;  %5580 = vpow2.f32 %v1831_v35  ;;  %2466 = vmatprep.subr.bf16.mxu0 %v5423_v22  ;;  %v5435_v22 = vld [vmem:[%s7409_s6 + $0x24] ss:$8 sps:$4 sm:$0xff]  }
 0x36a   :  { %v1829_v17 = vmul.f32 1.442695, %v1776_v27  ;;  %1917 = vrot.lane.b32.xlu1 %v5575_v52, %s6209_s4  ;;  %1919 = vrot.lane.b32.xlu0 %v5573_v32, %s6209_s4  ;;  %v5577_v57 = vpop.eup %5576  ;;  %v5421_v32 = vld [vmem:[%s7409_s6 + $0x60] ss:$8 sps:$4 sm:$0xff]  }
 0x36b   :  { %2467 = vmatpush1.bf16.msra.mxu0 %v5421_v32 }
 0x36c   :  { %5582 = vpow2.f32 %v1829_v17 }
 0x36d   :  { %5584 = vpow2.f32 %v1833_v58 }
 0x36e   :  { %1921 = vrot.lane.b32.xlu1 %v5577_v57, %s6209_s4 }
 0x36f   :  { %v5204_v10 = vpop.f32.mrf.mxu1 }
 0x370   :  { %v6861_v14 = vadd.f32 %v5204_v10, %v6643_v54 }
 0x371   :  { %v1692_v25 = vpop.f32.mrf.mxu1 }
 0x372   :  { %4659 = vst [vmem:[%s7413_s10 + $0xd0] sm:$0xff] %v6861_v14  ;;  %v6868_v29 = vadd.f32 %v6643_v54, %v1692_v25  ;;  %v1781_v62 = vmul.f32 0.5, %v6861_v14 }
 0x373   :  { %v5205_v60 = vpop.f32.mrf.mxu1 }
 0x374   :  { %v1779_v5 = vmul.f32 0.5, %v6868_v29  ;;  %4657 = vst [vmem:[%s7413_s10 + $0xc0] sm:$0xff] %v6868_v29  ;;  %v6877_v30 = vadd.f32 %v5205_v60, %v6643_v54  ;;  %v1839_v38 = vmul.f32 1.442695, %v1781_v62 }
 0x375   :  { %v5579_v61 = vpop.eup %5578  ;;  %v1695_v23 = vpop.f32.mrf.mxu1 }
 0x376   :  { %v1835_v41 = vmul.f32 1.442695, %v1779_v5  ;;  %4660 = vst [vmem:[%s7413_s10 + $0xd8] sm:$0xff] %v6877_v30  ;;  %v6890_v26 = vadd.f32 %v6643_v54, %v1695_v23  ;;  %1923 = vrot.lane.b32.xlu0 %v5579_v61, %s6209_s4  ;;  %v5581_v33 = vpop.eup %5580  ;;  %v1782_v24 = vmul.f32 0.5, %v6877_v30  ;;  %v5424_v61 = vld [vmem:[%s7409_s6 + $0x50] ss:$8 sps:$4 sm:$0xff]  }
 0x377   :  { %v5426_v23 = vld [vmem:[%s7409_s6 + $0x54] ss:$8 sps:$4 sm:$0xff]  }
 0x378   :  { %5586 = vpow2.f32 %v1835_v41  ;;  %v1780_v63 = vmul.f32 0.5, %v6890_v26  ;;  %4658 = vst [vmem:[%s7413_s10 + $0xc8] sm:$0xff] %v6890_v26  ;;  %v1841_v9 = vmul.f32 1.442695, %v1782_v24  ;;  %2468 = vmatprep.subr.bf16.mxu0 %v5426_v23  ;;  %v1726_v24 = vld [vmem:[%s7404_s1 + $0x18] sm:$0xff] }
 0x379   :  { %v5583_v6 = vpop.eup %5582  ;;  %5588 = vpow2.f32 %v1839_v38  ;;  %v1723_v38 = vld [vmem:[%s7404_s1] sm:$0xff]  ;;  %2469 = vmatpush1.bf16.msra.mxu0 %v5424_v61  ;;  %v1729_v61 = vld [vmem:[%s7404_s1 + $0x30] sm:$0xff] }
 0x37a   :  { %v1837_v39 = vmul.f32 1.442695, %v1780_v63  ;;  %1925 = vrot.lane.b32.xlu1 %v5583_v6, %s6209_s4  ;;  %1927 = vrot.lane.b32.xlu0 %v5581_v33, %s6209_s4  ;;  %v5585_v13 = vpop.eup %5584  ;;  %v5427_v63 = vld [vmem:[%s7409_s6 + $0x40] ss:$8 sps:$4 sm:$0xff]  }
 0x37b   :  { %2470 = vmatprep.subr.bf16.mxu0 %v5429_v2  ;;  %v1730_v2 = vld [vmem:[%s7404_s1 + $0x38] sm:$0xff] }
 0x37c   :  { %5590 = vpow2.f32 %v1837_v39  ;;  %v1725_v39 = vld [vmem:[%s7404_s1 + $0x10] sm:$0xff] }
 0x37d   :  { %5592 = vpow2.f32 %v1841_v9  ;;  %v5432_v9 = vld [vmem:[%s7409_s6 + $0x34] ss:$8 sps:$4 sm:$0xff]   ;;  %2471 = vmatpush1.bf16.msra.mxu0 %v5427_v63 }
 0x37e   :  { %1929 = vrot.lane.b32.xlu1 %v5585_v13, %s6209_s4  ;;  %2472 = vmatprep.subr.bf16.mxu0 %v5432_v9 }
 0x37f   :  { %v5208_v12 = vpop.f32.mrf.mxu1 }
 0x380   :  { %v6903_v4 = vadd.f32 %v5208_v12, %v6643_v54  ;;  %v1724_v12 = vld [vmem:[%s7404_s1 + $0x8] sm:$0xff] }
 0x381   :  { %v1708_v51 = vpop.f32.mrf.mxu1 }
 0x382   :  { %4663 = vst [vmem:[%s7413_s10 + $0xf0] sm:$0xff] %v6903_v4  ;;  %v6910_v8 = vadd.f32 %v6643_v54, %v1708_v51  ;;  %v1785_v36 = vmul.f32 0.5, %v6903_v4 }
 0x383   :  { %v5209_v43 = vpop.f32.mrf.mxu1 }
 0x384   :  { %v1783_v16 = vmul.f32 0.5, %v6910_v8  ;;  %4661 = vst [vmem:[%s7413_s10 + $0xe0] sm:$0xff] %v6910_v8  ;;  %v6919_v11 = vadd.f32 %v5209_v43, %v6643_v54  ;;  %v1847_v17 = vmul.f32 1.442695, %v1785_v36 }
 0x385   :  { %v5587_v45 = vpop.eup %5586  ;;  %v1711_v35 = vpop.f32.mrf.mxu1 }
 0x386   :  { %v1843_v27 = vmul.f32 1.442695, %v1783_v16  ;;  %4664 = vst [vmem:[%s7413_s10 + $0xf8] sm:$0xff] %v6919_v11  ;;  %v6932_v52 = vadd.f32 %v6643_v54, %v1711_v35  ;;  %1931 = vrot.lane.b32.xlu0 %v5587_v45, %s6209_s4  ;;  %v5589_v58 = vpop.eup %5588  ;;  %v1786_v57 = vmul.f32 0.5, %v6919_v11  ;;  %v5430_v45 = vld [vmem:[%s7409_s6 + $0x30] ss:$8 sps:$4 sm:$0xff]  }
 0x387   :  { %2473 = vmatpush1.bf16.msra.mxu0 %v5430_v45 }
 0x388   :  { %5594 = vpow2.f32 %v1843_v27  ;;  %v1784_v10 = vmul.f32 0.5, %v6932_v52  ;;  %4662 = vst [vmem:[%s7413_s10 + $0xe8] sm:$0xff] %v6932_v52  ;;  %v1849_v54 = vmul.f32 1.442695, %v1786_v57  ;;  %2474 = vmatprep.subr.bf16.mxu0 %v5435_v22 }
 0x389   :  { %v5591_v25 = vpop.eup %5590  ;;  %5596 = vpow2.f32 %v1847_v17 }
 0x38a   :  { %v1845_v62 = vmul.f32 1.442695, %v1784_v10  ;;  %1933 = vrot.lane.b32.xlu1 %v5591_v25, %s6209_s4  ;;  %1935 = vrot.lane.b32.xlu0 %v5589_v58, %s6209_s4  ;;  %v5593_v60 = vpop.eup %5592  ;;  %v5433_v10 = vld [vmem:[%s7409_s6 + $0x20] ss:$8 sps:$4 sm:$0xff]  }
 0x38b   :  { %2475 = vmatpush1.bf16.msra.mxu0 %v5433_v10 }
 0x38c   :  { %5598 = vpow2.f32 %v1845_v62 }
 0x38d   :  { %5600 = vpow2.f32 %v1849_v54  ;;  %v1728_v54 = vld [vmem:[%s7404_s1 + $0x28] sm:$0xff] }
 0x38e   :  { %1937 = vrot.lane.b32.xlu1 %v5593_v60, %s6209_s4 }
 0x395   :  { %v5595_v5 = vpop.eup %5594 }
 0x396   :  { %v1888_v0 = vpop.permute.xlu1 %1887  ;;  %1939 = vrot.lane.b32.xlu0 %v5595_v5, %s6209_s4  ;;  %v5597_v41 = vpop.eup %5596 }
 0x397   :  { %v1981_v43 = vmul.f32 %v1888_v0, %v1725_v39 }
 0x398   :  { %v1884_v33 = vpop.permute.xlu0 %1883 }
 0x399   :  { %v5599_v6 = vpop.eup %5598  ;;  %v1979_v51 = vmul.f32 %v1884_v33, %v1723_v38  ;;  %v2013_v57 = vadd.f32 %v1981_v43, %v6646_v53  ;;  %v5436_v53 = vld [vmem:[%s7409_s6 + $0x10] ss:$8 sps:$4 sm:$0xff]  }
 0x39a   :  { %v1890_v13 = vpop.permute.xlu1 %1889  ;;  %1941 = vrot.lane.b32.xlu1 %v5599_v6, %s6209_s4  ;;  %1943 = vrot.lane.b32.xlu0 %v5597_v41, %s6209_s4  ;;  %v5601_v35 = vpop.eup %5600 }
 0x39b   :  { %v1982_v36 = vmul.f32 %v1890_v13, %v1726_v24  ;;  %v2011_v17 = vadd.f32 %v1979_v51, %v6654_v44  ;;  %v1727_v44 = vld [vmem:[%s7404_s1 + $0x20] sm:$0xff] }
 0x39c   :  { %v1886_v16 = vpop.permute.xlu0 %1885 }
 0x39d   :  { %v1980_v32 = vmul.f32 %v1886_v16, %v1724_v12  ;;  %v2014_v27 = vadd.f32 %v1982_v36, %v6662_v55  ;;  %v5438_v55 = vld [vmem:[%s7409_s6 + $0x14] ss:$8 sps:$4 sm:$0xff]   ;;  %v1731_v12 = vld [vmem:[%s7404_s1 + $0x40] sm:$0xff] }
 0x39e   :  { %1945 = vrot.lane.b32.xlu1 %v5601_v35, %s6209_s4  ;;  %2476 = vmatprep.subr.bf16.mxu0 %v5438_v55  ;;  %v1734_v16 = vld [vmem:[%s7404_s1 + $0x58] sm:$0xff] }
 0x39f   :  { %v2012_v58 = vadd.f32 %v1980_v32, %v6670_v19  ;;  %v2044_v62 = vpack.c.bf16 %v2014_v27, %v2013_v57  ;;  %2477 = vmatpush1.bf16.msra.mxu0 %v5436_v53 }
 0x3a1   :  { %v2043_v25 = vpack.c.bf16 %v2012_v58, %v2011_v17 }
 0x3a3   :  { %5218 = vmatprep.mubr.msk.bf16.mxu1 %vm2098_vm0, %v2043_v25  ;;  %v1735_v25 = vld [vmem:[%s7404_s1 + $0x60] sm:$0xff] }
 0x3a4   :  { %5219 = vmatmul.mubr.msk.bf16.vlgmr.msra.gmra.mxu1 %vm2098_vm0, %v2044_v62 }
 0x3a8   :  { %v1892_v19 = vpop.permute.xlu0 %1891 }
 0x3a9   :  { %v1983_v60 = vmul.f32 %v1892_v19, %v1727_v44  ;;  %v1738_v44 = vld [vmem:[%s7404_s1 + $0x78] sm:$0xff] }
 0x3ab   :  { %v2015_v41 = vadd.f32 %v1983_v60, %v6688_v31 }
 0x3ac   :  { %v1894_v5 = vpop.permute.xlu1 %1893  ;;  %v1896_v23 = vpop.permute.xlu0 %1895 }
 0x3ad   :  { %v1984_v0 = vmul.f32 %v1894_v5, %v1728_v54  ;;  %v1985_v33 = vmul.f32 %v1896_v23, %v1729_v61 }
 0x3af   :  { %v2016_v38 = vadd.f32 %v1984_v0, %v6705_v47  ;;  %v2017_v39 = vadd.f32 %v1985_v33, %v6681_v28  ;;  %v1732_v47 = vld [vmem:[%s7404_s1 + $0x48] sm:$0xff]  ;;  %v1733_v28 = vld [vmem:[%s7404_s1 + $0x50] sm:$0xff] }
 0x3b0   :  { %v1898_v24 = vpop.permute.xlu1 %1897 }
 0x3b1   :  { %v2045_v63 = vpack.c.bf16 %v2016_v38, %v2015_v41  ;;  %v1986_v6 = vmul.f32 %v1898_v24, %v1730_v2  ;;  %v1739_v38 = vld [vmem:[%s7404_s1 + $0x80] sm:$0xff] }
 0x3b3   :  { %v2018_v9 = vadd.f32 %v1986_v6, %v6697_v18  ;;  %5222 = vmatprep.mubr.msk.bf16.mxu1 %vm2098_vm0, %v2045_v63  ;;  %v1742_v6 = vld [vmem:[%s7404_s1 + $0x98] sm:$0xff] }
 0x3b5   :  { %v2046_v13 = vpack.c.bf16 %v2018_v9, %v2017_v39 }
 0x3b7   :  { %5223 = vmatmul.mubr.msk.bf16.gmra.mxu1 %vm2098_vm0, %v2046_v13 }
 0x3b8   :  { %v1900_v31 = vpop.permute.xlu0 %1899 }
 0x3b9   :  { %v1987_v51 = vmul.f32 %v1900_v31, %v1731_v12 }
 0x3bb   :  { %v2019_v45 = vadd.f32 %v1987_v51, %v6724_v40 }
 0x3bc   :  { %v1902_v36 = vpop.permute.xlu1 %1901  ;;  %v1904_v18 = vpop.permute.xlu0 %1903 }
 0x3bd   :  { %v1988_v43 = vmul.f32 %v1902_v36, %v1732_v47  ;;  %v1989_v32 = vmul.f32 %v1904_v18, %v1733_v28  ;;  %v5439_v18 = vld [vmem:[%s7409_s6] ss:$8 sps:$4 sm:$0xff]  }
 0x3bf   :  { %v2020_v35 = vadd.f32 %v1988_v43, %v6740_v56  ;;  %v2021_v58 = vadd.f32 %v1989_v32, %v6717_v37  ;;  %v1736_v56 = vld [vmem:[%s7404_s1 + $0x68] sm:$0xff]  ;;  %v1737_v37 = vld [vmem:[%s7404_s1 + $0x70] sm:$0xff] }
 0x3c0   :  { %v1906_v22 = vpop.permute.xlu1 %1905 }
 0x3c1   :  { %v2047_v27 = vpack.c.bf16 %v2020_v35, %v2019_v45  ;;  %v1990_v17 = vmul.f32 %v1906_v22, %v1734_v16  ;;  %v1745_v45 = vld [vmem:[%s7404_s1 + $0xb0] sm:$0xff]  ;;  %v1746_v22 = vld [vmem:[%s7404_s1 + $0xb8] sm:$0xff] }
 0x3c3   :  { %v2022_v57 = vadd.f32 %v1990_v17, %v6733_v50  ;;  %5226 = vmatprep.mubr.msk.bf16.mxu1 %vm2098_vm0, %v2047_v27 }
 0x3c5   :  { %v2048_v10 = vpack.c.bf16 %v2022_v57, %v2021_v58 }
 0x3c7   :  { %5227 = vmatmul.mubr.msk.bf16.gmra.mxu1 %vm2098_vm0, %v2048_v10  ;;  %v6210_v10 = vmov 0  }
 0x3c8   :  { %v1908_v40 = vpop.permute.xlu0 %1907  ;;  %2496 = vmatprep.mubr.bf16.mxu0 %v6210_v10 }
 0x3c9   :  { %v1991_v55 = vmul.f32 %v1908_v40, %v1735_v25 }
 0x3cb   :  { %v2023_v19 = vadd.f32 %v1991_v55, %v6760_v49 }
 0x3cc   :  { %v1910_v62 = vpop.permute.xlu1 %1909  ;;  %v1912_v50 = vpop.permute.xlu0 %1911 }
 0x3cd   :  { %v1992_v53 = vmul.f32 %v1910_v62, %v1736_v56  ;;  %v1993_v60 = vmul.f32 %v1912_v50, %v1737_v37  ;;  %v1748_v37 = vld [vmem:[%s7404_s1 + $0xc8] sm:$0xff] }
 0x3cf   :  { %v2024_v54 = vadd.f32 %v1992_v53, %v6776_v20  ;;  %v2025_v0 = vadd.f32 %v1993_v60, %v6753_v48  ;;  %v1740_v20 = vld [vmem:[%s7404_s1 + $0x88] sm:$0xff]  ;;  %v1741_v48 = vld [vmem:[%s7404_s1 + $0x90] sm:$0xff] }
 0x3d0   :  { %v1914_v5 = vpop.permute.xlu1 %1913 }
 0x3d1   :  { %v2049_v61 = vpack.c.bf16 %v2024_v54, %v2023_v19  ;;  %v1994_v23 = vmul.f32 %v1914_v5, %v1738_v44  ;;  %v1750_v19 = vld [vmem:[%s7404_s1 + $0xd8] sm:$0xff] }
 0x3d3   :  { %v2026_v2 = vadd.f32 %v1994_v23, %v6769_v15  ;;  %5230 = vmatprep.mubr.msk.bf16.mxu1 %vm2098_vm0, %v2049_v61 }
 0x3d5   :  { %v2050_v41 = vpack.c.bf16 %v2026_v2, %v2025_v0 }
 0x3d7   :  { %5231 = vmatmul.mubr.msk.bf16.gmra.mxu1 %vm2098_vm0, %v2050_v41 }
 0x3d8   :  { %v1916_v49 = vpop.permute.xlu0 %1915 }
 0x3d9   :  { %v1995_v33 = vmul.f32 %v1916_v49, %v1739_v38  ;;  %v1751_v49 = vld [vmem:[%s7404_s1 + $0xe0] sm:$0xff] }
 0x3db   :  { %v2027_v39 = vadd.f32 %v1995_v33, %v6796_v42  ;;  %v5441_v42 = vld [vmem:[%s7409_s6 + $0x4] ss:$8 sps:$4 sm:$0xff]  }
 0x3dc   :  { %v1918_v24 = vpop.permute.xlu1 %1917  ;;  %v1920_v15 = vpop.permute.xlu0 %1919  ;;  %2478 = vmatprep.subr.bf16.mxu0 %v5441_v42 }
 0x3dd   :  { %v1996_v63 = vmul.f32 %v1918_v24, %v1740_v20  ;;  %v1997_v13 = vmul.f32 %v1920_v15, %v1741_v48  ;;  %2479 = vmatpush1.bf16.msra.mxu0 %v5439_v18  ;;  %v1754_v48 = vld [vmem:[%s7404_s1 + $0xf8] sm:$0xff] }
 0x3df   :  { %v2028_v9 = vadd.f32 %v1996_v63, %v6812_v34  ;;  %v2029_v51 = vadd.f32 %v1997_v13, %v6789_v59  ;;  %v1743_v34 = vld [vmem:[%s7404_s1 + $0xa0] sm:$0xff] }
 0x3e0   :  { %v1922_v12 = vpop.permute.xlu1 %1921 }
 0x3e1   :  { %v2051_v31 = vpack.c.bf16 %v2028_v9, %v2027_v39  ;;  %v1998_v47 = vmul.f32 %v1922_v12, %v1742_v6 }
 0x3e3   :  { %v2030_v36 = vadd.f32 %v1998_v47, %v6805_v3  ;;  %5234 = vmatprep.mubr.msk.bf16.mxu1 %vm2098_vm0, %v2051_v31  ;;  %v1744_v3 = vld [vmem:[%s7404_s1 + $0xa8] sm:$0xff] }
 0x3e5   :  { %v2052_v28 = vpack.c.bf16 %v2030_v36, %v2029_v51  ;;  %v5444_v51 = vld [vmem:[#allocation7 + $0xec] ss:$16 sps:$4 sm:$0xff]  }
 0x3e6   :  { %3352 = vmatprep.subr.bf16.mxu0 %v5444_v51  ;;  %v5504_v51 = vld [vmem:[#allocation7 + $0x1e4] ss:$16 sps:$4 sm:$0xff]  }
 0x3e7   :  { %5235 = vmatmul.mubr.msk.bf16.gmra.mxu1 %vm2098_vm0, %v2052_v28 }
 0x3e8   :  { %v1924_v59 = vpop.permute.xlu0 %1923 }
 0x3e9   :  { %v1999_v43 = vmul.f32 %v1924_v59, %v1743_v34  ;;  %v5466_v59 = vld [vmem:[#allocation7 + $0xe0] ss:$16 sps:$4 sm:$0xff]  }
 0x3eb   :  { %v2031_v27 = vadd.f32 %v1999_v43, %v6832_v1  ;;  %v1747_v1 = vld [vmem:[%s7404_s1 + $0xc0] sm:$0xff] }
 0x3ec   :  { %v1926_v16 = vpop.permute.xlu1 %1925  ;;  %v1928_v35 = vpop.permute.xlu0 %1927  ;;  %v5468_v43 = vld [vmem:[#allocation7 + $0xe4] ss:$16 sps:$4 sm:$0xff]  }
 0x3ed   :  { %v2000_v32 = vmul.f32 %v1926_v16, %v1744_v3  ;;  %v2001_v58 = vmul.f32 %v1928_v35, %v1745_v45  ;;  %v5442_v3 = vld [vmem:[#allocation7 + $0xe8] ss:$16 sps:$4 sm:$0xff]   ;;  %v5447_v35 = vld [vmem:[#allocation7 + $0xcc] ss:$16 sps:$4 sm:$0xff]   ;;  %3159 = vmatprep.subr.bf16.mxu1 %v5468_v43 }
 0x3ee   :  { %3160 = vmatpush1.bf16.msra.mxu1 %v5466_v59  ;;  %v5480_v59 = vld [vmem:[#allocation7 + $0x1cc] ss:$16 sps:$4 sm:$0xff]  }
 0x3ef   :  { %v2032_v17 = vadd.f32 %v2000_v32, %v6848_v46  ;;  %v2033_v56 = vadd.f32 %v2001_v58, %v6825_v7  ;;  %v1749_v7 = vld [vmem:[%s7404_s1 + $0xd0] sm:$0xff] }
 0x3f0   :  { %v1930_v57 = vpop.permute.xlu1 %1929  ;;  %v5474_v32 = vld [vmem:[#allocation7 + $0xc4] ss:$16 sps:$4 sm:$0xff]  }
 0x3f1   :  { %v2053_v25 = vpack.c.bf16 %v2032_v17, %v2031_v27  ;;  %v2002_v40 = vmul.f32 %v1930_v57, %v1746_v22  ;;  %v5472_v27 = vld [vmem:[#allocation7 + $0xc0] ss:$16 sps:$4 sm:$0xff]   ;;  %v5445_v17 = vld [vmem:[#allocation7 + $0xc8] ss:$16 sps:$4 sm:$0xff]   ;;  %v5477_v58 = vld [vmem:[#allocation7 + $0xa4] ss:$16 sps:$4 sm:$0xff]   ;;  %3161 = vmatprep.subr.bf16.mxu1 %v5474_v32 }
 0x3f2   :  { %3162 = vmatpush1.bf16.msra.mxu1 %v5472_v27  ;;  %v5478_v32 = vld [vmem:[#allocation7 + $0x1c8] ss:$16 sps:$4 sm:$0xff]   ;;  %v5489_v27 = vld [vmem:[#allocation7 + $0x1ac] ss:$16 sps:$4 sm:$0xff]  }
 0x3f3   :  { %v2034_v55 = vadd.f32 %v2002_v40, %v6841_v21  ;;  %5238 = vmatprep.mubr.msk.bf16.mxu1 %vm2098_vm0, %v2053_v25  ;;  %v5450_v25 = vld [vmem:[#allocation7 + $0xac] ss:$16 sps:$4 sm:$0xff]   ;;  %3163 = vmatprep.subr.bf16.mxu1 %v5477_v58  ;;  %v5511_v58 = vld [vmem:[#allocation7 + $0x1a0] ss:$16 sps:$4 sm:$0xff]  }
 0x3f5   :  { %v2054_v62 = vpack.c.bf16 %v2034_v55, %v2033_v56  ;;  %v5475_v56 = vld [vmem:[#allocation7 + $0xa0] ss:$16 sps:$4 sm:$0xff]   ;;  %v5448_v55 = vld [vmem:[#allocation7 + $0xa8] ss:$16 sps:$4 sm:$0xff]  }
 0x3f6   :  { %3164 = vmatpush1.bf16.msra.mxu1 %v5475_v56 }
 0x3f7   :  { %5239 = vmatmul.mubr.msk.bf16.gmra.mxu1 %vm2098_vm0, %v2054_v62 }
 0x3f8   :  { %v1932_v46 = vpop.permute.xlu0 %1931 }
 0x3f9   :  { %v2003_v50 = vmul.f32 %v1932_v46, %v1747_v1  ;;  %v5453_v46 = vld [vmem:[#allocation7 + $0x8c] ss:$16 sps:$4 sm:$0xff]  }
 0x3fb   :  { %v2035_v54 = vadd.f32 %v2003_v50, %v6868_v29 }
 0x3fc   :  { %v1934_v53 = vpop.permute.xlu1 %1933  ;;  %v1936_v21 = vpop.permute.xlu0 %1935 }
 0x3fd   :  { %v2004_v44 = vmul.f32 %v1934_v53, %v1748_v37  ;;  %v2005_v5 = vmul.f32 %v1936_v21, %v1749_v7  ;;  %v5483_v37 = vld [vmem:[#allocation7 + $0x84] ss:$16 sps:$4 sm:$0xff]   ;;  %v5481_v53 = vld [vmem:[#allocation7 + $0x80] ss:$16 sps:$4 sm:$0xff]   ;;  %v5451_v7 = vld [vmem:[#allocation7 + $0x88] ss:$16 sps:$4 sm:$0xff]  }
 0x3fe   :  { %v5486_v21 = vld [vmem:[#allocation7 + $0x64] ss:$16 sps:$4 sm:$0xff]   ;;  %3165 = vmatprep.subr.bf16.mxu1 %v5483_v37 }
 0x3ff   :  { %v2036_v60 = vadd.f32 %v2004_v44, %v6890_v26  ;;  %v2037_v2 = vadd.f32 %v2005_v5, %v6861_v14  ;;  %v1752_v26 = vld [vmem:[%s7404_s1 + $0xe8] sm:$0xff]  ;;  %v1753_v14 = vld [vmem:[%s7404_s1 + $0xf0] sm:$0xff]  ;;  %3166 = vmatpush1.bf16.msra.mxu1 %v5481_v53 }
 0x400   :  { %v1938_v61 = vpop.permute.xlu1 %1937  ;;  %v5484_v5 = vld [vmem:[#allocation7 + $0x60] ss:$16 sps:$4 sm:$0xff]   ;;  %3167 = vmatprep.subr.bf16.mxu1 %v5486_v21  ;;  %v5522_v53 = vld [vmem:[#allocation7 + $0x164] ss:$16 sps:$4 sm:$0xff]   ;;  %v5507_v21 = vld [vmem:[#allocation7 + $0x16c] ss:$16 sps:$4 sm:$0xff]  }
 0x401   :  { %v2055_v23 = vpack.c.bf16 %v2036_v60, %v2035_v54  ;;  %v2006_v0 = vmul.f32 %v1938_v61, %v1750_v19  ;;  %v5456_v19 = vld [vmem:[#allocation7 + $0x6c] ss:$16 sps:$4 sm:$0xff]  }
 0x403   :  { %v2038_v41 = vadd.f32 %v2006_v0, %v6877_v30  ;;  %5242 = vmatprep.mubr.msk.bf16.mxu1 %vm2098_vm0, %v2055_v23  ;;  %v5454_v23 = vld [vmem:[#allocation7 + $0x68] ss:$16 sps:$4 sm:$0xff]   ;;  %v5492_v0 = vld [vmem:[#allocation7 + $0x44] ss:$16 sps:$4 sm:$0xff]   ;;  %3168 = vmatpush1.bf16.msra.mxu1 %v5484_v5 }
 0x404   :  { %3169 = vmatprep.subr.bf16.mxu1 %v5492_v0  ;;  %v5505_v5 = vld [vmem:[#allocation7 + $0x168] ss:$16 sps:$4 sm:$0xff]  }
 0x405   :  { %v2056_v38 = vpack.c.bf16 %v2038_v41, %v2037_v2  ;;  %v5459_v2 = vld [vmem:[#allocation7 + $0x4c] ss:$16 sps:$4 sm:$0xff]  }
 0x407   :  { %5243 = vmatmul.mubr.msk.bf16.gmra.mxu1 %vm2098_vm0, %v2056_v38 }
 0x408   :  { %v1940_v29 = vpop.permute.xlu0 %1939 }
 0x409   :  { %v2007_v20 = vmul.f32 %v1940_v29, %v1751_v49  ;;  %v5490_v49 = vld [vmem:[#allocation7 + $0x40] ss:$16 sps:$4 sm:$0xff]  }
 0x40a   :  { %3170 = vmatpush1.bf16.msra.mxu1 %v5490_v49 }
 0x40b   :  { %v2039_v15 = vadd.f32 %v2007_v20, %v6910_v8  ;;  %v7132_v8 = vld [vmem:[%s7411_s8 + $0x4] ss:$0 sm:$0xff]  ;;  %v5457_v20 = vld [vmem:[#allocation7 + $0x48] ss:$16 sps:$4 sm:$0xff]  }
 0x40c   :  { %v1942_v33 = vpop.permute.xlu1 %1941  ;;  %v1944_v30 = vpop.permute.xlu0 %1943 }
 0x40d   :  { %v2008_v24 = vmul.f32 %v1942_v33, %v1752_v26  ;;  %v2009_v6 = vmul.f32 %v1944_v30, %v1753_v14  ;;  %v5495_v33 = vld [vmem:[#allocation7 + $0x24] ss:$16 sps:$4 sm:$0xff]   ;;  %v5462_v14 = vld [vmem:[#allocation7 + $0x2c] ss:$16 sps:$4 sm:$0xff]  }
 0x40e   :  { %3171 = vmatprep.subr.bf16.mxu1 %v5495_v33 }
 0x40f   :  { %v2040_v63 = vadd.f32 %v2008_v24, %v6932_v52  ;;  %v2041_v12 = vadd.f32 %v2009_v6, %v6903_v4  ;;  %v5493_v24 = vld [vmem:[#allocation7 + $0x20] ss:$16 sps:$4 sm:$0xff]  }
 0x410   :  { %v1946_v39 = vpop.permute.xlu1 %1945  ;;  %3172 = vmatpush1.bf16.msra.mxu1 %v5493_v24 }
 0x411   :  { %v2057_v9 = vpack.c.bf16 %v2040_v63, %v2039_v15  ;;  %v2010_v13 = vmul.f32 %v1946_v39, %v1754_v48  ;;  %v5460_v15 = vld [vmem:[#allocation7 + $0x28] ss:$16 sps:$4 sm:$0xff]   ;;  %v5501_v63 = vld [vmem:[#allocation7 + $0x4] ss:$16 sps:$4 sm:$0xff]   ;;  %v5465_v39 = vld [vmem:[#allocation7 + $0xc] ss:$16 sps:$4 sm:$0xff]  }
 0x412   :  { %3173 = vmatprep.subr.bf16.mxu1 %v5501_v63 }
 0x413   :  { %v2042_v31 = vadd.f32 %v2010_v13, %v6919_v11  ;;  %5246 = vmatprep.mubr.msk.bf16.mxu1 %vm2098_vm0, %v2057_v9 }
 0x415   :  { %v2058_v47 = vpack.c.bf16 %v2042_v31, %v2041_v12  ;;  %v5499_v12 = vld [vmem:[#allocation7] ss:$16 sps:$4 sm:$0xff]  }
 0x416   :  { %3174 = vmatpush1.bf16.msra.mxu1 %v5499_v12  ;;  %v5526_v12 = vld [vmem:[#allocation7 + $0x140] ss:$16 sps:$4 sm:$0xff]  }
 0x417   :  { %5247 = vmatmul.mubr.msk.bf16.gmra.mxu1 %vm2098_vm0, %v2058_v47  ;;  %v5463_v47 = vld [vmem:[#allocation7 + $0x8] ss:$16 sps:$4 sm:$0xff]   ;;  %3175 = vmatprep.subr.bf16.mxu1 %v5504_v51  ;;  %v5525_v51 = vld [vmem:[#allocation7 + $0x12c] ss:$16 sps:$4 sm:$0xff]  }
 0x464   :  { %v5220_v36 = vpop.f32.mrf.mxu1 }
 0x465   :  { %v2190_v22 = vadd.f32 %v5220_v36, %v7132_v8 }
 0x466   :  { %v2181_v28 = vpop.f32.mrf.mxu1 }
 0x467   :  { %v2182_v18 = vadd.f32 %v7132_v8, %v2181_v28  ;;  %v2310_v40 = vmax.f32 %v2190_v22, 0.0  ;;  %v5471_v28 = vld [vmem:[#allocation7 + $0x1ec] ss:$16 sps:$4 sm:$0xff]   ;;  %v5513_v22 = vld [vmem:[#allocation7 + $0x1a4] ss:$16 sps:$4 sm:$0xff]  }
 0x468   :  { %v5221_v52 = vpop.f32.mrf.mxu1 }
 0x469   :  { %v2308_v42 = vmax.f32 %v2182_v18, 0.0  ;;  %v2193_v16 = vadd.f32 %v5221_v52, %v7132_v8 }
 0x46a   :  { %v2184_v4 = vpop.f32.mrf.mxu1 }
 0x46b   :  { %v2185_v11 = vadd.f32 %v7132_v8, %v2184_v4  ;;  %v2311_v57 = vmax.f32 %v2193_v16, 0.0  ;;  %v5502_v4 = vld [vmem:[#allocation7 + $0x1e0] ss:$16 sps:$4 sm:$0xff]  }
 0x46c   :  { %3176 = vmatpush2.bf16.msra.mxu1 %v5502_v4  ;;  %v5508_v16 = vld [vmem:[#allocation7 + $0x1c0] ss:$16 sps:$4 sm:$0xff]  }
 0x46d   :  { %v2309_v34 = vmax.f32 %v2185_v11, 0.0  ;;  %v2341_v62 = vpack.c.bf16 %v2311_v57, %v2310_v40  ;;  %v5519_v40 = vld [vmem:[#allocation7 + $0x184] ss:$16 sps:$4 sm:$0xff]  }
 0x46f   :  { %v2340_v45 = vpack.c.bf16 %v2309_v34, %v2308_v42  ;;  %v5469_v42 = vld [vmem:[#allocation7 + $0x1e8] ss:$16 sps:$4 sm:$0xff]   ;;  %v5510_v34 = vld [vmem:[#allocation7 + $0x1c4] ss:$16 sps:$4 sm:$0xff]  }
 0x470   :  { %3177 = vmatprep.subr.bf16.mxu1 %v5510_v34  ;;  %v5537_v34 = vld [vmem:[#allocation7 + $0x104] ss:$16 sps:$4 sm:$0xff]  }
 0x471   :  { %2497 = vmatmul.mubr.bf16.vlgmr.msra.gmra.mxu0 %v2340_v45  ;;  %3178 = vmatpush2.bf16.msra.mxu1 %v5508_v16 }
 0x472   :  { %2506 = vmatprep.mubr.bf16.mxu0 %v6210_v10  ;;  %3353 = vmatpush1.bf16.msra.mxu0 %v5442_v3 }
 0x473   :  { %3354 = vmatprep.subr.bf16.mxu0 %v5447_v35  ;;  %3179 = vmatprep.subr.bf16.mxu1 %v5513_v22 }
 0x475   :  { %3180 = vmatpush2.bf16.msra.mxu1 %v5511_v58 }
 0x476   :  { %3355 = vmatpush1.bf16.msra.mxu0 %v5445_v17  ;;  %3181 = vmatprep.subr.bf16.mxu1 %v5519_v40 }
 0x477   :  { %v5224_v1 = vpop.f32.mrf.mxu1  ;;  %3356 = vmatprep.subr.bf16.mxu0 %v5450_v25  ;;  %v5487_v25 = vld [vmem:[#allocation7 + $0x1a8] ss:$16 sps:$4 sm:$0xff]  }
 0x478   :  { %v2206_v30 = vadd.f32 %v5224_v1, %v7132_v8 }
 0x479   :  { %v2197_v50 = vpop.f32.mrf.mxu1  ;;  %2507 = vmatmul.mubr.bf16.gmra.mxu0 %v2341_v62 }
 0x47a   :  { %2516 = vmatprep.mubr.bf16.mxu0 %v6210_v10  ;;  %3357 = vmatpush1.bf16.msra.mxu0 %v5448_v55  ;;  %v2198_v54 = vadd.f32 %v7132_v8, %v2197_v50  ;;  %v2314_v9 = vmax.f32 %v2206_v30, 0.0  ;;  %v5498_v55 = vld [vmem:[#allocation7 + $0x18c] ss:$16 sps:$4 sm:$0xff]   ;;  %v5496_v50 = vld [vmem:[#allocation7 + $0x188] ss:$16 sps:$4 sm:$0xff]  }
 0x47b   :  { %v5225_v44 = vpop.f32.mrf.mxu1  ;;  %3358 = vmatprep.subr.bf16.mxu0 %v5453_v46  ;;  %v5517_v46 = vld [vmem:[#allocation7 + $0x180] ss:$16 sps:$4 sm:$0xff]  }
 0x47c   :  { %v2312_v41 = vmax.f32 %v2198_v54, 0.0  ;;  %v2209_v29 = vadd.f32 %v5225_v44, %v7132_v8  ;;  %3182 = vmatpush2.bf16.msra.mxu1 %v5517_v46  ;;  %v5520_v54 = vld [vmem:[#allocation7 + $0x160] ss:$16 sps:$4 sm:$0xff]  }
 0x47d   :  { %v2200_v60 = vpop.f32.mrf.mxu1  ;;  %3183 = vmatprep.subr.bf16.mxu1 %v5522_v53 }
 0x47e   :  { %v2201_v61 = vadd.f32 %v7132_v8, %v2200_v60  ;;  %3359 = vmatpush1.bf16.msra.mxu0 %v5451_v7  ;;  %v2315_v48 = vmax.f32 %v2209_v29, 0.0 }
 0x47f   :  { %3360 = vmatprep.subr.bf16.mxu0 %v5456_v19 }
 0x480   :  { %v2313_v38 = vmax.f32 %v2201_v61, 0.0  ;;  %v2343_v31 = vpack.c.bf16 %v2315_v48, %v2314_v9  ;;  %v5516_v61 = vld [vmem:[#allocation7 + $0x14c] ss:$16 sps:$4 sm:$0xff]   ;;  %3184 = vmatpush2.bf16.msra.mxu1 %v5520_v54 }
 0x482   :  { %v2342_v26 = vpack.c.bf16 %v2313_v38, %v2312_v41  ;;  %3361 = vmatpush1.bf16.msra.mxu0 %v5454_v23  ;;  %v5514_v38 = vld [vmem:[#allocation7 + $0x148] ss:$16 sps:$4 sm:$0xff]  }
 0x483   :  { %3362 = vmatprep.subr.bf16.mxu0 %v5459_v2 }
 0x484   :  { %2517 = vmatmul.mubr.bf16.gmra.mxu0 %v2342_v26 }
 0x485   :  { %2526 = vmatprep.mubr.bf16.mxu0 %v6210_v10 }
 0x486   :  { %3363 = vmatpush1.bf16.msra.mxu0 %v5457_v20 }
 0x487   :  { %v5228_v6 = vpop.f32.mrf.mxu1  ;;  %3364 = vmatprep.subr.bf16.mxu0 %v5462_v14 }
 0x488   :  { %v2222_v17 = vadd.f32 %v5228_v6, %v7132_v8 }
 0x489   :  { %v2213_v13 = vpop.f32.mrf.mxu1 }
 0x48a   :  { %3365 = vmatpush1.bf16.msra.mxu0 %v5460_v15  ;;  %v2214_v52 = vadd.f32 %v7132_v8, %v2213_v13  ;;  %v2318_v62 = vmax.f32 %v2222_v17, 0.0 }
 0x48b   :  { %v5229_v36 = vpop.f32.mrf.mxu1  ;;  %3366 = vmatprep.subr.bf16.mxu0 %v5465_v39  ;;  %v5528_v39 = vld [vmem:[#allocation7 + $0x144] ss:$16 sps:$4 sm:$0xff]  }
 0x48c   :  { %2527 = vmatmul.mubr.bf16.gmra.mxu0 %v2343_v31  ;;  %v2316_v3 = vmax.f32 %v2214_v52, 0.0  ;;  %v2225_v45 = vadd.f32 %v5229_v36, %v7132_v8  ;;  %3185 = vmatprep.subr.bf16.mxu1 %v5528_v39  ;;  %v5531_v36 = vld [vmem:[#allocation7 + $0x124] ss:$16 sps:$4 sm:$0xff]   ;;  %v5529_v52 = vld [vmem:[#allocation7 + $0x120] ss:$16 sps:$4 sm:$0xff]   ;;  %v7436_v39 = vld [vmem:[#allocation13_spill] sm:$0xff] }
 0x48d   :  { %v2216_v18 = vpop.f32.mrf.mxu1  ;;  %2536 = vmatprep.mubr.bf16.mxu0 %v6210_v10  ;;  %3186 = vmatpush2.bf16.msra.mxu1 %v5526_v12 }
 0x48e   :  { %v2217_v11 = vadd.f32 %v7132_v8, %v2216_v18  ;;  %3367 = vmatpush1.bf16.msra.mxu0 %v5463_v47  ;;  %v2319_v57 = vmax.f32 %v2225_v45, 0.0  ;;  %v5523_v47 = vld [vmem:[#allocation7 + $0x128] ss:$16 sps:$4 sm:$0xff]   ;;  %3187 = vmatprep.subr.bf16.mxu1 %v5531_v36 }
 0x48f   :  { %3368 = vmatprep.subr.bf16.mxu0 %v5471_v28 }
 0x490   :  { %v2317_v43 = vmax.f32 %v2217_v11, 0.0  ;;  %v2345_v37 = vpack.c.bf16 %v2319_v57, %v2318_v62 }
 0x491   :  { %3188 = vmatpush2.bf16.msra.mxu1 %v5529_v52 }
 0x492   :  { %v2344_v35 = vpack.c.bf16 %v2317_v43, %v2316_v3  ;;  %3369 = vmatpush2.bf16.msra.mxu0 %v5469_v42  ;;  %v5534_v42 = vld [vmem:[#allocation7 + $0x10c] ss:$16 sps:$4 sm:$0xff]   ;;  %v5532_v3 = vld [vmem:[#allocation7 + $0x108] ss:$16 sps:$4 sm:$0xff]   ;;  %v5535_v43 = vld [vmem:[#allocation7 + $0x100] ss:$16 sps:$4 sm:$0xff]   ;;  %3189 = vmatprep.subr.bf16.mxu1 %v5537_v34 }
 0x493   :  { %3370 = vmatprep.subr.bf16.mxu0 %v5480_v59 }
 0x494   :  { %2537 = vmatmul.mubr.bf16.gmra.mxu0 %v2344_v35 }
 0x495   :  { %2546 = vmatprep.mubr.bf16.mxu0 %v6210_v10  ;;  %3190 = vmatpush2.bf16.msra.mxu1 %v5535_v43 }
 0x496   :  { %3371 = vmatpush2.bf16.msra.mxu0 %v5478_v32 }
 0x497   :  { %v5232_v56 = vpop.f32.mrf.mxu1  ;;  %3372 = vmatprep.subr.bf16.mxu0 %v5489_v27 }
 0x498   :  { %v2238_v49 = vadd.f32 %v5232_v56, %v7132_v8 }
 0x499   :  { %v2229_v1 = vpop.f32.mrf.mxu1 }
 0x49a   :  { %3373 = vmatpush2.bf16.msra.mxu0 %v5487_v25  ;;  %v2230_v44 = vadd.f32 %v7132_v8, %v2229_v1  ;;  %v2322_v20 = vmax.f32 %v2238_v49, 0.0 }
 0x49b   :  { %v5233_v7 = vpop.f32.mrf.mxu1  ;;  %3374 = vmatprep.subr.bf16.mxu0 %v5498_v55 }
 0x49c   :  { %2547 = vmatmul.mubr.bf16.gmra.mxu0 %v2345_v37  ;;  %v2320_v23 = vmax.f32 %v2230_v44, 0.0  ;;  %v2241_v2 = vadd.f32 %v5233_v7, %v7132_v8 }
 0x49d   :  { %v2232_v19 = vpop.f32.mrf.mxu1  ;;  %2556 = vmatprep.mubr.bf16.mxu0 %v6210_v10 }
 0x49e   :  { %v2233_v60 = vadd.f32 %v7132_v8, %v2232_v19  ;;  %3375 = vmatpush2.bf16.msra.mxu0 %v5496_v50  ;;  %v2323_v29 = vmax.f32 %v2241_v2, 0.0 }
 0x49f   :  { %3376 = vmatprep.subr.bf16.mxu0 %v5507_v21 }
 0x4a0   :  { %v2321_v0 = vmax.f32 %v2233_v60, 0.0  ;;  %v2347_v14 = vpack.c.bf16 %v2323_v29, %v2322_v20 }
 0x4a2   :  { %v2346_v41 = vpack.c.bf16 %v2321_v0, %v2320_v23  ;;  %3377 = vmatpush2.bf16.msra.mxu0 %v5505_v5 }
 0x4a3   :  { %3378 = vmatprep.subr.bf16.mxu0 %v5516_v61 }
 0x4a4   :  { %2557 = vmatmul.mubr.bf16.gmra.mxu0 %v2346_v41 }
 0x4a5   :  { %2566 = vmatprep.mubr.bf16.mxu0 %v6210_v10 }
 0x4a6   :  { %3379 = vmatpush2.bf16.msra.mxu0 %v5514_v38 }
 0x4a7   :  { %v5236_v26 = vpop.f32.mrf.mxu1  ;;  %3380 = vmatprep.subr.bf16.mxu0 %v5525_v51 }
 0x4a8   :  { %v2254_v31 = vadd.f32 %v5236_v26, %v7132_v8 }
 0x4a9   :  { %v2245_v33 = vpop.f32.mrf.mxu1 }
 0x4aa   :  { %v2246_v24 = vadd.f32 %v7132_v8, %v2245_v33  ;;  %3381 = vmatpush2.bf16.msra.mxu0 %v5523_v47  ;;  %v2326_v4 = vmax.f32 %v2254_v31, 0.0 }
 0x4ab   :  { %v5237_v30 = vpop.f32.mrf.mxu1  ;;  %3382 = vmatprep.subr.bf16.mxu0 %v5534_v42 }
 0x4ac   :  { %2567 = vmatmul.mubr.bf16.gmra.mxu0 %v2347_v14  ;;  %v2324_v63 = vmax.f32 %v2246_v24, 0.0  ;;  %v2257_v9 = vadd.f32 %v5237_v30, %v7132_v8 }
 0x4ad   :  { %v2248_v48 = vpop.f32.mrf.mxu1  ;;  %2576 = vmatprep.mubr.bf16.mxu0 %v6210_v10 }
 0x4ae   :  { %v2249_v15 = vadd.f32 %v7132_v8, %v2248_v48  ;;  %v2327_v28 = vmax.f32 %v2257_v9, 0.0  ;;  %3383 = vmatpush2.bf16.msra.mxu0 %v5532_v3  ;;  %v2372_v48 = vld [vmem:[%s7411_s8 + $0x5] sm:$0x3] }
 0x4af   :  { %v7188_v9 = vrot.slane %v2372_v48, %v7436_v39 }
 0x4b0   :  { %v2325_v6 = vmax.f32 %v2249_v15, 0.0  ;;  %v2349_v59 = vpack.c.bf16 %v2327_v28, %v2326_v4 }
 0x4b2   :  { %v2348_v13 = vpack.c.bf16 %v2325_v6, %v2324_v63  ;;  %v7435_v63 = vld [vmem:[#allocation14_spill] sm:$0xff] }
 0x4b3   :  { %v7185_v6 = vrot.slane %v2372_v48, %v7435_v63 }
 0x4b4   :  { %2577 = vmatmul.mubr.bf16.gmra.mxu0 %v2348_v13 }
 0x4b5   :  { %2586 = vmatprep.mubr.bf16.mxu0 %v6210_v10 }
 0x4b7   :  { %v5240_v18 = vpop.f32.mrf.mxu1 }
 0x4b8   :  { %v2270_v57 = vadd.f32 %v5240_v18, %v7132_v8 }
 0x4b9   :  { %v2261_v11 = vpop.f32.mrf.mxu1 }
 0x4ba   :  { %v2262_v45 = vadd.f32 %v7132_v8, %v2261_v11  ;;  %v2330_v56 = vmax.f32 %v2270_v57, 0.0 }
 0x4bb   :  { %v5241_v16 = vpop.f32.mrf.mxu1 }
 0x4bc   :  { %2587 = vmatmul.mubr.bf16.gmra.mxu0 %v2349_v59  ;;  %v2328_v22 = vmax.f32 %v2262_v45, 0.0  ;;  %v2273_v17 = vadd.f32 %v5241_v16, %v7132_v8 }
 0x4bd   :  { %v2264_v35 = vpop.f32.mrf.mxu1  ;;  %2596 = vmatprep.mubr.bf16.mxu0 %v6210_v10 }
 0x4be   :  { %v2265_v32 = vadd.f32 %v7132_v8, %v2264_v35  ;;  %v2331_v25 = vmax.f32 %v2273_v17, 0.0 }
 0x4c0   :  { %v2329_v27 = vmax.f32 %v2265_v32, 0.0  ;;  %v2351_v62 = vpack.c.bf16 %v2331_v25, %v2330_v56 }
 0x4c2   :  { %v2350_v58 = vpack.c.bf16 %v2329_v27, %v2328_v22 }
 0x4c4   :  { %2597 = vmatmul.mubr.bf16.gmra.mxu0 %v2350_v58 }
 0x4c5   :  { %2606 = vmatprep.mubr.bf16.mxu0 %v6210_v10 }
 0x4c7   :  { %v5244_v40 = vpop.f32.mrf.mxu1 }
 0x4c8   :  { %v2286_v19 = vadd.f32 %v5244_v40, %v7132_v8 }
 0x4c9   :  { %v2277_v55 = vpop.f32.mrf.mxu1 }
 0x4ca   :  { %v2278_v46 = vadd.f32 %v7132_v8, %v2277_v55  ;;  %v2334_v5 = vmax.f32 %v2286_v19, 0.0 }
 0x4cb   :  { %v5245_v1 = vpop.f32.mrf.mxu1 }
 0x4cc   :  { %2607 = vmatmul.mubr.bf16.gmra.mxu0 %v2351_v62  ;;  %v2332_v53 = vmax.f32 %v2278_v46, 0.0  ;;  %v2289_v21 = vadd.f32 %v5245_v1, %v7132_v8 }
 0x4cd   :  { %v2280_v37 = vpop.f32.mrf.mxu1  ;;  %2616 = vmatprep.mubr.bf16.mxu0 %v6210_v10 }
 0x4ce   :  { %v2281_v50 = vadd.f32 %v7132_v8, %v2280_v37  ;;  %v2335_v54 = vmax.f32 %v2289_v21, 0.0 }
 0x4d0   :  { %v2333_v7 = vmax.f32 %v2281_v50, 0.0  ;;  %v2353_v23 = vpack.c.bf16 %v2335_v54, %v2334_v5 }
 0x4d2   :  { %v2352_v44 = vpack.c.bf16 %v2333_v7, %v2332_v53 }
 0x4d4   :  { %2617 = vmatmul.mubr.bf16.gmra.mxu0 %v2352_v44 }
 0x4d5   :  { %2626 = vmatprep.mubr.bf16.mxu0 %v6210_v10 }
 0x4d7   :  { %v5248_v60 = vpop.f32.mrf.mxu1 }
 0x4d8   :  { %v2302_v33 = vadd.f32 %v5248_v60, %v7132_v8 }
 0x4d9   :  { %v2293_v61 = vpop.f32.mrf.mxu1 }
 0x4da   :  { %v2294_v2 = vadd.f32 %v7132_v8, %v2293_v61  ;;  %v2338_v30 = vmax.f32 %v2302_v33, 0.0 }
 0x4db   :  { %v5249_v0 = vpop.f32.mrf.mxu1 }
 0x4dc   :  { %2627 = vmatmul.mubr.bf16.gmra.mxu0 %v2353_v23  ;;  %v2336_v49 = vmax.f32 %v2294_v2, 0.0  ;;  %v2305_v26 = vadd.f32 %v5249_v0, %v7132_v8 }
 0x4dd   :  { %v2296_v41 = vpop.f32.mrf.mxu1  ;;  %2636 = vmatprep.mubr.bf16.mxu0 %v6210_v10 }
 0x4de   :  { %v2297_v38 = vadd.f32 %v7132_v8, %v2296_v41  ;;  %v2339_v14 = vmax.f32 %v2305_v26, 0.0 }
 0x4e0   :  { %v2337_v29 = vmax.f32 %v2297_v38, 0.0  ;;  %v2355_v24 = vpack.c.bf16 %v2339_v14, %v2338_v30 }
 0x4e2   :  { %v2354_v20 = vpack.c.bf16 %v2337_v29, %v2336_v49 }
 0x4e4   :  { %2637 = vmatmul.mubr.bf16.gmra.mxu0 %v2354_v20 }
 0x4e5   :  { %2646 = vmatprep.mubr.bf16.mxu0 %v6210_v10 }
 0x4ec   :  { %2647 = vmatmul.mubr.bf16.gmra.mxu0 %v2355_v24 }
 0x531   :  { %v2498_v15 = vpop.f32.mrf.mxu0 }
 0x532   :  { %v2499_v31 = vadd.f32 %v2498_v15, %v7188_v9 }
 0x533   :  { %v2500_v13 = vpop.f32.mrf.mxu0 }
 0x534   :  { %v2501_v12 = vadd.f32 %v2500_v13, %v7185_v6  ;;  %v2657_v4 = vmax.f32 %v2499_v31, 0.0 }
 0x535   :  { %v2502_v8 = vpop.f32.mrf.mxu0 }
 0x536   :  { %v2503_v10 = vadd.f32 %v2502_v8, %v7188_v9  ;;  %v2658_v52 = vmax.f32 %v2501_v12, 0.0 }
 0x537   :  { %v2504_v47 = vpop.f32.mrf.mxu0 }
 0x538   :  { %v2505_v51 = vadd.f32 %v2504_v47, %v7185_v6  ;;  %v2659_v36 = vmax.f32 %v2503_v10, 0.0 }
 0x539   :  { %v2508_v28 = vpop.f32.mrf.mxu0 }
 0x53a   :  { %v2660_v18 = vmax.f32 %v2505_v51, 0.0  ;;  %v2721_v34 = vpack.c.bf16 %v2659_v36, %v2657_v4  ;;  %v2509_v16 = vadd.f32 %v2508_v28, %v7188_v9 }
 0x53b   :  { %v2510_v11 = vpop.f32.mrf.mxu0 }
 0x53c   :  { %v2722_v42 = vpack.c.bf16 %v2660_v18, %v2658_v52  ;;  %v2511_v3 = vadd.f32 %v2510_v11, %v7185_v6  ;;  %v2661_v17 = vmax.f32 %v2509_v16, 0.0 }
 0x53d   :  { %v2512_v59 = vpop.f32.mrf.mxu0 }
 0x53e   :  { %v2513_v43 = vadd.f32 %v2512_v59, %v7188_v9  ;;  %3191 = vmatprep.mubr.bf16.mxu1 %v2722_v42  ;;  %3384 = vmatprep.mubr.bf16.mxu0 %v2722_v42  ;;  %v2662_v22 = vmax.f32 %v2511_v3, 0.0 }
 0x53f   :  { %v2514_v45 = vpop.f32.mrf.mxu0  ;;  %3192 = vmatmul.mubr.bf16.vlgmr.msra.gmra.mxu1 %v2721_v34  ;;  %3385 = vmatmul.mubr.bf16.vlgmr.msra.gmra.mxu0 %v2721_v34 }
 0x540   :  { %v2515_v35 = vadd.f32 %v2514_v45, %v7185_v6  ;;  %v2663_v32 = vmax.f32 %v2513_v43, 0.0 }
 0x542   :  { %v2664_v27 = vmax.f32 %v2515_v35, 0.0  ;;  %v2723_v25 = vpack.c.bf16 %v2663_v32, %v2661_v17 }
 0x544   :  { %v2518_v58 = vpop.f32.mrf.mxu0  ;;  %v2724_v57 = vpack.c.bf16 %v2664_v27, %v2662_v22 }
 0x545   :  { %v2519_v1 = vadd.f32 %v2518_v58, %v7188_v9 }
 0x546   :  { %v2520_v40 = vpop.f32.mrf.mxu0  ;;  %3201 = vmatprep.mubr.bf16.mxu1 %v2724_v57  ;;  %3394 = vmatprep.mubr.bf16.mxu0 %v2724_v57 }
 0x547   :  { %3202 = vmatmul.mubr.bf16.gmra.mxu1 %v2723_v25  ;;  %3395 = vmatmul.mubr.bf16.gmra.mxu0 %v2723_v25  ;;  %v2521_v55 = vadd.f32 %v2520_v40, %v7185_v6  ;;  %v2665_v44 = vmax.f32 %v2519_v1, 0.0 }
 0x548   :  { %v2522_v56 = vpop.f32.mrf.mxu0 }
 0x549   :  { %v2523_v62 = vadd.f32 %v2522_v56, %v7188_v9  ;;  %v2666_v7 = vmax.f32 %v2521_v55, 0.0 }
 0x54a   :  { %v2524_v46 = vpop.f32.mrf.mxu0 }
 0x54b   :  { %v2525_v37 = vadd.f32 %v2524_v46, %v7185_v6  ;;  %v2667_v50 = vmax.f32 %v2523_v62, 0.0 }
 0x54c   :  { %v2528_v53 = vpop.f32.mrf.mxu0 }
 0x54d   :  { %v2668_v21 = vmax.f32 %v2525_v37, 0.0  ;;  %v2725_v60 = vpack.c.bf16 %v2667_v50, %v2665_v44  ;;  %v2529_v0 = vadd.f32 %v2528_v53, %v7188_v9 }
 0x54e   :  { %v2530_v19 = vpop.f32.mrf.mxu0 }
 0x54f   :  { %v2726_v54 = vpack.c.bf16 %v2668_v21, %v2666_v7  ;;  %v2531_v61 = vadd.f32 %v2530_v19, %v7185_v6  ;;  %v2669_v20 = vmax.f32 %v2529_v0, 0.0 }
 0x550   :  { %v2532_v5 = vpop.f32.mrf.mxu0 }
 0x551   :  { %v2533_v23 = vadd.f32 %v2532_v5, %v7188_v9  ;;  %3211 = vmatprep.mubr.bf16.mxu1 %v2726_v54  ;;  %3404 = vmatprep.mubr.bf16.mxu0 %v2726_v54  ;;  %v2670_v29 = vmax.f32 %v2531_v61, 0.0 }
 0x552   :  { %v2534_v2 = vpop.f32.mrf.mxu0  ;;  %3212 = vmatmul.mubr.bf16.gmra.mxu1 %v2725_v60  ;;  %3405 = vmatmul.mubr.bf16.gmra.mxu0 %v2725_v60 }
 0x553   :  { %v2535_v41 = vadd.f32 %v2534_v2, %v7185_v6  ;;  %v2671_v38 = vmax.f32 %v2533_v23, 0.0 }
 0x554   :  { %v2538_v49 = vpop.f32.mrf.mxu0 }
 0x555   :  { %v2672_v26 = vmax.f32 %v2535_v41, 0.0  ;;  %v2727_v30 = vpack.c.bf16 %v2671_v38, %v2669_v20  ;;  %v2539_v13 = vadd.f32 %v2538_v49, %v7188_v9 }
 0x556   :  { %v2540_v33 = vpop.f32.mrf.mxu0 }
 0x557   :  { %v2728_v14 = vpack.c.bf16 %v2672_v26, %v2670_v29  ;;  %v2541_v48 = vadd.f32 %v2540_v33, %v7185_v6  ;;  %v2673_v36 = vmax.f32 %v2539_v13, 0.0 }
 0x558   :  { %v2542_v24 = vpop.f32.mrf.mxu0 }
 0x559   :  { %v2543_v15 = vadd.f32 %v2542_v24, %v7188_v9  ;;  %3221 = vmatprep.mubr.bf16.mxu1 %v2728_v14  ;;  %3414 = vmatprep.mubr.bf16.mxu0 %v2728_v14  ;;  %v2674_v47 = vmax.f32 %v2541_v48, 0.0 }
 0x55a   :  { %v2544_v8 = vpop.f32.mrf.mxu0  ;;  %3222 = vmatmul.mubr.bf16.gmra.mxu1 %v2727_v30  ;;  %3415 = vmatmul.mubr.bf16.gmra.mxu0 %v2727_v30 }
 0x55b   :  { %v2545_v12 = vadd.f32 %v2544_v8, %v7185_v6  ;;  %v2675_v10 = vmax.f32 %v2543_v15, 0.0 }
 0x55c   :  { %v2548_v31 = vpop.f32.mrf.mxu0 }
 0x55d   :  { %v2676_v51 = vmax.f32 %v2545_v12, 0.0  ;;  %v2729_v18 = vpack.c.bf16 %v2675_v10, %v2673_v36  ;;  %v2549_v34 = vadd.f32 %v2548_v31, %v7188_v9 }
 0x55e   :  { %v2550_v28 = vpop.f32.mrf.mxu0 }
 0x55f   :  { %v2730_v52 = vpack.c.bf16 %v2676_v51, %v2674_v47  ;;  %v2551_v11 = vadd.f32 %v2550_v28, %v7185_v6  ;;  %v2677_v32 = vmax.f32 %v2549_v34, 0.0 }
 0x560   :  { %v2552_v4 = vpop.f32.mrf.mxu0 }
 0x561   :  { %v2553_v42 = vadd.f32 %v2552_v4, %v7188_v9  ;;  %3231 = vmatprep.mubr.bf16.mxu1 %v2730_v52  ;;  %3424 = vmatprep.mubr.bf16.mxu0 %v2730_v52  ;;  %v2678_v45 = vmax.f32 %v2551_v11, 0.0 }
 0x562   :  { %v2554_v59 = vpop.f32.mrf.mxu0  ;;  %3232 = vmatmul.mubr.bf16.gmra.mxu1 %v2729_v18  ;;  %3425 = vmatmul.mubr.bf16.gmra.mxu0 %v2729_v18 }
 0x563   :  { %v2555_v3 = vadd.f32 %v2554_v59, %v7185_v6  ;;  %v2679_v43 = vmax.f32 %v2553_v42, 0.0 }
 0x564   :  { %v2558_v16 = vpop.f32.mrf.mxu0 }
 0x565   :  { %v2680_v35 = vmax.f32 %v2555_v3, 0.0  ;;  %v2731_v17 = vpack.c.bf16 %v2679_v43, %v2677_v32  ;;  %v2559_v40 = vadd.f32 %v2558_v16, %v7188_v9 }
 0x566   :  { %v2560_v22 = vpop.f32.mrf.mxu0 }
 0x567   :  { %v2732_v27 = vpack.c.bf16 %v2680_v35, %v2678_v45  ;;  %v2561_v57 = vadd.f32 %v2560_v22, %v7185_v6  ;;  %v2681_v50 = vmax.f32 %v2559_v40, 0.0 }
 0x568   :  { %v2562_v58 = vpop.f32.mrf.mxu0 }
 0x569   :  { %v2563_v25 = vadd.f32 %v2562_v58, %v7188_v9  ;;  %3241 = vmatprep.mubr.bf16.mxu1 %v2732_v27  ;;  %3434 = vmatprep.mubr.bf16.mxu0 %v2732_v27  ;;  %v2682_v46 = vmax.f32 %v2561_v57, 0.0 }
 0x56a   :  { %v2564_v56 = vpop.f32.mrf.mxu0  ;;  %3242 = vmatmul.mubr.bf16.gmra.mxu1 %v2731_v17  ;;  %3435 = vmatmul.mubr.bf16.gmra.mxu0 %v2731_v17 }
 0x56b   :  { %v2565_v55 = vadd.f32 %v2564_v56, %v7185_v6  ;;  %v2683_v62 = vmax.f32 %v2563_v25, 0.0 }
 0x56c   :  { %v2568_v1 = vpop.f32.mrf.mxu0 }
 0x56d   :  { %v2684_v37 = vmax.f32 %v2565_v55, 0.0  ;;  %v2733_v21 = vpack.c.bf16 %v2683_v62, %v2681_v50  ;;  %v2569_v60 = vadd.f32 %v2568_v1, %v7188_v9 }
 0x56e   :  { %v2570_v53 = vpop.f32.mrf.mxu0 }
 0x56f   :  { %v2734_v7 = vpack.c.bf16 %v2684_v37, %v2682_v46  ;;  %v2571_v19 = vadd.f32 %v2570_v53, %v7185_v6  ;;  %v2685_v38 = vmax.f32 %v2569_v60, 0.0 }
 0x570   :  { %v2572_v44 = vpop.f32.mrf.mxu0 }
 0x571   :  { %v2573_v54 = vadd.f32 %v2572_v44, %v7188_v9  ;;  %3251 = vmatprep.mubr.bf16.mxu1 %v2734_v7  ;;  %3444 = vmatprep.mubr.bf16.mxu0 %v2734_v7  ;;  %v2686_v2 = vmax.f32 %v2571_v19, 0.0 }
 0x572   :  { %v2574_v5 = vpop.f32.mrf.mxu0  ;;  %3252 = vmatmul.mubr.bf16.gmra.mxu1 %v2733_v21  ;;  %3445 = vmatmul.mubr.bf16.gmra.mxu0 %v2733_v21 }
 0x573   :  { %v2575_v61 = vadd.f32 %v2574_v5, %v7185_v6  ;;  %v2687_v23 = vmax.f32 %v2573_v54, 0.0 }
 0x574   :  { %v2578_v0 = vpop.f32.mrf.mxu0 }
 0x575   :  { %v2688_v41 = vmax.f32 %v2575_v61, 0.0  ;;  %v2735_v26 = vpack.c.bf16 %v2687_v23, %v2685_v38  ;;  %v2579_v30 = vadd.f32 %v2578_v0, %v7188_v9 }
 0x576   :  { %v2580_v49 = vpop.f32.mrf.mxu0 }
 0x577   :  { %v2736_v29 = vpack.c.bf16 %v2688_v41, %v2686_v2  ;;  %v2581_v33 = vadd.f32 %v2580_v49, %v7185_v6  ;;  %v2689_v10 = vmax.f32 %v2579_v30, 0.0 }
 0x578   :  { %v2582_v20 = vpop.f32.mrf.mxu0 }
 0x579   :  { %v2583_v14 = vadd.f32 %v2582_v20, %v7188_v9  ;;  %3261 = vmatprep.mubr.bf16.mxu1 %v2736_v29  ;;  %3454 = vmatprep.mubr.bf16.mxu0 %v2736_v29  ;;  %v2690_v8 = vmax.f32 %v2581_v33, 0.0 }
 0x57a   :  { %v2584_v24 = vpop.f32.mrf.mxu0  ;;  %3262 = vmatmul.mubr.bf16.gmra.mxu1 %v2735_v26  ;;  %3455 = vmatmul.mubr.bf16.gmra.mxu0 %v2735_v26 }
 0x57b   :  { %v2585_v48 = vadd.f32 %v2584_v24, %v7185_v6  ;;  %v2691_v15 = vmax.f32 %v2583_v14, 0.0 }
 0x57c   :  { %v2588_v13 = vpop.f32.mrf.mxu0 }
 0x57d   :  { %v2692_v12 = vmax.f32 %v2585_v48, 0.0  ;;  %v2737_v51 = vpack.c.bf16 %v2691_v15, %v2689_v10  ;;  %v2589_v18 = vadd.f32 %v2588_v13, %v7188_v9 }
 0x57e   :  { %v2590_v31 = vpop.f32.mrf.mxu0 }
 0x57f   :  { %v2738_v47 = vpack.c.bf16 %v2692_v12, %v2690_v8  ;;  %v2591_v28 = vadd.f32 %v2590_v31, %v7185_v6  ;;  %v2693_v43 = vmax.f32 %v2589_v18, 0.0 }
 0x580   :  { %v2592_v36 = vpop.f32.mrf.mxu0 }
 0x581   :  { %v2593_v52 = vadd.f32 %v2592_v36, %v7188_v9  ;;  %3271 = vmatprep.mubr.bf16.mxu1 %v2738_v47  ;;  %3464 = vmatprep.mubr.bf16.mxu0 %v2738_v47  ;;  %v2694_v59 = vmax.f32 %v2591_v28, 0.0 }
 0x582   :  { %v2594_v4 = vpop.f32.mrf.mxu0  ;;  %3272 = vmatmul.mubr.bf16.gmra.mxu1 %v2737_v51  ;;  %3465 = vmatmul.mubr.bf16.gmra.mxu0 %v2737_v51 }
 0x583   :  { %v2595_v11 = vadd.f32 %v2594_v4, %v7185_v6  ;;  %v2695_v42 = vmax.f32 %v2593_v52, 0.0 }
 0x584   :  { %v2598_v34 = vpop.f32.mrf.mxu0 }
 0x585   :  { %v2696_v3 = vmax.f32 %v2595_v11, 0.0  ;;  %v2739_v35 = vpack.c.bf16 %v2695_v42, %v2693_v43  ;;  %v2599_v17 = vadd.f32 %v2598_v34, %v7188_v9 }
 0x586   :  { %v2600_v16 = vpop.f32.mrf.mxu0 }
 0x587   :  { %v2740_v45 = vpack.c.bf16 %v2696_v3, %v2694_v59  ;;  %v2601_v22 = vadd.f32 %v2600_v16, %v7185_v6  ;;  %v2697_v62 = vmax.f32 %v2599_v17, 0.0 }
 0x588   :  { %v2602_v32 = vpop.f32.mrf.mxu0 }
 0x589   :  { %v2603_v27 = vadd.f32 %v2602_v32, %v7188_v9  ;;  %3281 = vmatprep.mubr.bf16.mxu1 %v2740_v45  ;;  %3474 = vmatprep.mubr.bf16.mxu0 %v2740_v45  ;;  %v2698_v56 = vmax.f32 %v2601_v22, 0.0 }
 0x58a   :  { %v2604_v58 = vpop.f32.mrf.mxu0  ;;  %3282 = vmatmul.mubr.bf16.gmra.mxu1 %v2739_v35  ;;  %3475 = vmatmul.mubr.bf16.gmra.mxu0 %v2739_v35 }
 0x58b   :  { %v2605_v57 = vadd.f32 %v2604_v58, %v7185_v6  ;;  %v2699_v25 = vmax.f32 %v2603_v27, 0.0 }
 0x58c   :  { %v2608_v40 = vpop.f32.mrf.mxu0 }
 0x58d   :  { %v2700_v55 = vmax.f32 %v2605_v57, 0.0  ;;  %v2741_v37 = vpack.c.bf16 %v2699_v25, %v2697_v62  ;;  %v2609_v21 = vadd.f32 %v2608_v40, %v7188_v9 }
 0x58e   :  { %v2610_v1 = vpop.f32.mrf.mxu0 }
 0x58f   :  { %v2742_v46 = vpack.c.bf16 %v2700_v55, %v2698_v56  ;;  %v2611_v53 = vadd.f32 %v2610_v1, %v7185_v6  ;;  %v2701_v23 = vmax.f32 %v2609_v21, 0.0 }
 0x590   :  { %v2612_v50 = vpop.f32.mrf.mxu0 }
 0x591   :  { %v2613_v7 = vadd.f32 %v2612_v50, %v7188_v9  ;;  %3291 = vmatprep.mubr.bf16.mxu1 %v2742_v46  ;;  %3484 = vmatprep.mubr.bf16.mxu0 %v2742_v46  ;;  %v2702_v5 = vmax.f32 %v2611_v53, 0.0 }
 0x592   :  { %v2614_v44 = vpop.f32.mrf.mxu0  ;;  %3292 = vmatmul.mubr.bf16.gmra.mxu1 %v2741_v37  ;;  %3485 = vmatmul.mubr.bf16.gmra.mxu0 %v2741_v37 }
 0x593   :  { %v2615_v19 = vadd.f32 %v2614_v44, %v7185_v6  ;;  %v2703_v54 = vmax.f32 %v2613_v7, 0.0 }
 0x594   :  { %v2618_v60 = vpop.f32.mrf.mxu0 }
 0x595   :  { %v2704_v61 = vmax.f32 %v2615_v19, 0.0  ;;  %v2743_v41 = vpack.c.bf16 %v2703_v54, %v2701_v23  ;;  %v2619_v26 = vadd.f32 %v2618_v60, %v7188_v9 }
 0x596   :  { %v2620_v0 = vpop.f32.mrf.mxu0 }
 0x597   :  { %v2744_v2 = vpack.c.bf16 %v2704_v61, %v2702_v5  ;;  %v2621_v49 = vadd.f32 %v2620_v0, %v7185_v6  ;;  %v2705_v15 = vmax.f32 %v2619_v26, 0.0  ;;  %v7437_v5 = vld [vmem:[#allocation12_spill] sm:$0xff] }
 0x598   :  { %v2622_v38 = vpop.f32.mrf.mxu0  ;;  %v2829_v61 = vsub.s32 2, %v7437_v5  ;;  %v2833_v23 = vsub.s32 3, %v7437_v5 }
 0x599   :  { %v2623_v29 = vadd.f32 %v2622_v38, %v7188_v9  ;;  %3301 = vmatprep.mubr.bf16.mxu1 %v2744_v2  ;;  %3494 = vmatprep.mubr.bf16.mxu0 %v2744_v2  ;;  %v2706_v24 = vmax.f32 %v2621_v49, 0.0 }
 0x59a   :  { %v2624_v20 = vpop.f32.mrf.mxu0  ;;  %3302 = vmatmul.mubr.bf16.gmra.mxu1 %v2743_v41  ;;  %3495 = vmatmul.mubr.bf16.gmra.mxu0 %v2743_v41 }
 0x59b   :  { %v2625_v33 = vadd.f32 %v2624_v20, %v7185_v6  ;;  %v2707_v14 = vmax.f32 %v2623_v29, 0.0 }
 0x59c   :  { %v2628_v30 = vpop.f32.mrf.mxu0 }
 0x59d   :  { %v2708_v48 = vmax.f32 %v2625_v33, 0.0  ;;  %v2745_v12 = vpack.c.bf16 %v2707_v14, %v2705_v15  ;;  %v2629_v51 = vadd.f32 %v2628_v30, %v7188_v9 }
 0x59e   :  { %v2630_v13 = vpop.f32.mrf.mxu0 }
 0x59f   :  { %v2746_v8 = vpack.c.bf16 %v2708_v48, %v2706_v24  ;;  %v2631_v31 = vadd.f32 %v2630_v13, %v7185_v6  ;;  %v2709_v42 = vmax.f32 %v2629_v51, 0.0 }
 0x5a0   :  { %v2632_v10 = vpop.f32.mrf.mxu0 }
 0x5a1   :  { %v2633_v47 = vadd.f32 %v2632_v10, %v7188_v9  ;;  %3311 = vmatprep.mubr.bf16.mxu1 %v2746_v8  ;;  %3504 = vmatprep.mubr.bf16.mxu0 %v2746_v8  ;;  %v2710_v4 = vmax.f32 %v2631_v31, 0.0 }
 0x5a2   :  { %v2634_v36 = vpop.f32.mrf.mxu0  ;;  %3312 = vmatmul.mubr.bf16.gmra.mxu1 %v2745_v12  ;;  %3505 = vmatmul.mubr.bf16.gmra.mxu0 %v2745_v12 }
 0x5a3   :  { %v2635_v28 = vadd.f32 %v2634_v36, %v7185_v6  ;;  %v2711_v52 = vmax.f32 %v2633_v47, 0.0 }
 0x5a4   :  { %v2638_v18 = vpop.f32.mrf.mxu0 }
 0x5a5   :  { %v2712_v11 = vmax.f32 %v2635_v28, 0.0  ;;  %v2747_v3 = vpack.c.bf16 %v2711_v52, %v2709_v42  ;;  %v2639_v35 = vadd.f32 %v2638_v18, %v7188_v9 }
 0x5a6   :  { %v2640_v34 = vpop.f32.mrf.mxu0 }
 0x5a7   :  { %v2748_v59 = vpack.c.bf16 %v2712_v11, %v2710_v4  ;;  %v2641_v16 = vadd.f32 %v2640_v34, %v7185_v6  ;;  %v2713_v25 = vmax.f32 %v2639_v35, 0.0 }
 0x5a8   :  { %v2642_v43 = vpop.f32.mrf.mxu0 }
 0x5a9   :  { %v2643_v45 = vadd.f32 %v2642_v43, %v7188_v9  ;;  %3321 = vmatprep.mubr.bf16.mxu1 %v2748_v59  ;;  %3514 = vmatprep.mubr.bf16.mxu0 %v2748_v59  ;;  %v2714_v58 = vmax.f32 %v2641_v16, 0.0 }
 0x5aa   :  { %v2644_v32 = vpop.f32.mrf.mxu0  ;;  %3322 = vmatmul.mubr.bf16.gmra.mxu1 %v2747_v3  ;;  %3515 = vmatmul.mubr.bf16.gmra.mxu0 %v2747_v3 }
 0x5ab   :  { %v2645_v22 = vadd.f32 %v2644_v32, %v7185_v6  ;;  %v2715_v27 = vmax.f32 %v2643_v45, 0.0 }
 0x5ac   :  { %v2648_v17 = vpop.f32.mrf.mxu0 }
 0x5ad   :  { %v2716_v57 = vmax.f32 %v2645_v22, 0.0  ;;  %v2749_v55 = vpack.c.bf16 %v2715_v27, %v2713_v25  ;;  %v2649_v37 = vadd.f32 %v2648_v17, %v7188_v9 }
 0x5ae   :  { %v2650_v40 = vpop.f32.mrf.mxu0 }
 0x5af   :  { %v2750_v56 = vpack.c.bf16 %v2716_v57, %v2714_v58  ;;  %v2651_v1 = vadd.f32 %v2650_v40, %v7185_v6  ;;  %v2717_v19 = vmax.f32 %v2649_v37, 0.0 }
 0x5b0   :  { %v2652_v62 = vpop.f32.mrf.mxu0 }
 0x5b1   :  { %v2653_v46 = vadd.f32 %v2652_v62, %v7188_v9  ;;  %3331 = vmatprep.mubr.bf16.mxu1 %v2750_v56  ;;  %3524 = vmatprep.mubr.bf16.mxu0 %v2750_v56  ;;  %v2718_v21 = vmax.f32 %v2651_v1, 0.0  ;;  %v2817_v9 = vld [vmem:[%s7411_s8 + $0x7] sm:$0xf]  ;;  %s6211_s8 = smov [#allocation8]  }
 0x5b2   :  { %v2654_v50 = vpop.f32.mrf.mxu0  ;;  %3332 = vmatmul.mubr.bf16.gmra.mxu1 %v2749_v55  ;;  %3525 = vmatmul.mubr.bf16.gmra.mxu0 %v2749_v55  ;;  %v7262_v0 = vrot.slane %v2817_v9, %v2829_v61  ;;  %v7265_v2 = vrot.slane %v2817_v9, %v7435_v63  ;;  %v7267_v41 = vrot.slane %v2817_v9, %v2833_v23  ;;  %s4670_s24 = sshll.u32 %s6211_s8, 4  ;;  %s4671_s24 = int_to_ptr.vmem [resolvable:$true] %s4670_s24 }
 0x5b3   :  { %v2655_v53 = vadd.f32 %v2654_v50, %v7185_v6  ;;  %v2719_v7 = vmax.f32 %v2653_v46, 0.0  ;;  %v7260_v6 = vrot.slane %v2817_v9, %v7436_v39  ;;  %s6174_s25 = scalar_lea.vmem %s4671_s24, 8192  ;;  %p6179_p2 = scmp.lt.s32.totalorder %s4671_s24, %s4671_s24 }
 0x5b4   :  { %p6175_p1 = scmp.ne.s32.totalorder %s4671_s24, %s6174_s25  ;;  %p6180_p3 = scmp.lt.s32.totalorder %s6174_s25, %s6174_s25 }
 0x5b5   :  { %v2720_v44 = vmax.f32 %v2655_v53, 0.0  ;;  %v2751_v60 = vpack.c.bf16 %v2719_v7, %v2717_v19 }
 0x5b6   :  { %p6181_p4 = por %p6180_p3, %p6179_p2 }
 0x5b7   :  { %v2752_v54 = vpack.c.bf16 %v2720_v44, %v2718_v21 }
 0x5b8   :  { %p6182_p5 = pnand %p6181_p4, %p6175_p1 }
 0x5b9   :  { %3341 = vmatprep.mubr.bf16.mxu1 %v2752_v54  ;;  %3534 = vmatprep.mubr.bf16.mxu0 %v2752_v54 }
 0x5ba   :  { %3342 = vmatmul.mubr.bf16.gmra.mxu1 %v2751_v60  ;;  %3535 = vmatmul.mubr.bf16.gmra.mxu0 %v2751_v60 }
 0x5ff   :  { %v3193_v38 = vpop.f32.mrf.mxu1  ;;  %v3386_v49 = vpop.f32.mrf.mxu0 }
 0x600   :  { %v3194_v29 = vadd.f32 %v3193_v38, %v7260_v6  ;;  %v3387_v26 = vadd.f32 %v3386_v49, %v7262_v0 }
 0x601   :  { %v3195_v20 = vpop.f32.mrf.mxu1  ;;  %v3388_v33 = vpop.f32.mrf.mxu0 }
 0x602   :  { %v3545_v14 = vsub.f32 0.0, %v3194_v29  ;;  %v3547_v30 = vsub.f32 0.0, %v3387_v26  ;;  %v3196_v39 = vadd.f32 %v3195_v20, %v7265_v2  ;;  %v3389_v24 = vadd.f32 %v3388_v33, %v7267_v41 }
 0x603   :  { %v3197_v48 = vpop.f32.mrf.mxu1  ;;  %v3390_v15 = vpop.f32.mrf.mxu0 }
 0x604   :  { %v3673_v63 = vmul.f32 1.442695, %v3545_v14  ;;  %v3677_v13 = vmul.f32 1.442695, %v3547_v30  ;;  %v3546_v8 = vsub.f32 0.0, %v3196_v39  ;;  %v3548_v12 = vsub.f32 0.0, %v3389_v24 }
 0x605   :  { %v3198_v10 = vadd.f32 %v3197_v48, %v7260_v6  ;;  %v3391_v31 = vadd.f32 %v3390_v15, %v7262_v0  ;;  %v3199_v47 = vpop.f32.mrf.mxu1  ;;  %v3392_v51 = vpop.f32.mrf.mxu0 }
 0x606   :  { %5602 = vpow2.f32 %v3673_v63  ;;  %v3675_v36 = vmul.f32 1.442695, %v3546_v8  ;;  %v3679_v28 = vmul.f32 1.442695, %v3548_v12  ;;  %v3200_v52 = vadd.f32 %v3199_v47, %v7265_v2 }
 0x607   :  { %5604 = vpow2.f32 %v3677_v13  ;;  %v3549_v18 = vsub.f32 0.0, %v3198_v10  ;;  %v3551_v4 = vsub.f32 0.0, %v3391_v31  ;;  %v3393_v11 = vadd.f32 %v3392_v51, %v7267_v41  ;;  %v3203_v42 = vpop.f32.mrf.mxu1  ;;  %v3396_v34 = vpop.f32.mrf.mxu0 }
 0x608   :  { %5606 = vpow2.f32 %v3675_v36  ;;  %v3550_v59 = vsub.f32 0.0, %v3200_v52  ;;  %v3204_v3 = vadd.f32 %v3203_v42, %v7260_v6  ;;  %v3397_v43 = vadd.f32 %v3396_v34, %v7262_v0 }
 0x609   :  { %5608 = vpow2.f32 %v3679_v28  ;;  %v3681_v16 = vmul.f32 1.442695, %v3549_v18  ;;  %v3685_v45 = vmul.f32 1.442695, %v3551_v4  ;;  %v3552_v35 = vsub.f32 0.0, %v3393_v11  ;;  %v3205_v32 = vpop.f32.mrf.mxu1  ;;  %v3398_v22 = vpop.f32.mrf.mxu0 }
 0x60a   :  { %v3683_v27 = vmul.f32 1.442695, %v3550_v59  ;;  %v3553_v17 = vsub.f32 0.0, %v3204_v3  ;;  %v3555_v58 = vsub.f32 0.0, %v3397_v43  ;;  %v3206_v57 = vadd.f32 %v3205_v32, %v7265_v2 }
 0x60b   :  { %5610 = vpow2.f32 %v3681_v16  ;;  %v3687_v25 = vmul.f32 1.442695, %v3552_v35  ;;  %v3399_v40 = vadd.f32 %v3398_v22, %v7267_v41  ;;  %v3207_v56 = vpop.f32.mrf.mxu1  ;;  %v3400_v55 = vpop.f32.mrf.mxu0 }
 0x60c   :  { %5612 = vpow2.f32 %v3685_v45  ;;  %v3689_v62 = vmul.f32 1.442695, %v3553_v17  ;;  %v3693_v1 = vmul.f32 1.442695, %v3555_v58  ;;  %v3554_v46 = vsub.f32 0.0, %v3206_v57 }
 0x60d   :  { %5614 = vpow2.f32 %v3683_v27  ;;  %v3556_v37 = vsub.f32 0.0, %v3399_v40  ;;  %v3208_v50 = vadd.f32 %v3207_v56, %v7260_v6  ;;  %v3401_v53 = vadd.f32 %v3400_v55, %v7262_v0  ;;  %v3209_v7 = vpop.f32.mrf.mxu1  ;;  %v3402_v21 = vpop.f32.mrf.mxu0 }
 0x60e   :  { %5616 = vpow2.f32 %v3687_v25  ;;  %v3691_v44 = vmul.f32 1.442695, %v3554_v46  ;;  %v3210_v19 = vadd.f32 %v3209_v7, %v7265_v2  ;;  %v3403_v54 = vadd.f32 %v3402_v21, %v7267_v41 }
 0x60f   :  { %5618 = vpow2.f32 %v3689_v62  ;;  %v3695_v60 = vmul.f32 1.442695, %v3556_v37  ;;  %v3557_v5 = vsub.f32 0.0, %v3208_v50  ;;  %v3559_v61 = vsub.f32 0.0, %v3401_v53 }
 0x610   :  { %5620 = vpow2.f32 %v3693_v1  ;;  %v3558_v9 = vsub.f32 0.0, %v3210_v19  ;;  %v3560_v29 = vsub.f32 0.0, %v3403_v54 }
 0x611   :  { %5622 = vpow2.f32 %v3691_v44  ;;  %v3697_v23 = vmul.f32 1.442695, %v3557_v5  ;;  %v3701_v38 = vmul.f32 1.442695, %v3559_v61 }
 0x612   :  { %5624 = vpow2.f32 %v3695_v60  ;;  %v3699_v49 = vmul.f32 1.442695, %v3558_v9  ;;  %v3213_v26 = vpop.f32.mrf.mxu1  ;;  %v3406_v20 = vpop.f32.mrf.mxu0  ;;  %v3703_v8 = vmul.f32 1.442695, %v3560_v29 }
 0x613   :  { %v5603_v33 = vpop.eup %5602  ;;  %5626 = vpow2.f32 %v3697_v23  ;;  %v3214_v47 = vadd.f32 %v3213_v26, %v7260_v6  ;;  %v3407_v42 = vadd.f32 %v3406_v20, %v7262_v0 }
 0x614   :  { %v5605_v14 = vpop.eup %5604  ;;  %v3929_v30 = vadd.f32 1.0, %v5603_v33  ;;  %5628 = vpow2.f32 %v3701_v38  ;;  %v3215_v39 = vpop.f32.mrf.mxu1 }
 0x615   :  { %v3408_v24 = vpop.f32.mrf.mxu0  ;;  %v5607_v48 = vpop.eup %5606  ;;  %v3931_v15 = vadd.f32 1.0, %v5605_v14  ;;  %5630 = vpow2.f32 %v3699_v49  ;;  %v3561_v43 = vsub.f32 0.0, %v3214_v47  ;;  %v3216_v16 = vadd.f32 %v3215_v39, %v7265_v2 }
 0x616   :  { %v5609_v63 = vpop.eup %5608  ;;  %5632 = vrcp.f32 %v3929_v30  ;;  %v3930_v13 = vadd.f32 1.0, %v5607_v48  ;;  %v3217_v12 = vpop.f32.mrf.mxu1  ;;  %v3409_v32 = vadd.f32 %v3408_v24, %v7267_v41  ;;  %v3563_v56 = vsub.f32 0.0, %v3407_v42 }
 0x617   :  { %v3410_v10 = vpop.f32.mrf.mxu0  ;;  %5634 = vrcp.f32 %v3931_v15  ;;  %v3932_v31 = vadd.f32 1.0, %v5609_v63  ;;  %v3218_v17 = vadd.f32 %v3217_v12, %v7260_v6  ;;  %v3705_v46 = vmul.f32 1.442695, %v3561_v43 }
 0x618   :  { %v5611_v51 = vpop.eup %5610  ;;  %5636 = vrcp.f32 %v3930_v13  ;;  %v3219_v36 = vpop.f32.mrf.mxu1  ;;  %v3411_v58 = vadd.f32 %v3410_v10, %v7262_v0  ;;  %v3562_v37 = vsub.f32 0.0, %v3216_v16  ;;  %v3564_v7 = vsub.f32 0.0, %v3409_v32 }
 0x619   :  { %v5613_v28 = vpop.eup %5612  ;;  %5638 = vrcp.f32 %v3932_v31  ;;  %v3933_v52 = vadd.f32 1.0, %v5611_v51  ;;  %v3412_v18 = vpop.f32.mrf.mxu0  ;;  %v3220_v21 = vadd.f32 %v3219_v36, %v7265_v2  ;;  %v3565_v54 = vsub.f32 0.0, %v3218_v17 }
 0x61a   :  { %v5615_v4 = vpop.eup %5614  ;;  %v3935_v11 = vadd.f32 1.0, %v5613_v28  ;;  %5640 = vpow2.f32 %v3703_v8  ;;  %v3223_v34 = vpop.f32.mrf.mxu1  ;;  %v3567_v60 = vsub.f32 0.0, %v3411_v58  ;;  %v3709_v23 = vmul.f32 1.442695, %v3563_v56 }
 0x61b   :  { %v5617_v59 = vpop.eup %5616  ;;  %5642 = vrcp.f32 %v3933_v52  ;;  %v3934_v3 = vadd.f32 1.0, %v5615_v4  ;;  %v3416_v57 = vpop.f32.mrf.mxu0  ;;  %v3413_v38 = vadd.f32 %v3412_v18, %v7267_v41  ;;  %v3707_v20 = vmul.f32 1.442695, %v3562_v37 }
 0x61c   :  { %v5619_v45 = vpop.eup %5618  ;;  %5644 = vrcp.f32 %v3935_v11  ;;  %v3936_v35 = vadd.f32 1.0, %v5617_v59  ;;  %v3225_v55 = vpop.f32.mrf.mxu1  ;;  %v3224_v33 = vadd.f32 %v3223_v34, %v7260_v6  ;;  %v3711_v30 = vmul.f32 1.442695, %v3564_v7 }
 0x61d   :  { %v5621_v22 = vpop.eup %5620  ;;  %5646 = vrcp.f32 %v3934_v3  ;;  %v3937_v27 = vadd.f32 1.0, %v5619_v45  ;;  %v3418_v5 = vpop.f32.mrf.mxu0  ;;  %v3566_v39 = vsub.f32 0.0, %v3220_v21  ;;  %v3417_v24 = vadd.f32 %v3416_v57, %v7262_v0 }
 0x61e   :  { %v5623_v25 = vpop.eup %5622  ;;  %5648 = vrcp.f32 %v3936_v35  ;;  %v3939_v40 = vadd.f32 1.0, %v5621_v22  ;;  %v3227_v49 = vpop.f32.mrf.mxu1  ;;  %v3713_v15 = vmul.f32 1.442695, %v3565_v54  ;;  %v3717_v63 = vmul.f32 1.442695, %v3567_v60 }
 0x61f   :  { %v5625_v62 = vpop.eup %5624  ;;  %5650 = vrcp.f32 %v3937_v27  ;;  %v3938_v1 = vadd.f32 1.0, %v5623_v25  ;;  %v3226_v13 = vadd.f32 %v3225_v55, %v7265_v2  ;;  %v3420_v8 = vpop.f32.mrf.mxu0  ;;  %v3568_v31 = vsub.f32 0.0, %v3413_v38 }
 0x620   :  { %v5627_v50 = vpop.eup %5626  ;;  %5652 = vrcp.f32 %v3939_v40  ;;  %v3940_v53 = vadd.f32 1.0, %v5625_v62  ;;  %v3419_v47 = vadd.f32 %v3418_v5, %v7267_v41  ;;  %v3229_v51 = vpop.f32.mrf.mxu1  ;;  %v3569_v52 = vsub.f32 0.0, %v3224_v33 }
 0x621   :  { %v5629_v44 = vpop.eup %5628  ;;  %5654 = vrcp.f32 %v3938_v1  ;;  %v3941_v19 = vadd.f32 1.0, %v5627_v50  ;;  %v3228_v18 = vadd.f32 %v3227_v49, %v7260_v6  ;;  %v3571_v42 = vsub.f32 0.0, %v3417_v24  ;;  %v3422_v45 = vpop.f32.mrf.mxu0 }
 0x622   :  { %v5631_v61 = vpop.eup %5630  ;;  %5656 = vrcp.f32 %v3940_v53  ;;  %v3943_v9 = vadd.f32 1.0, %v5629_v44  ;;  %v3421_v34 = vadd.f32 %v3420_v8, %v7262_v0  ;;  %v3715_v3 = vmul.f32 1.442695, %v3566_v39  ;;  %v3233_v27 = vpop.f32.mrf.mxu1 }
 0x623   :  { %v5633_v29 = vpop.eup %5632  ;;  %5658 = vrcp.f32 %v3941_v19  ;;  %v3942_v26 = vadd.f32 1.0, %v5631_v61  ;;  %v3570_v43 = vsub.f32 0.0, %v3226_v13  ;;  %v3230_v16 = vadd.f32 %v3229_v51, %v7265_v2  ;;  %v3426_v50 = vpop.f32.mrf.mxu0 }
 0x624   :  { %v5635_v14 = vpop.eup %5634  ;;  %5660 = vrcp.f32 %v3943_v9  ;;  %v3719_v32 = vmul.f32 1.442695, %v3568_v31  ;;  %v3572_v22 = vsub.f32 0.0, %v3419_v47  ;;  %v3721_v57 = vmul.f32 1.442695, %v3569_v52  ;;  %v3235_v44 = vpop.f32.mrf.mxu1 }
 0x625   :  { %v5637_v48 = vpop.eup %5636  ;;  %5662 = vrcp.f32 %v3942_v26  ;;  %v3573_v25 = vsub.f32 0.0, %v3228_v18  ;;  %v3725_v55 = vmul.f32 1.442695, %v3571_v42  ;;  %v3575_v62 = vsub.f32 0.0, %v3421_v34  ;;  %v3428_v49 = vpop.f32.mrf.mxu0 }
 0x626   :  { %v5639_v12 = vpop.eup %5638  ;;  %v4942_v10 = vpack.c.bf16 %v5637_v48, %v5633_v29  ;;  %5664 = vpow2.f32 %v3705_v46  ;;  %v3723_v46 = vmul.f32 1.442695, %v3570_v43  ;;  %v3574_v37 = vsub.f32 0.0, %v3230_v16 }
 0x627   :  { %v5641_v36 = vpop.eup %5640  ;;  %v4943_v28 = vpack.c.bf16 %v5639_v12, %v5635_v14  ;;  %5666 = vpow2.f32 %v3709_v23  ;;  %v3727_v7 = vmul.f32 1.442695, %v3572_v22  ;;  %v3423_v21 = vadd.f32 %v3422_v45, %v7267_v41 }
 0x628   :  { %v5643_v4 = vpop.eup %5642  ;;  %4569 = vst [vmem:[#allocation8] sm:$0xff] %v4942_v10  ;;  %v3944_v11 = vadd.f32 1.0, %v5641_v36  ;;  %5668 = vpow2.f32 %v3707_v20  ;;  %v3729_v60 = vmul.f32 1.442695, %v3573_v25  ;;  %v3733_v9 = vmul.f32 1.442695, %v3575_v62  ;;  %v3237_v20 = vpop.f32.mrf.mxu1 }
 0x629   :  { %v5645_v59 = vpop.eup %5644  ;;  %4570 = vst [vmem:[#allocation8 + $0x8] sm:$0xff] %v4943_v28  ;;  %5670 = vpow2.f32 %v3711_v30  ;;  %v3731_v38 = vmul.f32 1.442695, %v3574_v37  ;;  %v3576_v26 = vsub.f32 0.0, %v3423_v21  ;;  %v3234_v47 = vadd.f32 %v3233_v27, %v7260_v6 }
 0x62a   :  { %v5647_v35 = vpop.eup %5646  ;;  %5672 = vrcp.f32 %v3944_v11  ;;  %v3239_v12 = vpop.f32.mrf.mxu1  ;;  %v3427_v42 = vadd.f32 %v3426_v50, %v7262_v0  ;;  %v3236_v16 = vadd.f32 %v3235_v44, %v7265_v2  ;;  %v3238_v22 = vadd.f32 %v3237_v20, %v7260_v6 }
 0x62b   :  { %v5649_v17 = vpop.eup %5648  ;;  %v4944_v58 = vpack.c.bf16 %v5647_v35, %v5643_v4  ;;  %5674 = vpow2.f32 %v3713_v15  ;;  %v3430_v15 = vpop.f32.mrf.mxu0  ;;  %v3735_v8 = vmul.f32 1.442695, %v3576_v26  ;;  %v3577_v43 = vsub.f32 0.0, %v3234_v47 }
 0x62c   :  { %v5651_v40 = vpop.eup %5650  ;;  %v4945_v56 = vpack.c.bf16 %v5649_v17, %v5645_v59  ;;  %5676 = vpow2.f32 %v3717_v63  ;;  %v3243_v34 = vpop.f32.mrf.mxu1  ;;  %v3578_v37 = vsub.f32 0.0, %v3236_v16  ;;  %v3581_v21 = vsub.f32 0.0, %v3238_v22 }
 0x62d   :  { %v5653_v1 = vpop.eup %5652  ;;  %4571 = vst [vmem:[#allocation8 + $0x10] sm:$0xff] %v4944_v58  ;;  %5678 = vpow2.f32 %v3715_v3  ;;  %v3432_v18 = vpop.f32.mrf.mxu0  ;;  %v3431_v58 = vadd.f32 %v3430_v15, %v7262_v0 }
 0x62e   :  { %v5655_v53 = vpop.eup %5654  ;;  %4572 = vst [vmem:[#allocation8 + $0x18] sm:$0xff] %v4945_v56  ;;  %5680 = vpow2.f32 %v3719_v32  ;;  %v3429_v32 = vadd.f32 %v3428_v49, %v7267_v41  ;;  %v3579_v56 = vsub.f32 0.0, %v3427_v42  ;;  %v3739_v20 = vmul.f32 1.442695, %v3578_v37 }
 0x62f   :  { %v5657_v19 = vpop.eup %5656  ;;  %v4946_v54 = vpack.c.bf16 %v5655_v53, %v5651_v40  ;;  %5682 = vpow2.f32 %v3721_v57  ;;  %v3436_v57 = vpop.f32.mrf.mxu0 }
 0x630   :  { %v5659_v5 = vpop.eup %5658  ;;  %v4947_v61 = vpack.c.bf16 %v5657_v19, %v5653_v1  ;;  %5684 = vpow2.f32 %v3725_v55  ;;  %v3245_v55 = vpop.f32.mrf.mxu1 }
 0x631   :  { %v5661_v23 = vpop.eup %5660  ;;  %4573 = vst [vmem:[#allocation8 + $0x20] sm:$0xff] %v4946_v54  ;;  %5686 = vpow2.f32 %v3723_v46  ;;  %v3737_v46 = vmul.f32 1.442695, %v3577_v43  ;;  %v3583_v54 = vsub.f32 0.0, %v3431_v58 }
 0x632   :  { %v5663_v29 = vpop.eup %5662  ;;  %4574 = vst [vmem:[#allocation8 + $0x28] sm:$0xff] %v4947_v61  ;;  %5688 = vpow2.f32 %v3727_v7  ;;  %v3580_v7 = vsub.f32 0.0, %v3429_v32  ;;  %v3247_v49 = vpop.f32.mrf.mxu1 }
 0x633   :  { %v5665_v33 = vpop.eup %5664  ;;  %v4948_v14 = vpack.c.bf16 %v5663_v29, %v5659_v5  ;;  %5690 = vpow2.f32 %v3729_v60  ;;  %v3240_v60 = vadd.f32 %v3239_v12, %v7265_v2  ;;  %v3438_v5 = vpop.f32.mrf.mxu0  ;;  %v3749_v15 = vmul.f32 1.442695, %v3583_v54 }
 0x634   :  { %v5667_v30 = vpop.eup %5666  ;;  %v3945_v39 = vadd.f32 1.0, %v5665_v33  ;;  %5692 = vpow2.f32 %v3733_v9  ;;  %v3244_v33 = vadd.f32 %v3243_v34, %v7260_v6  ;;  %v3439_v47 = vadd.f32 %v3438_v5, %v7267_v41 }
 0x635   :  { %v5669_v24 = vpop.eup %5668  ;;  %4575 = vst [vmem:[#allocation8 + $0x30] sm:$0xff] %v4948_v14  ;;  %v3947_v48 = vadd.f32 1.0, %v5667_v30  ;;  %5694 = vpow2.f32 %v3731_v38  ;;  %v3433_v38 = vadd.f32 %v3432_v18, %v7267_v41  ;;  %v3743_v30 = vmul.f32 1.442695, %v3580_v7 }
 0x636   :  { %v5671_v63 = vpop.eup %5670  ;;  %5696 = vrcp.f32 %v3945_v39  ;;  %v3946_v13 = vadd.f32 1.0, %v5669_v24  ;;  %v3745_v39 = vmul.f32 1.442695, %v3581_v21  ;;  %v3437_v24 = vadd.f32 %v3436_v57, %v7262_v0 }
 0x637   :  { %v5673_v10 = vpop.eup %5672  ;;  %5698 = vrcp.f32 %v3947_v48  ;;  %v3948_v31 = vadd.f32 1.0, %v5671_v63  ;;  %v3582_v63 = vsub.f32 0.0, %v3240_v60  ;;  %v3248_v18 = vadd.f32 %v3247_v49, %v7260_v6 }
 0x638   :  { %v5675_v51 = vpop.eup %5674  ;;  %v4949_v36 = vpack.c.bf16 %v5673_v10, %v5661_v23  ;;  %5700 = vrcp.f32 %v3946_v13  ;;  %v3741_v23 = vmul.f32 1.442695, %v3579_v56  ;;  %v3246_v13 = vadd.f32 %v3245_v55, %v7265_v2 }
 0x639   :  { %v5677_v28 = vpop.eup %5676  ;;  %5702 = vrcp.f32 %v3948_v31  ;;  %v3949_v52 = vadd.f32 1.0, %v5675_v51  ;;  %v3584_v31 = vsub.f32 0.0, %v3433_v38  ;;  %v3249_v51 = vpop.f32.mrf.mxu1  ;;  %v3587_v42 = vsub.f32 0.0, %v3437_v24 }
 0x63a   :  { %v5679_v4 = vpop.eup %5678  ;;  %4576 = vst [vmem:[#allocation8 + $0x38] sm:$0xff] %v4949_v36  ;;  %v3951_v11 = vadd.f32 1.0, %v5677_v28  ;;  %5704 = vpow2.f32 %v3735_v8  ;;  %v3440_v8 = vpop.f32.mrf.mxu0  ;;  %v3586_v43 = vsub.f32 0.0, %v3246_v13  ;;  %v3250_v16 = vadd.f32 %v3249_v51, %v7265_v2 }
 0x63b   :  { %v5681_v59 = vpop.eup %5680  ;;  %5706 = vrcp.f32 %v3949_v52  ;;  %v3950_v3 = vadd.f32 1.0, %v5679_v4  ;;  %v3585_v52 = vsub.f32 0.0, %v3244_v33  ;;  %v3441_v34 = vadd.f32 %v3440_v8, %v7262_v0 }
 0x63c   :  { %v5683_v45 = vpop.eup %5682  ;;  %5708 = vrcp.f32 %v3951_v11  ;;  %v3952_v35 = vadd.f32 1.0, %v5681_v59  ;;  %v3751_v32 = vmul.f32 1.442695, %v3584_v31  ;;  %v3588_v22 = vsub.f32 0.0, %v3439_v47 }
 0x63d   :  { %v5685_v27 = vpop.eup %5684  ;;  %5710 = vrcp.f32 %v3950_v3  ;;  %v3953_v17 = vadd.f32 1.0, %v5683_v45  ;;  %v3747_v3 = vmul.f32 1.442695, %v3582_v63  ;;  %v3442_v45 = vpop.f32.mrf.mxu0  ;;  %v3753_v57 = vmul.f32 1.442695, %v3585_v52 }
 0x63e   :  { %v5687_v25 = vpop.eup %5686  ;;  %5712 = vrcp.f32 %v3952_v35  ;;  %v3955_v40 = vadd.f32 1.0, %v5685_v27  ;;  %v3253_v27 = vpop.f32.mrf.mxu1  ;;  %v3757_v55 = vmul.f32 1.442695, %v3587_v42  ;;  %v3590_v37 = vsub.f32 0.0, %v3250_v16 }
 0x63f   :  { %v5689_v62 = vpop.eup %5688  ;;  %5714 = vrcp.f32 %v3953_v17  ;;  %v3954_v1 = vadd.f32 1.0, %v5687_v25  ;;  %v3589_v25 = vsub.f32 0.0, %v3248_v18  ;;  %v3759_v7 = vmul.f32 1.442695, %v3588_v22 }
 0x640   :  { %v5691_v50 = vpop.eup %5690  ;;  %5716 = vrcp.f32 %v3955_v40  ;;  %v3956_v53 = vadd.f32 1.0, %v5689_v62  ;;  %v3591_v62 = vsub.f32 0.0, %v3441_v34  ;;  %v3443_v21 = vadd.f32 %v3442_v45, %v7267_v41 }
 0x641   :  { %v5693_v44 = vpop.eup %5692  ;;  %5718 = vrcp.f32 %v3954_v1  ;;  %v3957_v19 = vadd.f32 1.0, %v5691_v50  ;;  %v3446_v50 = vpop.f32.mrf.mxu0  ;;  %v3761_v60 = vmul.f32 1.442695, %v3589_v25  ;;  %v3763_v38 = vmul.f32 1.442695, %v3590_v37 }
 0x642   :  { %v5695_v61 = vpop.eup %5694  ;;  %5720 = vrcp.f32 %v3956_v53  ;;  %v3959_v9 = vadd.f32 1.0, %v5693_v44  ;;  %v3255_v44 = vpop.f32.mrf.mxu1  ;;  %v3254_v47 = vadd.f32 %v3253_v27, %v7260_v6  ;;  %v3447_v42 = vadd.f32 %v3446_v50, %v7262_v0 }
 0x643   :  { %v5697_v29 = vpop.eup %5696  ;;  %5722 = vrcp.f32 %v3957_v19  ;;  %v3958_v26 = vadd.f32 1.0, %v5695_v61  ;;  %v3448_v49 = vpop.f32.mrf.mxu0  ;;  %v3256_v16 = vadd.f32 %v3255_v44, %v7265_v2 }
 0x644   :  { %v5699_v14 = vpop.eup %5698  ;;  %5724 = vrcp.f32 %v3959_v9  ;;  %v3765_v9 = vmul.f32 1.442695, %v3591_v62 }
 0x645   :  { %v5701_v48 = vpop.eup %5700  ;;  %5726 = vrcp.f32 %v3958_v26  ;;  %v3592_v26 = vsub.f32 0.0, %v3443_v21  ;;  %v3594_v37 = vsub.f32 0.0, %v3256_v16 }
 0x646   :  { %v5703_v12 = vpop.eup %5702  ;;  %v4950_v10 = vpack.c.bf16 %v5701_v48, %v5697_v29  ;;  %5728 = vpow2.f32 %v3737_v46  ;;  %v3755_v46 = vmul.f32 1.442695, %v3586_v43  ;;  %v3593_v43 = vsub.f32 0.0, %v3254_v47 }
 0x647   :  { %v5705_v36 = vpop.eup %5704  ;;  %v4951_v28 = vpack.c.bf16 %v5703_v12, %v5699_v14  ;;  %5730 = vpow2.f32 %v3741_v23  ;;  %v3767_v8 = vmul.f32 1.442695, %v3592_v26 }
 0x648   :  { %v5707_v4 = vpop.eup %5706  ;;  %4577 = vst [vmem:[#allocation8 + $0x40] sm:$0xff] %v4950_v10  ;;  %v3960_v11 = vadd.f32 1.0, %v5705_v36  ;;  %5732 = vpow2.f32 %v3739_v20  ;;  %v3257_v20 = vpop.f32.mrf.mxu1 }
 0x649   :  { %v5709_v59 = vpop.eup %5708  ;;  %4578 = vst [vmem:[#allocation8 + $0x48] sm:$0xff] %v4951_v28  ;;  %5734 = vpow2.f32 %v3743_v30  ;;  %v3258_v22 = vadd.f32 %v3257_v20, %v7260_v6  ;;  %v3771_v20 = vmul.f32 1.442695, %v3594_v37 }
 0x64a   :  { %v5711_v35 = vpop.eup %5710  ;;  %5736 = vrcp.f32 %v3960_v11  ;;  %v3259_v12 = vpop.f32.mrf.mxu1 }
 0x64b   :  { %v5713_v17 = vpop.eup %5712  ;;  %v4952_v58 = vpack.c.bf16 %v5711_v35, %v5707_v4  ;;  %5738 = vpow2.f32 %v3745_v39  ;;  %v3597_v21 = vsub.f32 0.0, %v3258_v22 }
 0x64c   :  { %v5715_v40 = vpop.eup %5714  ;;  %v4953_v56 = vpack.c.bf16 %v5713_v17, %v5709_v59  ;;  %5740 = vpow2.f32 %v3749_v15  ;;  %v3450_v15 = vpop.f32.mrf.mxu0 }
 0x64d   :  { %v5717_v1 = vpop.eup %5716  ;;  %4579 = vst [vmem:[#allocation8 + $0x50] sm:$0xff] %v4952_v58  ;;  %5742 = vpow2.f32 %v3747_v3  ;;  %v3263_v34 = vpop.f32.mrf.mxu1  ;;  %v3451_v58 = vadd.f32 %v3450_v15, %v7262_v0 }
 0x64e   :  { %v5719_v53 = vpop.eup %5718  ;;  %4580 = vst [vmem:[#allocation8 + $0x58] sm:$0xff] %v4953_v56  ;;  %5744 = vpow2.f32 %v3751_v32  ;;  %v3452_v18 = vpop.f32.mrf.mxu0  ;;  %v3449_v32 = vadd.f32 %v3448_v49, %v7267_v41  ;;  %v3595_v56 = vsub.f32 0.0, %v3447_v42 }
 0x64f   :  { %v5721_v19 = vpop.eup %5720  ;;  %v4954_v54 = vpack.c.bf16 %v5719_v53, %v5715_v40  ;;  %5746 = vpow2.f32 %v3753_v57 }
 0x650   :  { %v5723_v5 = vpop.eup %5722  ;;  %v4955_v61 = vpack.c.bf16 %v5721_v19, %v5717_v1  ;;  %5748 = vpow2.f32 %v3757_v55  ;;  %v3456_v57 = vpop.f32.mrf.mxu0 }
 0x651   :  { %v5725_v23 = vpop.eup %5724  ;;  %4581 = vst [vmem:[#allocation8 + $0x60] sm:$0xff] %v4954_v54  ;;  %5750 = vpow2.f32 %v3755_v46  ;;  %v3265_v55 = vpop.f32.mrf.mxu1  ;;  %v3769_v46 = vmul.f32 1.442695, %v3593_v43  ;;  %v3599_v54 = vsub.f32 0.0, %v3451_v58 }
 0x652   :  { %v5727_v29 = vpop.eup %5726  ;;  %4582 = vst [vmem:[#allocation8 + $0x68] sm:$0xff] %v4955_v61  ;;  %5752 = vpow2.f32 %v3759_v7  ;;  %v3596_v7 = vsub.f32 0.0, %v3449_v32 }
 0x653   :  { %v5729_v33 = vpop.eup %5728  ;;  %v4956_v14 = vpack.c.bf16 %v5727_v29, %v5723_v5  ;;  %5754 = vpow2.f32 %v3761_v60  ;;  %v3260_v60 = vadd.f32 %v3259_v12, %v7265_v2  ;;  %v3458_v5 = vpop.f32.mrf.mxu0  ;;  %v3781_v15 = vmul.f32 1.442695, %v3599_v54 }
 0x654   :  { %v5731_v30 = vpop.eup %5730  ;;  %v3961_v39 = vadd.f32 1.0, %v5729_v33  ;;  %5756 = vpow2.f32 %v3765_v9  ;;  %v3267_v49 = vpop.f32.mrf.mxu1  ;;  %v3264_v33 = vadd.f32 %v3263_v34, %v7260_v6  ;;  %v3459_v47 = vadd.f32 %v3458_v5, %v7267_v41 }
 0x655   :  { %v5733_v24 = vpop.eup %5732  ;;  %4583 = vst [vmem:[#allocation8 + $0x70] sm:$0xff] %v4956_v14  ;;  %v3963_v48 = vadd.f32 1.0, %v5731_v30  ;;  %5758 = vpow2.f32 %v3763_v38  ;;  %v3453_v38 = vadd.f32 %v3452_v18, %v7267_v41  ;;  %v3775_v30 = vmul.f32 1.442695, %v3596_v7 }
 0x656   :  { %v5735_v63 = vpop.eup %5734  ;;  %5760 = vrcp.f32 %v3961_v39  ;;  %v3962_v13 = vadd.f32 1.0, %v5733_v24  ;;  %v3777_v39 = vmul.f32 1.442695, %v3597_v21  ;;  %v3457_v24 = vadd.f32 %v3456_v57, %v7262_v0 }
 0x657   :  { %v5737_v10 = vpop.eup %5736  ;;  %5762 = vrcp.f32 %v3963_v48  ;;  %v3964_v31 = vadd.f32 1.0, %v5735_v63  ;;  %v3598_v63 = vsub.f32 0.0, %v3260_v60  ;;  %v3268_v18 = vadd.f32 %v3267_v49, %v7260_v6 }
 0x658   :  { %v5739_v51 = vpop.eup %5738  ;;  %v4957_v36 = vpack.c.bf16 %v5737_v10, %v5725_v23  ;;  %5764 = vrcp.f32 %v3962_v13  ;;  %v3773_v23 = vmul.f32 1.442695, %v3595_v56  ;;  %v3266_v13 = vadd.f32 %v3265_v55, %v7265_v2 }
 0x659   :  { %v5741_v28 = vpop.eup %5740  ;;  %5766 = vrcp.f32 %v3964_v31  ;;  %v3965_v52 = vadd.f32 1.0, %v5739_v51  ;;  %v3600_v31 = vsub.f32 0.0, %v3453_v38  ;;  %v3269_v51 = vpop.f32.mrf.mxu1  ;;  %v3603_v42 = vsub.f32 0.0, %v3457_v24 }
 0x65a   :  { %v5743_v4 = vpop.eup %5742  ;;  %4584 = vst [vmem:[#allocation8 + $0x78] sm:$0xff] %v4957_v36  ;;  %v3967_v11 = vadd.f32 1.0, %v5741_v28  ;;  %5768 = vpow2.f32 %v3767_v8  ;;  %v3460_v8 = vpop.f32.mrf.mxu0  ;;  %v3602_v43 = vsub.f32 0.0, %v3266_v13  ;;  %v3270_v16 = vadd.f32 %v3269_v51, %v7265_v2 }
 0x65b   :  { %v5745_v59 = vpop.eup %5744  ;;  %5770 = vrcp.f32 %v3965_v52  ;;  %v3966_v3 = vadd.f32 1.0, %v5743_v4  ;;  %v3601_v52 = vsub.f32 0.0, %v3264_v33  ;;  %v3461_v34 = vadd.f32 %v3460_v8, %v7262_v0 }
 0x65c   :  { %v5747_v45 = vpop.eup %5746  ;;  %5772 = vrcp.f32 %v3967_v11  ;;  %v3968_v35 = vadd.f32 1.0, %v5745_v59  ;;  %v3783_v32 = vmul.f32 1.442695, %v3600_v31  ;;  %v3604_v22 = vsub.f32 0.0, %v3459_v47 }
 0x65d   :  { %v5749_v27 = vpop.eup %5748  ;;  %5774 = vrcp.f32 %v3966_v3  ;;  %v3969_v17 = vadd.f32 1.0, %v5747_v45  ;;  %v3779_v3 = vmul.f32 1.442695, %v3598_v63  ;;  %v3462_v45 = vpop.f32.mrf.mxu0  ;;  %v3785_v57 = vmul.f32 1.442695, %v3601_v52 }
 0x65e   :  { %v5751_v25 = vpop.eup %5750  ;;  %5776 = vrcp.f32 %v3968_v35  ;;  %v3971_v40 = vadd.f32 1.0, %v5749_v27  ;;  %v3273_v27 = vpop.f32.mrf.mxu1  ;;  %v3789_v55 = vmul.f32 1.442695, %v3603_v42  ;;  %v3606_v37 = vsub.f32 0.0, %v3270_v16 }
 0x65f   :  { %v5753_v62 = vpop.eup %5752  ;;  %5778 = vrcp.f32 %v3969_v17  ;;  %v3970_v1 = vadd.f32 1.0, %v5751_v25  ;;  %v3605_v25 = vsub.f32 0.0, %v3268_v18  ;;  %v3791_v7 = vmul.f32 1.442695, %v3604_v22 }
 0x660   :  { %v5755_v50 = vpop.eup %5754  ;;  %5780 = vrcp.f32 %v3971_v40  ;;  %v3972_v53 = vadd.f32 1.0, %v5753_v62  ;;  %v3607_v62 = vsub.f32 0.0, %v3461_v34  ;;  %v3463_v21 = vadd.f32 %v3462_v45, %v7267_v41 }
 0x661   :  { %v5757_v44 = vpop.eup %5756  ;;  %5782 = vrcp.f32 %v3970_v1  ;;  %v3973_v19 = vadd.f32 1.0, %v5755_v50  ;;  %v3466_v50 = vpop.f32.mrf.mxu0  ;;  %v3793_v60 = vmul.f32 1.442695, %v3605_v25  ;;  %v3795_v38 = vmul.f32 1.442695, %v3606_v37 }
 0x662   :  { %v5759_v61 = vpop.eup %5758  ;;  %5784 = vrcp.f32 %v3972_v53  ;;  %v3975_v9 = vadd.f32 1.0, %v5757_v44  ;;  %v3275_v44 = vpop.f32.mrf.mxu1  ;;  %v3274_v47 = vadd.f32 %v3273_v27, %v7260_v6  ;;  %v3467_v42 = vadd.f32 %v3466_v50, %v7262_v0 }
 0x663   :  { %v5761_v29 = vpop.eup %5760  ;;  %5786 = vrcp.f32 %v3973_v19  ;;  %v3974_v26 = vadd.f32 1.0, %v5759_v61  ;;  %v3468_v49 = vpop.f32.mrf.mxu0  ;;  %v3276_v16 = vadd.f32 %v3275_v44, %v7265_v2 }
 0x664   :  { %v5763_v14 = vpop.eup %5762  ;;  %5788 = vrcp.f32 %v3975_v9  ;;  %v3797_v9 = vmul.f32 1.442695, %v3607_v62 }
 0x665   :  { %v5765_v48 = vpop.eup %5764  ;;  %5790 = vrcp.f32 %v3974_v26  ;;  %v3608_v26 = vsub.f32 0.0, %v3463_v21  ;;  %v3610_v37 = vsub.f32 0.0, %v3276_v16 }
 0x666   :  { %v5767_v12 = vpop.eup %5766  ;;  %v4958_v10 = vpack.c.bf16 %v5765_v48, %v5761_v29  ;;  %5792 = vpow2.f32 %v3769_v46  ;;  %v3787_v46 = vmul.f32 1.442695, %v3602_v43  ;;  %v3609_v43 = vsub.f32 0.0, %v3274_v47 }
 0x667   :  { %v5769_v36 = vpop.eup %5768  ;;  %v4959_v28 = vpack.c.bf16 %v5767_v12, %v5763_v14  ;;  %5794 = vpow2.f32 %v3773_v23  ;;  %v3799_v8 = vmul.f32 1.442695, %v3608_v26 }
 0x668   :  { %v5771_v4 = vpop.eup %5770  ;;  %4585 = vst [vmem:[#allocation8 + $0x80] sm:$0xff] %v4958_v10  ;;  %v3976_v11 = vadd.f32 1.0, %v5769_v36  ;;  %5796 = vpow2.f32 %v3771_v20  ;;  %v3277_v20 = vpop.f32.mrf.mxu1 }
 0x669   :  { %v5773_v59 = vpop.eup %5772  ;;  %4586 = vst [vmem:[#allocation8 + $0x88] sm:$0xff] %v4959_v28  ;;  %5798 = vpow2.f32 %v3775_v30  ;;  %v3278_v22 = vadd.f32 %v3277_v20, %v7260_v6  ;;  %v3803_v20 = vmul.f32 1.442695, %v3610_v37 }
 0x66a   :  { %v5775_v35 = vpop.eup %5774  ;;  %5800 = vrcp.f32 %v3976_v11  ;;  %v3279_v12 = vpop.f32.mrf.mxu1 }
 0x66b   :  { %v5777_v17 = vpop.eup %5776  ;;  %v4960_v58 = vpack.c.bf16 %v5775_v35, %v5771_v4  ;;  %5802 = vpow2.f32 %v3777_v39  ;;  %v3613_v21 = vsub.f32 0.0, %v3278_v22 }
 0x66c   :  { %v5779_v40 = vpop.eup %5778  ;;  %v4961_v56 = vpack.c.bf16 %v5777_v17, %v5773_v59  ;;  %5804 = vpow2.f32 %v3781_v15  ;;  %v3470_v15 = vpop.f32.mrf.mxu0 }
 0x66d   :  { %v5781_v1 = vpop.eup %5780  ;;  %4587 = vst [vmem:[#allocation8 + $0x90] sm:$0xff] %v4960_v58  ;;  %5806 = vpow2.f32 %v3779_v3  ;;  %v3283_v34 = vpop.f32.mrf.mxu1  ;;  %v3471_v58 = vadd.f32 %v3470_v15, %v7262_v0 }
 0x66e   :  { %v5783_v53 = vpop.eup %5782  ;;  %4588 = vst [vmem:[#allocation8 + $0x98] sm:$0xff] %v4961_v56  ;;  %5808 = vpow2.f32 %v3783_v32  ;;  %v3472_v18 = vpop.f32.mrf.mxu0  ;;  %v3469_v32 = vadd.f32 %v3468_v49, %v7267_v41  ;;  %v3611_v56 = vsub.f32 0.0, %v3467_v42 }
 0x66f   :  { %v5785_v19 = vpop.eup %5784  ;;  %v4962_v54 = vpack.c.bf16 %v5783_v53, %v5779_v40  ;;  %5810 = vpow2.f32 %v3785_v57 }
 0x670   :  { %v5787_v5 = vpop.eup %5786  ;;  %v4963_v61 = vpack.c.bf16 %v5785_v19, %v5781_v1  ;;  %5812 = vpow2.f32 %v3789_v55  ;;  %v3476_v57 = vpop.f32.mrf.mxu0 }
 0x671   :  { %v5789_v23 = vpop.eup %5788  ;;  %4589 = vst [vmem:[#allocation8 + $0xa0] sm:$0xff] %v4962_v54  ;;  %5814 = vpow2.f32 %v3787_v46  ;;  %v3285_v55 = vpop.f32.mrf.mxu1  ;;  %v3801_v46 = vmul.f32 1.442695, %v3609_v43  ;;  %v3615_v54 = vsub.f32 0.0, %v3471_v58 }
 0x672   :  { %v5791_v29 = vpop.eup %5790  ;;  %4590 = vst [vmem:[#allocation8 + $0xa8] sm:$0xff] %v4963_v61  ;;  %5816 = vpow2.f32 %v3791_v7  ;;  %v3612_v7 = vsub.f32 0.0, %v3469_v32 }
 0x673   :  { %v5793_v33 = vpop.eup %5792  ;;  %v4964_v14 = vpack.c.bf16 %v5791_v29, %v5787_v5  ;;  %5818 = vpow2.f32 %v3793_v60  ;;  %v3280_v60 = vadd.f32 %v3279_v12, %v7265_v2  ;;  %v3478_v5 = vpop.f32.mrf.mxu0  ;;  %v3813_v15 = vmul.f32 1.442695, %v3615_v54 }
 0x674   :  { %v5795_v30 = vpop.eup %5794  ;;  %v3977_v39 = vadd.f32 1.0, %v5793_v33  ;;  %5820 = vpow2.f32 %v3797_v9  ;;  %v3287_v49 = vpop.f32.mrf.mxu1  ;;  %v3284_v33 = vadd.f32 %v3283_v34, %v7260_v6  ;;  %v3479_v47 = vadd.f32 %v3478_v5, %v7267_v41 }
 0x675   :  { %v5797_v24 = vpop.eup %5796  ;;  %4591 = vst [vmem:[#allocation8 + $0xb0] sm:$0xff] %v4964_v14  ;;  %v3979_v48 = vadd.f32 1.0, %v5795_v30  ;;  %5822 = vpow2.f32 %v3795_v38  ;;  %v3473_v38 = vadd.f32 %v3472_v18, %v7267_v41  ;;  %v3807_v30 = vmul.f32 1.442695, %v3612_v7 }
 0x676   :  { %v5799_v63 = vpop.eup %5798  ;;  %5824 = vrcp.f32 %v3977_v39  ;;  %v3978_v13 = vadd.f32 1.0, %v5797_v24  ;;  %v3809_v39 = vmul.f32 1.442695, %v3613_v21  ;;  %v3477_v24 = vadd.f32 %v3476_v57, %v7262_v0 }
 0x677   :  { %v5801_v10 = vpop.eup %5800  ;;  %5826 = vrcp.f32 %v3979_v48  ;;  %v3980_v31 = vadd.f32 1.0, %v5799_v63  ;;  %v3614_v63 = vsub.f32 0.0, %v3280_v60  ;;  %v3288_v18 = vadd.f32 %v3287_v49, %v7260_v6 }
 0x678   :  { %v5803_v51 = vpop.eup %5802  ;;  %v4965_v36 = vpack.c.bf16 %v5801_v10, %v5789_v23  ;;  %5828 = vrcp.f32 %v3978_v13  ;;  %v3805_v23 = vmul.f32 1.442695, %v3611_v56  ;;  %v3286_v13 = vadd.f32 %v3285_v55, %v7265_v2 }
 0x679   :  { %v5805_v28 = vpop.eup %5804  ;;  %5830 = vrcp.f32 %v3980_v31  ;;  %v3981_v52 = vadd.f32 1.0, %v5803_v51  ;;  %v3616_v31 = vsub.f32 0.0, %v3473_v38  ;;  %v3289_v51 = vpop.f32.mrf.mxu1  ;;  %v3619_v42 = vsub.f32 0.0, %v3477_v24 }
 0x67a   :  { %v5807_v4 = vpop.eup %5806  ;;  %4592 = vst [vmem:[#allocation8 + $0xb8] sm:$0xff] %v4965_v36  ;;  %v3983_v11 = vadd.f32 1.0, %v5805_v28  ;;  %5832 = vpow2.f32 %v3799_v8  ;;  %v3480_v8 = vpop.f32.mrf.mxu0  ;;  %v3618_v43 = vsub.f32 0.0, %v3286_v13  ;;  %v3290_v16 = vadd.f32 %v3289_v51, %v7265_v2 }
 0x67b   :  { %v5809_v59 = vpop.eup %5808  ;;  %5834 = vrcp.f32 %v3981_v52  ;;  %v3982_v3 = vadd.f32 1.0, %v5807_v4  ;;  %v3617_v52 = vsub.f32 0.0, %v3284_v33  ;;  %v3481_v34 = vadd.f32 %v3480_v8, %v7262_v0 }
 0x67c   :  { %v5811_v45 = vpop.eup %5810  ;;  %5836 = vrcp.f32 %v3983_v11  ;;  %v3984_v35 = vadd.f32 1.0, %v5809_v59  ;;  %v3815_v32 = vmul.f32 1.442695, %v3616_v31  ;;  %v3620_v22 = vsub.f32 0.0, %v3479_v47 }
 0x67d   :  { %v5813_v27 = vpop.eup %5812  ;;  %5838 = vrcp.f32 %v3982_v3  ;;  %v3985_v17 = vadd.f32 1.0, %v5811_v45  ;;  %v3811_v3 = vmul.f32 1.442695, %v3614_v63  ;;  %v3482_v45 = vpop.f32.mrf.mxu0  ;;  %v3817_v57 = vmul.f32 1.442695, %v3617_v52 }
 0x67e   :  { %v5815_v25 = vpop.eup %5814  ;;  %5840 = vrcp.f32 %v3984_v35  ;;  %v3987_v40 = vadd.f32 1.0, %v5813_v27  ;;  %v3293_v27 = vpop.f32.mrf.mxu1  ;;  %v3821_v55 = vmul.f32 1.442695, %v3619_v42  ;;  %v3622_v37 = vsub.f32 0.0, %v3290_v16 }
 0x67f   :  { %v5817_v62 = vpop.eup %5816  ;;  %5842 = vrcp.f32 %v3985_v17  ;;  %v3986_v1 = vadd.f32 1.0, %v5815_v25  ;;  %v3621_v25 = vsub.f32 0.0, %v3288_v18  ;;  %v3823_v7 = vmul.f32 1.442695, %v3620_v22 }
 0x680   :  { %v5819_v50 = vpop.eup %5818  ;;  %5844 = vrcp.f32 %v3987_v40  ;;  %v3988_v53 = vadd.f32 1.0, %v5817_v62  ;;  %v3623_v62 = vsub.f32 0.0, %v3481_v34  ;;  %v3483_v21 = vadd.f32 %v3482_v45, %v7267_v41 }
 0x681   :  { %v5821_v44 = vpop.eup %5820  ;;  %5846 = vrcp.f32 %v3986_v1  ;;  %v3989_v19 = vadd.f32 1.0, %v5819_v50  ;;  %v3486_v50 = vpop.f32.mrf.mxu0  ;;  %v3825_v60 = vmul.f32 1.442695, %v3621_v25  ;;  %v3827_v38 = vmul.f32 1.442695, %v3622_v37 }
 0x682   :  { %v5823_v61 = vpop.eup %5822  ;;  %5848 = vrcp.f32 %v3988_v53  ;;  %v3991_v9 = vadd.f32 1.0, %v5821_v44  ;;  %v3295_v44 = vpop.f32.mrf.mxu1  ;;  %v3294_v47 = vadd.f32 %v3293_v27, %v7260_v6  ;;  %v3487_v42 = vadd.f32 %v3486_v50, %v7262_v0 }
 0x683   :  { %v5825_v29 = vpop.eup %5824  ;;  %5850 = vrcp.f32 %v3989_v19  ;;  %v3990_v26 = vadd.f32 1.0, %v5823_v61  ;;  %v3488_v49 = vpop.f32.mrf.mxu0  ;;  %v3296_v16 = vadd.f32 %v3295_v44, %v7265_v2 }
 0x684   :  { %v5827_v14 = vpop.eup %5826  ;;  %5852 = vrcp.f32 %v3991_v9  ;;  %v3829_v9 = vmul.f32 1.442695, %v3623_v62 }
 0x685   :  { %v5829_v48 = vpop.eup %5828  ;;  %5854 = vrcp.f32 %v3990_v26  ;;  %v3624_v26 = vsub.f32 0.0, %v3483_v21  ;;  %v3626_v37 = vsub.f32 0.0, %v3296_v16 }
 0x686   :  { %v5831_v12 = vpop.eup %5830  ;;  %v4966_v10 = vpack.c.bf16 %v5829_v48, %v5825_v29  ;;  %5856 = vpow2.f32 %v3801_v46  ;;  %v3819_v46 = vmul.f32 1.442695, %v3618_v43  ;;  %v3625_v43 = vsub.f32 0.0, %v3294_v47 }
 0x687   :  { %v5833_v36 = vpop.eup %5832  ;;  %v4967_v28 = vpack.c.bf16 %v5831_v12, %v5827_v14  ;;  %5858 = vpow2.f32 %v3805_v23  ;;  %v3831_v8 = vmul.f32 1.442695, %v3624_v26 }
 0x688   :  { %v5835_v4 = vpop.eup %5834  ;;  %4593 = vst [vmem:[#allocation8 + $0xc0] sm:$0xff] %v4966_v10  ;;  %v3992_v11 = vadd.f32 1.0, %v5833_v36  ;;  %5860 = vpow2.f32 %v3803_v20  ;;  %v3297_v20 = vpop.f32.mrf.mxu1 }
 0x689   :  { %v5837_v59 = vpop.eup %5836  ;;  %4594 = vst [vmem:[#allocation8 + $0xc8] sm:$0xff] %v4967_v28  ;;  %5862 = vpow2.f32 %v3807_v30  ;;  %v3298_v22 = vadd.f32 %v3297_v20, %v7260_v6  ;;  %v3835_v20 = vmul.f32 1.442695, %v3626_v37 }
 0x68a   :  { %v5839_v35 = vpop.eup %5838  ;;  %5864 = vrcp.f32 %v3992_v11  ;;  %v3299_v12 = vpop.f32.mrf.mxu1 }
 0x68b   :  { %v5841_v17 = vpop.eup %5840  ;;  %v4968_v58 = vpack.c.bf16 %v5839_v35, %v5835_v4  ;;  %5866 = vpow2.f32 %v3809_v39  ;;  %v3629_v21 = vsub.f32 0.0, %v3298_v22 }
 0x68c   :  { %v5843_v40 = vpop.eup %5842  ;;  %v4969_v56 = vpack.c.bf16 %v5841_v17, %v5837_v59  ;;  %5868 = vpow2.f32 %v3813_v15  ;;  %v3490_v15 = vpop.f32.mrf.mxu0 }
 0x68d   :  { %v5845_v1 = vpop.eup %5844  ;;  %4595 = vst [vmem:[#allocation8 + $0xd0] sm:$0xff] %v4968_v58  ;;  %5870 = vpow2.f32 %v3811_v3  ;;  %v3303_v34 = vpop.f32.mrf.mxu1  ;;  %v3491_v58 = vadd.f32 %v3490_v15, %v7262_v0 }
 0x68e   :  { %v5847_v53 = vpop.eup %5846  ;;  %4596 = vst [vmem:[#allocation8 + $0xd8] sm:$0xff] %v4969_v56  ;;  %5872 = vpow2.f32 %v3815_v32  ;;  %v3492_v18 = vpop.f32.mrf.mxu0  ;;  %v3489_v32 = vadd.f32 %v3488_v49, %v7267_v41  ;;  %v3627_v56 = vsub.f32 0.0, %v3487_v42 }
 0x68f   :  { %v5849_v19 = vpop.eup %5848  ;;  %v4970_v54 = vpack.c.bf16 %v5847_v53, %v5843_v40  ;;  %5874 = vpow2.f32 %v3817_v57 }
 0x690   :  { %v5851_v5 = vpop.eup %5850  ;;  %v4971_v61 = vpack.c.bf16 %v5849_v19, %v5845_v1  ;;  %5876 = vpow2.f32 %v3821_v55  ;;  %v3496_v57 = vpop.f32.mrf.mxu0 }
 0x691   :  { %v5853_v23 = vpop.eup %5852  ;;  %4597 = vst [vmem:[#allocation8 + $0xe0] sm:$0xff] %v4970_v54  ;;  %5878 = vpow2.f32 %v3819_v46  ;;  %v3305_v55 = vpop.f32.mrf.mxu1  ;;  %v3833_v46 = vmul.f32 1.442695, %v3625_v43  ;;  %v3631_v54 = vsub.f32 0.0, %v3491_v58 }
 0x692   :  { %v5855_v29 = vpop.eup %5854  ;;  %4598 = vst [vmem:[#allocation8 + $0xe8] sm:$0xff] %v4971_v61  ;;  %5880 = vpow2.f32 %v3823_v7  ;;  %v3628_v7 = vsub.f32 0.0, %v3489_v32 }
 0x693   :  { %v5857_v33 = vpop.eup %5856  ;;  %v4972_v14 = vpack.c.bf16 %v5855_v29, %v5851_v5  ;;  %5882 = vpow2.f32 %v3825_v60  ;;  %v3300_v60 = vadd.f32 %v3299_v12, %v7265_v2  ;;  %v3498_v5 = vpop.f32.mrf.mxu0  ;;  %v3845_v15 = vmul.f32 1.442695, %v3631_v54 }
 0x694   :  { %v5859_v30 = vpop.eup %5858  ;;  %v3993_v39 = vadd.f32 1.0, %v5857_v33  ;;  %5884 = vpow2.f32 %v3829_v9  ;;  %v3307_v49 = vpop.f32.mrf.mxu1  ;;  %v3304_v33 = vadd.f32 %v3303_v34, %v7260_v6  ;;  %v3499_v47 = vadd.f32 %v3498_v5, %v7267_v41 }
 0x695   :  { %v5861_v24 = vpop.eup %5860  ;;  %4599 = vst [vmem:[#allocation8 + $0xf0] sm:$0xff] %v4972_v14  ;;  %v3995_v48 = vadd.f32 1.0, %v5859_v30  ;;  %5886 = vpow2.f32 %v3827_v38  ;;  %v3493_v38 = vadd.f32 %v3492_v18, %v7267_v41  ;;  %v3839_v30 = vmul.f32 1.442695, %v3628_v7 }
 0x696   :  { %v5863_v63 = vpop.eup %5862  ;;  %5888 = vrcp.f32 %v3993_v39  ;;  %v3994_v13 = vadd.f32 1.0, %v5861_v24  ;;  %v3841_v39 = vmul.f32 1.442695, %v3629_v21  ;;  %v3497_v24 = vadd.f32 %v3496_v57, %v7262_v0 }
 0x697   :  { %v5865_v10 = vpop.eup %5864  ;;  %5890 = vrcp.f32 %v3995_v48  ;;  %v3996_v31 = vadd.f32 1.0, %v5863_v63  ;;  %v3630_v63 = vsub.f32 0.0, %v3300_v60  ;;  %v3308_v18 = vadd.f32 %v3307_v49, %v7260_v6 }
 0x698   :  { %v5867_v51 = vpop.eup %5866  ;;  %v4973_v36 = vpack.c.bf16 %v5865_v10, %v5853_v23  ;;  %5892 = vrcp.f32 %v3994_v13  ;;  %v3837_v23 = vmul.f32 1.442695, %v3627_v56  ;;  %v3306_v13 = vadd.f32 %v3305_v55, %v7265_v2 }
 0x699   :  { %v5869_v28 = vpop.eup %5868  ;;  %5894 = vrcp.f32 %v3996_v31  ;;  %v3997_v52 = vadd.f32 1.0, %v5867_v51  ;;  %v3632_v31 = vsub.f32 0.0, %v3493_v38  ;;  %v3309_v51 = vpop.f32.mrf.mxu1  ;;  %v3635_v42 = vsub.f32 0.0, %v3497_v24 }
 0x69a   :  { %v5871_v4 = vpop.eup %5870  ;;  %4600 = vst [vmem:[#allocation8 + $0xf8] sm:$0xff] %v4973_v36  ;;  %v3999_v11 = vadd.f32 1.0, %v5869_v28  ;;  %5896 = vpow2.f32 %v3831_v8  ;;  %v3500_v8 = vpop.f32.mrf.mxu0  ;;  %v3634_v43 = vsub.f32 0.0, %v3306_v13  ;;  %v3310_v16 = vadd.f32 %v3309_v51, %v7265_v2 }
 0x69b   :  { %v5873_v59 = vpop.eup %5872  ;;  %5898 = vrcp.f32 %v3997_v52  ;;  %v3998_v3 = vadd.f32 1.0, %v5871_v4  ;;  %v3633_v52 = vsub.f32 0.0, %v3304_v33  ;;  %v3501_v34 = vadd.f32 %v3500_v8, %v7262_v0 }
 0x69c   :  { %v5875_v45 = vpop.eup %5874  ;;  %5900 = vrcp.f32 %v3999_v11  ;;  %v4000_v35 = vadd.f32 1.0, %v5873_v59  ;;  %v3847_v32 = vmul.f32 1.442695, %v3632_v31  ;;  %v3636_v22 = vsub.f32 0.0, %v3499_v47 }
 0x69d   :  { %v5877_v27 = vpop.eup %5876  ;;  %5902 = vrcp.f32 %v3998_v3  ;;  %v4001_v17 = vadd.f32 1.0, %v5875_v45  ;;  %v3843_v3 = vmul.f32 1.442695, %v3630_v63  ;;  %v3502_v45 = vpop.f32.mrf.mxu0  ;;  %v3849_v57 = vmul.f32 1.442695, %v3633_v52 }
 0x69e   :  { %v5879_v25 = vpop.eup %5878  ;;  %5904 = vrcp.f32 %v4000_v35  ;;  %v4003_v40 = vadd.f32 1.0, %v5877_v27  ;;  %v3313_v27 = vpop.f32.mrf.mxu1  ;;  %v3853_v55 = vmul.f32 1.442695, %v3635_v42  ;;  %v3638_v37 = vsub.f32 0.0, %v3310_v16 }
 0x69f   :  { %v5881_v62 = vpop.eup %5880  ;;  %5906 = vrcp.f32 %v4001_v17  ;;  %v4002_v1 = vadd.f32 1.0, %v5879_v25  ;;  %v3637_v25 = vsub.f32 0.0, %v3308_v18  ;;  %v3855_v7 = vmul.f32 1.442695, %v3636_v22 }
 0x6a0   :  { %v5883_v50 = vpop.eup %5882  ;;  %5908 = vrcp.f32 %v4003_v40  ;;  %v4004_v53 = vadd.f32 1.0, %v5881_v62  ;;  %v3639_v62 = vsub.f32 0.0, %v3501_v34  ;;  %v3503_v21 = vadd.f32 %v3502_v45, %v7267_v41 }
 0x6a1   :  { %v5885_v44 = vpop.eup %5884  ;;  %5910 = vrcp.f32 %v4002_v1  ;;  %v4005_v19 = vadd.f32 1.0, %v5883_v50  ;;  %v3506_v50 = vpop.f32.mrf.mxu0  ;;  %v3857_v60 = vmul.f32 1.442695, %v3637_v25  ;;  %v3859_v38 = vmul.f32 1.442695, %v3638_v37 }
 0x6a2   :  { %v5887_v61 = vpop.eup %5886  ;;  %5912 = vrcp.f32 %v4004_v53  ;;  %v4007_v9 = vadd.f32 1.0, %v5885_v44  ;;  %v3315_v44 = vpop.f32.mrf.mxu1  ;;  %v3314_v47 = vadd.f32 %v3313_v27, %v7260_v6  ;;  %v3507_v42 = vadd.f32 %v3506_v50, %v7262_v0 }
 0x6a3   :  { %v5889_v29 = vpop.eup %5888  ;;  %5914 = vrcp.f32 %v4005_v19  ;;  %v4006_v26 = vadd.f32 1.0, %v5887_v61  ;;  %v3508_v49 = vpop.f32.mrf.mxu0  ;;  %v3316_v16 = vadd.f32 %v3315_v44, %v7265_v2 }
 0x6a4   :  { %v5891_v14 = vpop.eup %5890  ;;  %5916 = vrcp.f32 %v4007_v9  ;;  %v3861_v9 = vmul.f32 1.442695, %v3639_v62 }
 0x6a5   :  { %v5893_v48 = vpop.eup %5892  ;;  %5918 = vrcp.f32 %v4006_v26  ;;  %v3640_v26 = vsub.f32 0.0, %v3503_v21  ;;  %v3642_v37 = vsub.f32 0.0, %v3316_v16 }
 0x6a6   :  { %v5895_v12 = vpop.eup %5894  ;;  %v4974_v10 = vpack.c.bf16 %v5893_v48, %v5889_v29  ;;  %5920 = vpow2.f32 %v3833_v46  ;;  %v3851_v46 = vmul.f32 1.442695, %v3634_v43  ;;  %v3641_v43 = vsub.f32 0.0, %v3314_v47 }
 0x6a7   :  { %v5897_v36 = vpop.eup %5896  ;;  %v4975_v28 = vpack.c.bf16 %v5895_v12, %v5891_v14  ;;  %5922 = vpow2.f32 %v3837_v23  ;;  %v3863_v8 = vmul.f32 1.442695, %v3640_v26 }
 0x6a8   :  { %v5899_v4 = vpop.eup %5898  ;;  %4601 = vst [vmem:[#allocation8 + $0x100] sm:$0xff] %v4974_v10  ;;  %v4008_v11 = vadd.f32 1.0, %v5897_v36  ;;  %5924 = vpow2.f32 %v3835_v20  ;;  %v3317_v20 = vpop.f32.mrf.mxu1 }
 0x6a9   :  { %v5901_v59 = vpop.eup %5900  ;;  %4602 = vst [vmem:[#allocation8 + $0x108] sm:$0xff] %v4975_v28  ;;  %5926 = vpow2.f32 %v3839_v30  ;;  %v3318_v22 = vadd.f32 %v3317_v20, %v7260_v6  ;;  %v3867_v20 = vmul.f32 1.442695, %v3642_v37 }
 0x6aa   :  { %v5903_v35 = vpop.eup %5902  ;;  %5928 = vrcp.f32 %v4008_v11  ;;  %v3319_v12 = vpop.f32.mrf.mxu1 }
 0x6ab   :  { %v5905_v17 = vpop.eup %5904  ;;  %v4976_v58 = vpack.c.bf16 %v5903_v35, %v5899_v4  ;;  %5930 = vpow2.f32 %v3841_v39  ;;  %v3645_v21 = vsub.f32 0.0, %v3318_v22 }
 0x6ac   :  { %v5907_v40 = vpop.eup %5906  ;;  %v4977_v56 = vpack.c.bf16 %v5905_v17, %v5901_v59  ;;  %5932 = vpow2.f32 %v3845_v15  ;;  %v3510_v15 = vpop.f32.mrf.mxu0 }
 0x6ad   :  { %v5909_v1 = vpop.eup %5908  ;;  %4603 = vst [vmem:[#allocation8 + $0x110] sm:$0xff] %v4976_v58  ;;  %5934 = vpow2.f32 %v3843_v3  ;;  %v3323_v34 = vpop.f32.mrf.mxu1  ;;  %v3511_v58 = vadd.f32 %v3510_v15, %v7262_v0 }
 0x6ae   :  { %v5911_v53 = vpop.eup %5910  ;;  %4604 = vst [vmem:[#allocation8 + $0x118] sm:$0xff] %v4977_v56  ;;  %5936 = vpow2.f32 %v3847_v32  ;;  %v3512_v18 = vpop.f32.mrf.mxu0  ;;  %v3509_v32 = vadd.f32 %v3508_v49, %v7267_v41  ;;  %v3643_v56 = vsub.f32 0.0, %v3507_v42 }
 0x6af   :  { %v5913_v19 = vpop.eup %5912  ;;  %v4978_v54 = vpack.c.bf16 %v5911_v53, %v5907_v40  ;;  %5938 = vpow2.f32 %v3849_v57 }
 0x6b0   :  { %v5915_v5 = vpop.eup %5914  ;;  %v4979_v61 = vpack.c.bf16 %v5913_v19, %v5909_v1  ;;  %5940 = vpow2.f32 %v3853_v55  ;;  %v3516_v57 = vpop.f32.mrf.mxu0 }
 0x6b1   :  { %v5917_v23 = vpop.eup %5916  ;;  %4605 = vst [vmem:[#allocation8 + $0x120] sm:$0xff] %v4978_v54  ;;  %5942 = vpow2.f32 %v3851_v46  ;;  %v3325_v55 = vpop.f32.mrf.mxu1  ;;  %v3865_v46 = vmul.f32 1.442695, %v3641_v43  ;;  %v3647_v54 = vsub.f32 0.0, %v3511_v58 }
 0x6b2   :  { %v5919_v29 = vpop.eup %5918  ;;  %4606 = vst [vmem:[#allocation8 + $0x128] sm:$0xff] %v4979_v61  ;;  %5944 = vpow2.f32 %v3855_v7  ;;  %v3644_v7 = vsub.f32 0.0, %v3509_v32 }
 0x6b3   :  { %v5921_v33 = vpop.eup %5920  ;;  %v4980_v14 = vpack.c.bf16 %v5919_v29, %v5915_v5  ;;  %5946 = vpow2.f32 %v3857_v60  ;;  %v3320_v60 = vadd.f32 %v3319_v12, %v7265_v2  ;;  %v3518_v5 = vpop.f32.mrf.mxu0  ;;  %v3877_v15 = vmul.f32 1.442695, %v3647_v54 }
 0x6b4   :  { %v5923_v30 = vpop.eup %5922  ;;  %v4009_v39 = vadd.f32 1.0, %v5921_v33  ;;  %5948 = vpow2.f32 %v3861_v9  ;;  %v3327_v49 = vpop.f32.mrf.mxu1  ;;  %v3324_v33 = vadd.f32 %v3323_v34, %v7260_v6  ;;  %v3519_v47 = vadd.f32 %v3518_v5, %v7267_v41 }
 0x6b5   :  { %v5925_v24 = vpop.eup %5924  ;;  %4607 = vst [vmem:[#allocation8 + $0x130] sm:$0xff] %v4980_v14  ;;  %v4011_v48 = vadd.f32 1.0, %v5923_v30  ;;  %5950 = vpow2.f32 %v3859_v38  ;;  %v3513_v38 = vadd.f32 %v3512_v18, %v7267_v41  ;;  %v3871_v30 = vmul.f32 1.442695, %v3644_v7 }
 0x6b6   :  { %v5927_v63 = vpop.eup %5926  ;;  %5952 = vrcp.f32 %v4009_v39  ;;  %v4010_v13 = vadd.f32 1.0, %v5925_v24  ;;  %v3873_v39 = vmul.f32 1.442695, %v3645_v21  ;;  %v3517_v24 = vadd.f32 %v3516_v57, %v7262_v0 }
 0x6b7   :  { %v5929_v10 = vpop.eup %5928  ;;  %5954 = vrcp.f32 %v4011_v48  ;;  %v4012_v31 = vadd.f32 1.0, %v5927_v63  ;;  %v3646_v63 = vsub.f32 0.0, %v3320_v60  ;;  %v3328_v18 = vadd.f32 %v3327_v49, %v7260_v6 }
 0x6b8   :  { %v5931_v51 = vpop.eup %5930  ;;  %v4981_v36 = vpack.c.bf16 %v5929_v10, %v5917_v23  ;;  %5956 = vrcp.f32 %v4010_v13  ;;  %v3869_v23 = vmul.f32 1.442695, %v3643_v56  ;;  %v3326_v13 = vadd.f32 %v3325_v55, %v7265_v2 }
 0x6b9   :  { %v5933_v28 = vpop.eup %5932  ;;  %5958 = vrcp.f32 %v4012_v31  ;;  %v4013_v52 = vadd.f32 1.0, %v5931_v51  ;;  %v3648_v31 = vsub.f32 0.0, %v3513_v38  ;;  %v3329_v51 = vpop.f32.mrf.mxu1  ;;  %v3651_v42 = vsub.f32 0.0, %v3517_v24 }
 0x6ba   :  { %v5935_v4 = vpop.eup %5934  ;;  %4608 = vst [vmem:[#allocation8 + $0x138] sm:$0xff] %v4981_v36  ;;  %v4015_v11 = vadd.f32 1.0, %v5933_v28  ;;  %5960 = vpow2.f32 %v3863_v8  ;;  %v3520_v8 = vpop.f32.mrf.mxu0  ;;  %v3650_v43 = vsub.f32 0.0, %v3326_v13  ;;  %v3330_v16 = vadd.f32 %v3329_v51, %v7265_v2 }
 0x6bb   :  { %v5937_v59 = vpop.eup %5936  ;;  %5962 = vrcp.f32 %v4013_v52  ;;  %v4014_v3 = vadd.f32 1.0, %v5935_v4  ;;  %v3649_v52 = vsub.f32 0.0, %v3324_v33  ;;  %v3521_v34 = vadd.f32 %v3520_v8, %v7262_v0 }
 0x6bc   :  { %v5939_v45 = vpop.eup %5938  ;;  %5964 = vrcp.f32 %v4015_v11  ;;  %v4016_v35 = vadd.f32 1.0, %v5937_v59  ;;  %v3879_v32 = vmul.f32 1.442695, %v3648_v31  ;;  %v3652_v22 = vsub.f32 0.0, %v3519_v47 }
 0x6bd   :  { %v5941_v27 = vpop.eup %5940  ;;  %5966 = vrcp.f32 %v4014_v3  ;;  %v4017_v17 = vadd.f32 1.0, %v5939_v45  ;;  %v3875_v3 = vmul.f32 1.442695, %v3646_v63  ;;  %v3522_v45 = vpop.f32.mrf.mxu0  ;;  %v3881_v57 = vmul.f32 1.442695, %v3649_v52 }
 0x6be   :  { %v5943_v25 = vpop.eup %5942  ;;  %5968 = vrcp.f32 %v4016_v35  ;;  %v4019_v40 = vadd.f32 1.0, %v5941_v27  ;;  %v3333_v27 = vpop.f32.mrf.mxu1  ;;  %v3885_v55 = vmul.f32 1.442695, %v3651_v42  ;;  %v3654_v37 = vsub.f32 0.0, %v3330_v16 }
 0x6bf   :  { %v5945_v62 = vpop.eup %5944  ;;  %5970 = vrcp.f32 %v4017_v17  ;;  %v4018_v1 = vadd.f32 1.0, %v5943_v25  ;;  %v3653_v25 = vsub.f32 0.0, %v3328_v18  ;;  %v3887_v7 = vmul.f32 1.442695, %v3652_v22 }
 0x6c0   :  { %v5947_v50 = vpop.eup %5946  ;;  %5972 = vrcp.f32 %v4019_v40  ;;  %v4020_v53 = vadd.f32 1.0, %v5945_v62  ;;  %v3655_v62 = vsub.f32 0.0, %v3521_v34  ;;  %v3523_v21 = vadd.f32 %v3522_v45, %v7267_v41 }
 0x6c1   :  { %v5949_v44 = vpop.eup %5948  ;;  %5974 = vrcp.f32 %v4018_v1  ;;  %v4021_v19 = vadd.f32 1.0, %v5947_v50  ;;  %v3526_v50 = vpop.f32.mrf.mxu0  ;;  %v3889_v60 = vmul.f32 1.442695, %v3653_v25  ;;  %v3891_v38 = vmul.f32 1.442695, %v3654_v37 }
 0x6c2   :  { %v5951_v61 = vpop.eup %5950  ;;  %5976 = vrcp.f32 %v4020_v53  ;;  %v4023_v9 = vadd.f32 1.0, %v5949_v44  ;;  %v3335_v44 = vpop.f32.mrf.mxu1  ;;  %v3334_v47 = vadd.f32 %v3333_v27, %v7260_v6  ;;  %v3527_v42 = vadd.f32 %v3526_v50, %v7262_v0 }
 0x6c3   :  { %v5953_v29 = vpop.eup %5952  ;;  %5978 = vrcp.f32 %v4021_v19  ;;  %v4022_v26 = vadd.f32 1.0, %v5951_v61  ;;  %v3528_v49 = vpop.f32.mrf.mxu0  ;;  %v3336_v16 = vadd.f32 %v3335_v44, %v7265_v2 }
 0x6c4   :  { %v5955_v14 = vpop.eup %5954  ;;  %5980 = vrcp.f32 %v4023_v9  ;;  %v3893_v9 = vmul.f32 1.442695, %v3655_v62 }
 0x6c5   :  { %v5957_v48 = vpop.eup %5956  ;;  %5982 = vrcp.f32 %v4022_v26  ;;  %v3656_v26 = vsub.f32 0.0, %v3523_v21  ;;  %v3658_v37 = vsub.f32 0.0, %v3336_v16 }
 0x6c6   :  { %v5959_v12 = vpop.eup %5958  ;;  %v4982_v10 = vpack.c.bf16 %v5957_v48, %v5953_v29  ;;  %5984 = vpow2.f32 %v3865_v46  ;;  %v3883_v46 = vmul.f32 1.442695, %v3650_v43  ;;  %v3657_v43 = vsub.f32 0.0, %v3334_v47 }
 0x6c7   :  { %v5961_v36 = vpop.eup %5960  ;;  %v4983_v28 = vpack.c.bf16 %v5959_v12, %v5955_v14  ;;  %5986 = vpow2.f32 %v3869_v23  ;;  %v3895_v8 = vmul.f32 1.442695, %v3656_v26 }
 0x6c8   :  { %v5963_v4 = vpop.eup %5962  ;;  %4609 = vst [vmem:[#allocation8 + $0x140] sm:$0xff] %v4982_v10  ;;  %v4024_v11 = vadd.f32 1.0, %v5961_v36  ;;  %5988 = vpow2.f32 %v3867_v20  ;;  %v3337_v20 = vpop.f32.mrf.mxu1 }
 0x6c9   :  { %v5965_v59 = vpop.eup %5964  ;;  %4610 = vst [vmem:[#allocation8 + $0x148] sm:$0xff] %v4983_v28  ;;  %5990 = vpow2.f32 %v3871_v30  ;;  %v3338_v22 = vadd.f32 %v3337_v20, %v7260_v6  ;;  %v3899_v20 = vmul.f32 1.442695, %v3658_v37 }
 0x6ca   :  { %v5967_v35 = vpop.eup %5966  ;;  %5992 = vrcp.f32 %v4024_v11  ;;  %v3339_v12 = vpop.f32.mrf.mxu1 }
 0x6cb   :  { %v5969_v17 = vpop.eup %5968  ;;  %v4984_v58 = vpack.c.bf16 %v5967_v35, %v5963_v4  ;;  %5994 = vpow2.f32 %v3873_v39  ;;  %v3661_v21 = vsub.f32 0.0, %v3338_v22 }
 0x6cc   :  { %v5971_v40 = vpop.eup %5970  ;;  %v4985_v56 = vpack.c.bf16 %v5969_v17, %v5965_v59  ;;  %5996 = vpow2.f32 %v3877_v15  ;;  %v3530_v15 = vpop.f32.mrf.mxu0 }
 0x6cd   :  { %v5973_v1 = vpop.eup %5972  ;;  %4611 = vst [vmem:[#allocation8 + $0x150] sm:$0xff] %v4984_v58  ;;  %5998 = vpow2.f32 %v3875_v3  ;;  %v3343_v34 = vpop.f32.mrf.mxu1  ;;  %v3531_v58 = vadd.f32 %v3530_v15, %v7262_v0 }
 0x6ce   :  { %v5975_v53 = vpop.eup %5974  ;;  %4612 = vst [vmem:[#allocation8 + $0x158] sm:$0xff] %v4985_v56  ;;  %6000 = vpow2.f32 %v3879_v32  ;;  %v3532_v18 = vpop.f32.mrf.mxu0  ;;  %v3529_v32 = vadd.f32 %v3528_v49, %v7267_v41  ;;  %v3659_v56 = vsub.f32 0.0, %v3527_v42 }
 0x6cf   :  { %v5977_v19 = vpop.eup %5976  ;;  %v4986_v54 = vpack.c.bf16 %v5975_v53, %v5971_v40  ;;  %6002 = vpow2.f32 %v3881_v57 }
 0x6d0   :  { %v5979_v5 = vpop.eup %5978  ;;  %v4987_v61 = vpack.c.bf16 %v5977_v19, %v5973_v1  ;;  %6004 = vpow2.f32 %v3885_v55  ;;  %v3536_v57 = vpop.f32.mrf.mxu0 }
 0x6d1   :  { %v5981_v23 = vpop.eup %5980  ;;  %4613 = vst [vmem:[#allocation8 + $0x160] sm:$0xff] %v4986_v54  ;;  %6006 = vpow2.f32 %v3883_v46  ;;  %v3345_v55 = vpop.f32.mrf.mxu1  ;;  %v3897_v46 = vmul.f32 1.442695, %v3657_v43  ;;  %v3663_v54 = vsub.f32 0.0, %v3531_v58 }
 0x6d2   :  { %v5983_v29 = vpop.eup %5982  ;;  %4614 = vst [vmem:[#allocation8 + $0x168] sm:$0xff] %v4987_v61  ;;  %6008 = vpow2.f32 %v3887_v7  ;;  %v3660_v7 = vsub.f32 0.0, %v3529_v32 }
 0x6d3   :  { %v5985_v33 = vpop.eup %5984  ;;  %v4988_v14 = vpack.c.bf16 %v5983_v29, %v5979_v5  ;;  %6010 = vpow2.f32 %v3889_v60  ;;  %v3340_v60 = vadd.f32 %v3339_v12, %v7265_v2  ;;  %v3538_v5 = vpop.f32.mrf.mxu0  ;;  %v3909_v15 = vmul.f32 1.442695, %v3663_v54 }
 0x6d4   :  { %v5987_v30 = vpop.eup %5986  ;;  %v4025_v39 = vadd.f32 1.0, %v5985_v33  ;;  %6012 = vpow2.f32 %v3893_v9  ;;  %v3347_v49 = vpop.f32.mrf.mxu1  ;;  %v3344_v33 = vadd.f32 %v3343_v34, %v7260_v6  ;;  %v3539_v47 = vadd.f32 %v3538_v5, %v7267_v41 }
 0x6d5   :  { %v5989_v24 = vpop.eup %5988  ;;  %4615 = vst [vmem:[#allocation8 + $0x170] sm:$0xff] %v4988_v14  ;;  %v4027_v48 = vadd.f32 1.0, %v5987_v30  ;;  %6014 = vpow2.f32 %v3891_v38  ;;  %v3533_v38 = vadd.f32 %v3532_v18, %v7267_v41  ;;  %v3903_v30 = vmul.f32 1.442695, %v3660_v7 }
 0x6d6   :  { %v5991_v63 = vpop.eup %5990  ;;  %6016 = vrcp.f32 %v4025_v39  ;;  %v4026_v13 = vadd.f32 1.0, %v5989_v24  ;;  %v3905_v39 = vmul.f32 1.442695, %v3661_v21  ;;  %v3537_v24 = vadd.f32 %v3536_v57, %v7262_v0 }
 0x6d7   :  { %v5993_v10 = vpop.eup %5992  ;;  %6018 = vrcp.f32 %v4027_v48  ;;  %v4028_v31 = vadd.f32 1.0, %v5991_v63  ;;  %v3662_v63 = vsub.f32 0.0, %v3340_v60  ;;  %v3348_v18 = vadd.f32 %v3347_v49, %v7260_v6 }
 0x6d8   :  { %v5995_v51 = vpop.eup %5994  ;;  %v4989_v36 = vpack.c.bf16 %v5993_v10, %v5981_v23  ;;  %6020 = vrcp.f32 %v4026_v13  ;;  %v3901_v23 = vmul.f32 1.442695, %v3659_v56  ;;  %v3346_v13 = vadd.f32 %v3345_v55, %v7265_v2 }
 0x6d9   :  { %v5997_v28 = vpop.eup %5996  ;;  %6022 = vrcp.f32 %v4028_v31  ;;  %v4029_v52 = vadd.f32 1.0, %v5995_v51  ;;  %v3664_v31 = vsub.f32 0.0, %v3533_v38  ;;  %v3349_v51 = vpop.f32.mrf.mxu1  ;;  %v3667_v42 = vsub.f32 0.0, %v3537_v24 }
 0x6da   :  { %v5999_v4 = vpop.eup %5998  ;;  %4616 = vst [vmem:[#allocation8 + $0x178] sm:$0xff] %v4989_v36  ;;  %v4031_v11 = vadd.f32 1.0, %v5997_v28  ;;  %6024 = vpow2.f32 %v3895_v8  ;;  %v3540_v8 = vpop.f32.mrf.mxu0  ;;  %v3666_v43 = vsub.f32 0.0, %v3346_v13  ;;  %v3350_v16 = vadd.f32 %v3349_v51, %v7265_v2 }
 0x6db   :  { %v6001_v59 = vpop.eup %6000  ;;  %6026 = vrcp.f32 %v4029_v52  ;;  %v4030_v3 = vadd.f32 1.0, %v5999_v4  ;;  %v3665_v52 = vsub.f32 0.0, %v3344_v33  ;;  %v3541_v34 = vadd.f32 %v3540_v8, %v7262_v0 }
 0x6dc   :  { %v6003_v45 = vpop.eup %6002  ;;  %6028 = vrcp.f32 %v4031_v11  ;;  %v4032_v35 = vadd.f32 1.0, %v6001_v59  ;;  %v3668_v32 = vsub.f32 0.0, %v3539_v47  ;;  %v3542_v58 = vpop.f32.mrf.mxu0  ;;  %v3917_v0 = vmul.f32 1.442695, %v3667_v42 }
 0x6dd   :  { %v6005_v27 = vpop.eup %6004  ;;  %6030 = vrcp.f32 %v4030_v3  ;;  %v4033_v17 = vadd.f32 1.0, %v6003_v45  ;;  %v3907_v3 = vmul.f32 1.442695, %v3662_v63  ;;  %v3915_v55 = vmul.f32 1.442695, %v3666_v43 }
 0x6de   :  { %v6007_v25 = vpop.eup %6006  ;;  %6032 = vrcp.f32 %v4032_v35  ;;  %v4035_v40 = vadd.f32 1.0, %v6005_v27  ;;  %v3911_v35 = vmul.f32 1.442695, %v3664_v31  ;;  %v3913_v27 = vmul.f32 1.442695, %v3665_v52 }
 0x6df   :  { %v6009_v62 = vpop.eup %6008  ;;  %6034 = vrcp.f32 %v4033_v17  ;;  %v4034_v1 = vadd.f32 1.0, %v6007_v25  ;;  %v3669_v17 = vsub.f32 0.0, %v3348_v18  ;;  %v3670_v2 = vsub.f32 0.0, %v3350_v16 }
 0x6e0   :  { %v6011_v50 = vpop.eup %6010  ;;  %6036 = vrcp.f32 %v4035_v40  ;;  %v4036_v53 = vadd.f32 1.0, %v6009_v62  ;;  %v3671_v40 = vsub.f32 0.0, %v3541_v34 }
 0x6e1   :  { %v6013_v44 = vpop.eup %6012  ;;  %6038 = vrcp.f32 %v4034_v1  ;;  %v4037_v19 = vadd.f32 1.0, %v6011_v50  ;;  %v3919_v1 = vmul.f32 1.442695, %v3668_v32  ;;  %v3923_v54 = vmul.f32 1.442695, %v3670_v2 }
 0x6e2   :  { %v6015_v61 = vpop.eup %6014  ;;  %6040 = vrcp.f32 %v4036_v53  ;;  %v4039_v9 = vadd.f32 1.0, %v6013_v44  ;;  %v3921_v53 = vmul.f32 1.442695, %v3669_v17  ;;  %v3925_v44 = vmul.f32 1.442695, %v3671_v40 }
 0x6e3   :  { %v6017_v29 = vpop.eup %6016  ;;  %6042 = vrcp.f32 %v4037_v19  ;;  %v4038_v26 = vadd.f32 1.0, %v6015_v61 }
 0x6e4   :  { %v6019_v14 = vpop.eup %6018  ;;  %6044 = vrcp.f32 %v4039_v9 }
 0x6e5   :  { %v6021_v48 = vpop.eup %6020  ;;  %6046 = vrcp.f32 %v4038_v26 }
 0x6e6   :  { %v6023_v12 = vpop.eup %6022  ;;  %v4990_v10 = vpack.c.bf16 %v6021_v48, %v6017_v29  ;;  %6048 = vpow2.f32 %v3897_v46  ;;  %v3543_v46 = vadd.f32 %v3542_v58, %v7267_v41 }
 0x6e7   :  { %v6025_v36 = vpop.eup %6024  ;;  %v4991_v28 = vpack.c.bf16 %v6023_v12, %v6019_v14  ;;  %6050 = vpow2.f32 %v3901_v23 }
 0x6e8   :  { %v6027_v4 = vpop.eup %6026  ;;  %4617 = vst [vmem:[#allocation8 + $0x180] sm:$0xff] %v4990_v10  ;;  %v4040_v11 = vadd.f32 1.0, %v6025_v36  ;;  %6052 = vpow2.f32 %v3899_v20  ;;  %v3672_v5 = vsub.f32 0.0, %v3543_v46 }
 0x6e9   :  { %v6029_v59 = vpop.eup %6028  ;;  %4618 = vst [vmem:[#allocation8 + $0x188] sm:$0xff] %v4991_v28  ;;  %6054 = vpow2.f32 %v3903_v30 }
 0x6ea   :  { %v6031_v45 = vpop.eup %6030  ;;  %6056 = vrcp.f32 %v4040_v11  ;;  %v3927_v20 = vmul.f32 1.442695, %v3672_v5 }
 0x6eb   :  { %v6033_v22 = vpop.eup %6032  ;;  %v4992_v6 = vpack.c.bf16 %v6031_v45, %v6027_v4  ;;  %6058 = vpow2.f32 %v3905_v39 }
 0x6ec   :  { %v6035_v57 = vpop.eup %6034  ;;  %v4993_v25 = vpack.c.bf16 %v6033_v22, %v6029_v59  ;;  %6060 = vpow2.f32 %v3909_v15 }
 0x6ed   :  { %v6037_v56 = vpop.eup %6036  ;;  %4619 = vst [vmem:[#allocation8 + $0x190] sm:$0xff] %v4992_v6  ;;  %6062 = vpow2.f32 %v3907_v3 }
 0x6ee   :  { %v6039_v62 = vpop.eup %6038  ;;  %4620 = vst [vmem:[#allocation8 + $0x198] sm:$0xff] %v4993_v25  ;;  %6064 = vpow2.f32 %v3911_v35 }
 0x6ef   :  { %v6041_v37 = vpop.eup %6040  ;;  %v4994_v50 = vpack.c.bf16 %v6039_v62, %v6035_v57  ;;  %6066 = vpow2.f32 %v3913_v27 }
 0x6f0   :  { %v6043_v7 = vpop.eup %6042  ;;  %v4995_v21 = vpack.c.bf16 %v6041_v37, %v6037_v56  ;;  %6068 = vpow2.f32 %v3917_v0 }
 0x6f1   :  { %v6045_v19 = vpop.eup %6044  ;;  %4621 = vst [vmem:[#allocation8 + $0x1a0] sm:$0xff] %v4994_v50  ;;  %6070 = vpow2.f32 %v3915_v55 }
 0x6f2   :  { %v6047_v60 = vpop.eup %6046  ;;  %4622 = vst [vmem:[#allocation8 + $0x1a8] sm:$0xff] %v4995_v21  ;;  %6072 = vpow2.f32 %v3919_v1 }
 0x6f3   :  { %v6049_v61 = vpop.eup %6048  ;;  %v4996_v9 = vpack.c.bf16 %v6047_v60, %v6043_v7  ;;  %6074 = vpow2.f32 %v3921_v53 }
 0x6f4   :  { %v6051_v41 = vpop.eup %6050  ;;  %v4041_v23 = vadd.f32 1.0, %v6049_v61  ;;  %6076 = vpow2.f32 %v3925_v44 }
 0x6f5   :  { %v6053_v38 = vpop.eup %6052  ;;  %4623 = vst [vmem:[#allocation8 + $0x1b0] sm:$0xff] %v4996_v9  ;;  %v4043_v49 = vadd.f32 1.0, %v6051_v41  ;;  %6078 = vpow2.f32 %v3923_v54 }
 0x6f6   :  { %v6055_v29 = vpop.eup %6054  ;;  %6080 = vrcp.f32 %v4041_v23  ;;  %v4042_v26 = vadd.f32 1.0, %v6053_v38 }
 0x6f7   :  { %v6057_v33 = vpop.eup %6056  ;;  %6082 = vrcp.f32 %v4043_v49  ;;  %v4044_v14 = vadd.f32 1.0, %v6055_v29 }
 0x6f8   :  { %v6059_v30 = vpop.eup %6058  ;;  %v4997_v39 = vpack.c.bf16 %v6057_v33, %v6045_v19  ;;  %6084 = vrcp.f32 %v4042_v26 }
 0x6f9   :  { %v6061_v24 = vpop.eup %6060  ;;  %6086 = vrcp.f32 %v4044_v14  ;;  %v4045_v48 = vadd.f32 1.0, %v6059_v30 }
 0x6fa   :  { %v6063_v15 = vpop.eup %6062  ;;  %4624 = vst [vmem:[#allocation8 + $0x1b8] sm:$0xff] %v4997_v39  ;;  %v4047_v63 = vadd.f32 1.0, %v6061_v24  ;;  %6088 = vpow2.f32 %v3927_v20 }
 0x6fb   :  { %v6065_v13 = vpop.eup %6064  ;;  %6090 = vrcp.f32 %v4045_v48  ;;  %v4046_v8 = vadd.f32 1.0, %v6063_v15 }
 0x6fc   :  { %v6067_v12 = vpop.eup %6066  ;;  %6092 = vrcp.f32 %v4047_v63  ;;  %v4048_v10 = vadd.f32 1.0, %v6065_v13 }
 0x6fd   :  { %v6069_v31 = vpop.eup %6068  ;;  %6094 = vrcp.f32 %v4046_v8  ;;  %v4049_v47 = vadd.f32 1.0, %v6067_v12 }
 0x6fe   :  { %v6071_v51 = vpop.eup %6070  ;;  %6096 = vrcp.f32 %v4048_v10  ;;  %v4051_v36 = vadd.f32 1.0, %v6069_v31 }
 0x6ff   :  { %v6073_v28 = vpop.eup %6072  ;;  %6098 = vrcp.f32 %v4049_v47  ;;  %v4050_v52 = vadd.f32 1.0, %v6071_v51 }
 0x700   :  { %v6075_v18 = vpop.eup %6074  ;;  %6100 = vrcp.f32 %v4051_v36  ;;  %v4052_v4 = vadd.f32 1.0, %v6073_v28 }
 0x701   :  { %v6077_v11 = vpop.eup %6076  ;;  %6102 = vrcp.f32 %v4050_v52  ;;  %v4053_v42 = vadd.f32 1.0, %v6075_v18 }
 0x702   :  { %v6079_v34 = vpop.eup %6078  ;;  %6104 = vrcp.f32 %v4052_v4  ;;  %v4055_v45 = vadd.f32 1.0, %v6077_v11 }
 0x703   :  { %v6081_v59 = vpop.eup %6080  ;;  %v4054_v3 = vadd.f32 1.0, %v6079_v34  ;;  %6106 = vrcp.f32 %v4053_v42 }
 0x704   :  { %v6083_v43 = vpop.eup %6082 }
 0x705   :  { %v6085_v16 = vpop.eup %6084  ;;  %6108 = vrcp.f32 %v4054_v3 }
 0x706   :  { %v6087_v35 = vpop.eup %6086  ;;  %v4998_v32 = vpack.c.bf16 %v6085_v16, %v6081_v59  ;;  %6110 = vrcp.f32 %v4055_v45 }
 0x707   :  { %v6089_v22 = vpop.eup %6088  ;;  %v4999_v6 = vpack.c.bf16 %v6087_v35, %v6083_v43 }
 0x708   :  { %v6091_v27 = vpop.eup %6090  ;;  %4625 = vst [vmem:[#allocation8 + $0x1c0] sm:$0xff] %v4998_v32  ;;  %v4056_v17 = vadd.f32 1.0, %v6089_v22 }
 0x709   :  { %v6093_v58 = vpop.eup %6092  ;;  %4626 = vst [vmem:[#allocation8 + $0x1c8] sm:$0xff] %v4999_v6 }
 0x70a   :  { %v6095_v57 = vpop.eup %6094  ;;  %6112 = vrcp.f32 %v4056_v17 }
 0x70b   :  { %v6097_v25 = vpop.eup %6096  ;;  %v5000_v0 = vpack.c.bf16 %v6095_v57, %v6091_v27 }
 0x70c   :  { %v6099_v40 = vpop.eup %6098  ;;  %v5001_v56 = vpack.c.bf16 %v6097_v25, %v6093_v58 }
 0x70d   :  { %v6101_v55 = vpop.eup %6100  ;;  %4627 = vst [vmem:[#allocation8 + $0x1d0] sm:$0xff] %v5000_v0 }
 0x70e   :  { %v6103_v2 = vpop.eup %6102  ;;  %4628 = vst [vmem:[#allocation8 + $0x1d8] sm:$0xff] %v5001_v56 }
 0x70f   :  { %v6105_v62 = vpop.eup %6104  ;;  %v5002_v1 = vpack.c.bf16 %v6103_v2, %v6099_v40 }
 0x710   :  { %v5003_v46 = vpack.c.bf16 %v6105_v62, %v6101_v55  ;;  %v6107_v37 = vpop.eup %6106 }
 0x711   :  { %4629 = vst [vmem:[#allocation8 + $0x1e0] sm:$0xff] %v5002_v1 }
 0x712   :  { %v6109_v50 = vpop.eup %6108  ;;  %4630 = vst [vmem:[#allocation8 + $0x1e8] sm:$0xff] %v5003_v46 }
 0x713   :  { %v5004_v53 = vpack.c.bf16 %v6109_v50, %v6107_v37  ;;  %v6111_v7 = vpop.eup %6110 }
 0x715   :  { %4631 = vst [vmem:[#allocation8 + $0x1f0] sm:$0xff] %v5004_v53 }
 0x717   :  { %v6113_v21 = vpop.eup %6112 }
 0x718   :  { %v5005_v44 = vpack.c.bf16 %v6113_v21, %v6111_v7 }
 0x71a   :  { %4632 = vst [vmem:[#allocation8 + $0x1f8] sm:$0xff] %v5005_v44 }
 0x71b   :  { %6185 = shalt.err (!%p6182_p5)
}
 0x71c   :  { %4676 = dma.vmem_to_hbm [thread:$0]  %s4671_s24, 8192, %s7412_s9, [#allocation4], %s6207_s29, %s6207_s29, %s6208_s30  }
 0x71d   :  { %6198 = dma.done.wait [#allocation4], 8192  }
 0x71e   :  { %6199 = vsyncadd [#allocation4], 4294959104 }
 0x71f   :  { %4684 = vsyncpa [#allocation3], 1 }
 0x720   :  { %4685 = vsyncpa [#allocation6], 1 }
 0x721   :  { %4686 = vsyncpa [#allocation4], 1 }

</bundles_post_ra>
